<compile_context>
chip_gen: v6e
topology: v6e:2x2x1
jax: 0.10.0
libtpu: 0.0.40
codegen_flags: <defaults>
</compile_context>

<pallas_src>
import jax
import jax.numpy as jnp
from jax.experimental import pallas as pl
from jax.experimental.pallas import tpu as pltpu


def _round_up(x, m):
    return (x + m - 1) // m * m


def _pick_time_chunk(T, max_chunk=32):
    """Largest chunk <= max_chunk dividing T (falls back to 1 == per-step)."""
    if T <= max_chunk:
        return T
    for tc in range(max_chunk, 0, -1):
        if T % tc == 0:
            return tc
    return 1


def _pad_gate_cols(w, H, HP):
    """Repack [R, 4H] -> [R, 4HP] so gate k lives in columns [k*HP, k*HP + H)."""
    R = w.shape[0]
    out = jnp.zeros((R, 4 * HP), w.dtype)
    for k in range(4):
        out = out.at[:, k * HP:k * HP + H].set(w[:, k * H:(k + 1) * H])
    return out


def _sigmoid1(x):
    # sigmoid(x) == 0.5 * tanh(0.5 * x) + 0.5 : one EUP push per gate instead
    # of exp + reciprocal, on the serial per-step dependency chain.
    return 0.5 * jnp.tanh(0.5 * x) + 0.5


def _lstm_seq_kernel(xw_ref, wh_ref, h0_ref, c0_ref,
                     h_seq_ref, c_last_ref,
                     h_scr, c_scr):
    """One grid step == one chunk of Tc LSTM timesteps.

    xw_ref    : [Tc, B, 4*HP]  precomputed x_t @ Wx + b, streamed per chunk
    wh_ref    : [HP, 4*HP]     recurrent weights, VMEM-resident across chunks
    h0_ref    : [B, HP]        initial hidden state (lane-padded)
    c0_ref    : [B, HP]        initial cell state (lane-padded)
    h_seq_ref : [Tc, B, HP]    per-step hidden output (lane-dense)
    c_last_ref: [B, HP]        final cell state (resident, written once)
    h_scr     : [B, HP] f32    hidden-state carry between chunks
    c_scr     : [B, HP] f32    cell-state carry between chunks (always f32)
    """
    nc = pl.program_id(0)
    last_chunk = pl.num_programs(0) - 1
    tc = xw_ref.shape[0]           # static chunk length
    hp = h_scr.shape[1]            # static padded hidden width

    @pl.when(nc == 0)
    def _init():
        h_scr[...] = h0_ref[...].astype(jnp.float32)
        c_scr[...] = c0_ref[...].astype(jnp.float32)

    wh = wh_ref[...]               # resident weights, loaded once per chunk
    mm_dtype = wh.dtype

    def step(t, carry):
        h, c = carry               # f32 [B, HP], live in vregs
        # Recurrent projection on the MXU; x-projection was hoisted out.
        gates = xw_ref[t].astype(jnp.float32) + jnp.dot(
            h.astype(mm_dtype), wh, preferred_element_type=jnp.float32)
        # Each gate is a 128-aligned, lane-dense HP-wide block.
        i_g = _sigmoid1(gates[:, 0 * hp:1 * hp])
        f_g = _sigmoid1(gates[:, 1 * hp:2 * hp])
        g_g = jnp.tanh(gates[:, 2 * hp:3 * hp])
        o_g = _sigmoid1(gates[:, 3 * hp:4 * hp])
        c = f_g * c + i_g * g_g
        h = o_g * jnp.tanh(c)
        h_seq_ref[t] = h.astype(h_seq_ref.dtype)   # lane-dense per-step store
        return (h, c)

    # Short fixed trip-count: fully unroll so the LLO scheduler sees the chain.
    h, c = jax.lax.fori_loop(0, tc, step, (h_scr[...], c_scr[...]), unroll=True)

    @pl.when(nc != last_chunk)
    def _carry_out():
        h_scr[...] = h
        c_scr[...] = c

    @pl.when(nc == last_chunk)
    def _final():
        c_last_ref[...] = c.astype(c_last_ref.dtype)


def lstm_sequence(x_seq, h0, c0, wx, wh, b, *,
                  matmul_dtype=jnp.float32,
                  stream_dtype=jnp.float32,
                  time_chunk=None,
                  trim_outputs=True):
    """Run T LSTM-cell steps in a single fused Pallas kernel.

    x_seq: [T, B, I], h0/c0: [B, H], wx: [I, 4H], wh: [H, 4H], b: [1, 4H]
    Returns (h_seq [T, B, H], c_last [B, H])  (lane-padded HP if trim_outputs=False).
    """
    T, B, I = x_seq.shape
    H = h0.shape[1]
    HP = _round_up(H, 128)                    # lane-dense hidden width
    Tc = time_chunk or _pick_time_chunk(T)    # timesteps per grid step
    assert T % Tc == 0

    # Lane-dense, per-gate-128-aligned parameter / state padding.  Padded lanes
    # of Wh are zero and padded gate pre-activations are zero, so padded h/c
    # lanes stay exactly 0 through the recurrence (requires zero-padded h0/c0).
    wx_p = _pad_gate_cols(wx, H, HP)                                    # [I, 4HP]
    wh_p = _pad_gate_cols(jnp.pad(wh, ((0, HP - H), (0, 0))), H, HP)    # [HP, 4HP]
    b_p = _pad_gate_cols(b, H, HP)                                      # [1, 4HP]
    h0_p = jnp.pad(h0, ((0, 0), (0, HP - H)))
    c0_p = jnp.pad(c0, ((0, 0), (0, HP - H)))

    # Hoisted input projection: one big matmul, no sequential dependence.
    xw = (jnp.dot(x_seq.reshape(T * B, I).astype(matmul_dtype),
                  wx_p.astype(matmul_dtype),
                  preferred_element_type=jnp.float32)
          + b_p.astype(jnp.float32)).reshape(T, B, 4 * HP)
    xw = xw.astype(stream_dtype)          # bf16 halves streamed HBM traffic
    wh_k = wh_p.astype(matmul_dtype)      # bf16 is MXU-native on v5e/v6e/v7x

    # VMEM budget (double-buffered streamed blocks + resident weights/state).
    f32b = 4
    need = (2 * Tc * B * 4 * HP * jnp.dtype(stream_dtype).itemsize      # xw
            + 2 * Tc * B * HP * jnp.dtype(x_seq.dtype).itemsize         # h_seq
            + 2 * HP * 4 * HP * jnp.dtype(matmul_dtype).itemsize        # Wh
            + 2 * 2 * B * HP * f32b                                     # h0, c0
            + 2 * B * HP * f32b                                         # c_last
            + 2 * B * HP * f32b)                                        # scratch
    vmem_limit = min(100 * 1024 * 1024, max(32 * 1024 * 1024, int(need * 1.5)))

    h_seq_p, c_last_p = pl.pallas_call(
        _lstm_seq_kernel,
        out_shape=(
            jax.ShapeDtypeStruct((T, B, HP), x_seq.dtype),   # h_t for every step
            jax.ShapeDtypeStruct((B, HP), c0.dtype),         # final cell state
        ),
        grid_spec=pltpu.PrefetchScalarGridSpec(
            num_scalar_prefetch=0,
            grid=(T // Tc,),
            in_specs=[
                pl.BlockSpec((Tc, B, 4 * HP), lambda n: (n, 0, 0)),  # streamed x-gates
                pl.BlockSpec((HP, 4 * HP), lambda n: (0, 0)),        # resident Wh
                pl.BlockSpec((B, HP), lambda n: (0, 0)),             # resident h0
                pl.BlockSpec((B, HP), lambda n: (0, 0)),             # resident c0
            ],
            out_specs=(
                pl.BlockSpec((Tc, B, HP), lambda n: (n, 0, 0)),      # lane-dense h_t
                pl.BlockSpec((B, HP), lambda n: (0, 0)),             # resident c_last
            ),
            scratch_shapes=[
                pltpu.VMEM((B, HP), jnp.float32),   # h carry between chunks
                pltpu.VMEM((B, HP), jnp.float32),   # c carry, always f32
            ],
        ),
        compiler_params=pltpu.CompilerParams(
            dimension_semantics=("arbitrary",),     # sequential recurrence over chunks
            vmem_limit_bytes=vmem_limit,
        ),
    )(xw, wh_k, h0_p, c0_p)

    if not trim_outputs:
        # Padded lanes [H:HP) are exactly zero; consumers may use this layout
        # directly to avoid a non-lane-aligned slice pass when H << 128.
        return h_seq_p, c_last_p
    return h_seq_p[:, :, :H], c_last_p[:, :H]


def lstm_cell(x, h, c, wx, wh, b, *, matmul_dtype=jnp.float32):
    """Single LSTM cell step == OptimizedLSTMCell.forward(x, h, c)."""
    h_seq, c_next = lstm_sequence(x[None], h, c, wx, wh, b,
                                  matmul_dtype=matmul_dtype)
    return h_seq[0], c_next


# ---------------------------- pure-JAX references ----------------------------

def lstm_cell_ref(x, h, c, wx, wh, b):
    gates = x @ wx + h @ wh + b
    i, f, g, o = jnp.split(gates, 4, axis=1)
    i = jax.nn.sigmoid(i)
    f = jax.nn.sigmoid(f)
    g = jnp.tanh(g)
    o = jax.nn.sigmoid(o)
    c_next = f * c + i * g
    h_next = o * jnp.tanh(c_next)
    return h_next, c_next


def lstm_sequence_ref(x_seq, h0, c0, wx, wh, b):
    def step(carry, x_t):
        h, c = carry
        h, c = lstm_cell_ref(x_t, h, c, wx, wh, b)
        return (h, c), h
    (_, c_last), h_seq = jax.lax.scan(step, (h0, c0), x_seq)
    return h_seq, c_last


if __name__ == "__main__":
    B, INPUT_SIZE, HIDDEN_SIZE, T = 8, 16, 32, 12

    key = jax.random.PRNGKey(0)
    k_x, k_h, k_c, k_w, k_b = jax.random.split(key, 5)

    x_seq = jax.random.normal(k_x, (T, B, INPUT_SIZE), dtype=jnp.float32)
    h0 = jax.random.normal(k_h, (B, HIDDEN_SIZE), dtype=jnp.float32)
    c0 = jax.random.normal(k_c, (B, HIDDEN_SIZE), dtype=jnp.float32)

    # nn.Linear(input+hidden, 4*hidden)-style init, stored pre-transposed
    # [fan_in, 4H] and split into Wx ([I,4H]) / Wh ([H,4H]);
    # cat((x, h)) @ W.T + b == x @ Wx + h @ Wh + b.
    fan_in = INPUT_SIZE + HIDDEN_SIZE
    bound = 1.0 / (fan_in ** 0.5)
    w_full = jax.random.uniform(k_w, (fan_in, 4 * HIDDEN_SIZE), jnp.float32,
                                minval=-bound, maxval=bound)
    bias = jax.random.uniform(k_b, (1, 4 * HIDDEN_SIZE), jnp.float32,
                              minval=-bound, maxval=bound)
    wx = w_full[:INPUT_SIZE, :]
    wh = w_full[INPUT_SIZE:, :]

    # 1) Fused full-sequence kernel, f32 matmuls (single chunk: grid=(1,)).
    h_seq, c_last = lstm_sequence(x_seq, h0, c0, wx, wh, bias)
    jax.block_until_ready((h_seq, c_last))
    h_seq_r, c_last_r = lstm_sequence_ref(x_seq, h0, c0, wx, wh, bias)
    assert jnp.allclose(h_seq, h_seq_r, atol=1e-4, rtol=1e-4)
    assert jnp.allclose(c_last, c_last_r, atol=1e-4, rtol=1e-4)

    # 2) Multi-chunk path (Tc=4 -> grid=(3,)) to exercise the chunk carry.
    h_seq_ck, c_last_ck = lstm_sequence(x_seq, h0, c0, wx, wh, bias, time_chunk=4)
    jax.block_until_ready((h_seq_ck, c_last_ck))
    assert jnp.allclose(h_seq_ck, h_seq_r, atol=1e-4, rtol=1e-4)
    assert jnp.allclose(c_last_ck, c_last_r, atol=1e-4, rtol=1e-4)

    # 3) Single-step cell (exact semantics of OptimizedLSTMCell.forward).
    h1, c1 = lstm_cell(x_seq[0], h0, c0, wx, wh, bias)
    jax.block_until_ready((h1, c1))
    h1_r, c1_r = lstm_cell_ref(x_seq[0], h0, c0, wx, wh, bias)
    assert jnp.allclose(h1, h1_r, atol=1e-5, rtol=1e-5)
    assert jnp.allclose(c1, c1_r, atol=1e-5, rtol=1e-5)

    # 4) bf16 matmul operands + bf16 streamed x-gates; gate/cell math stays f32.
    #    NOTE: the recurrent h @ Wh rounding compounds over T; keep matmul_dtype
    #    f32 for long sequences if bit-accuracy matters.
    h_seq_bf, c_last_bf = lstm_sequence(x_seq, h0, c0, wx, wh, bias,
                                        matmul_dtype=jnp.bfloat16,
                                        stream_dtype=jnp.bfloat16)
    jax.block_until_ready((h_seq_bf, c_last_bf))
    assert jnp.allclose(h_seq_bf, h_seq_r, atol=1.5e-1, rtol=1.5e-1)
    assert jnp.allclose(c_last_bf, c_last_r, atol=1.5e-1, rtol=1.5e-1)

    print("KERNEL_OK")
</pallas_src>

<mosaic_0001>
module attributes {stable_mosaic.version = 11 : i64} {
  func.func @_lstm_seq_kernel(%arg0: i32, %arg1: memref<12x8x512xf32, #tpu.memory_space<vmem>>, %arg2: memref<128x512xf32, #tpu.memory_space<vmem>>, %arg3: memref<8x128xf32, #tpu.memory_space<vmem>>, %arg4: memref<8x128xf32, #tpu.memory_space<vmem>>, %arg5: memref<12x8x128xf32, #tpu.memory_space<vmem>>, %arg6: memref<8x128xf32, #tpu.memory_space<vmem>>, %arg7: memref<8x128xf32, #tpu.memory_space<vmem>>, %arg8: memref<8x128xf32, #tpu.memory_space<vmem>>) attributes {dimension_semantics = [#tpu.dimension_semantics<arbitrary>], iteration_bounds = array<i64: 1>, scalar_prefetch = 0 : i64, scratch_operands = 2 : i64, tpu.core_type = #tpu.core_type<tc>, window_params = [{transform_indices = @transform_0, window_bounds = array<i64: 12, 8, 512>}, {pipeline_mode = #tpu.pipeline_mode<synchronous>, transform_indices = @transform_1, window_bounds = array<i64: 128, 512>}, {pipeline_mode = #tpu.pipeline_mode<synchronous>, transform_indices = @transform_2, window_bounds = array<i64: 8, 128>}, {pipeline_mode = #tpu.pipeline_mode<synchronous>, transform_indices = @transform_3, window_bounds = array<i64: 8, 128>}, {transform_indices = @transform_4, window_bounds = array<i64: 12, 8, 128>}, {pipeline_mode = #tpu.pipeline_mode<synchronous>, transform_indices = @transform_5, window_bounds = array<i64: 8, 128>}]} {
    %c0_i32 = arith.constant 0 : i32
    %0 = arith.cmpi eq, %arg0, %c0_i32 : i32
    %1 = arith.extui %0 : i1 to i32
    %c0_i32_0 = arith.constant 0 : i32
    %2 = arith.cmpi ne, %1, %c0_i32_0 : i32
    scf.if %2 {
      %c0_178 = arith.constant 0 : index
      %c0_179 = arith.constant 0 : index
      %492 = vector.load %arg3[%c0_178, %c0_179] : memref<8x128xf32, #tpu.memory_space<vmem>>, vector<8x128xf32>
      %c0_180 = arith.constant 0 : index
      %c0_181 = arith.constant 0 : index
      %493 = vector.load %arg7[%c0_180, %c0_181] : memref<8x128xf32, #tpu.memory_space<vmem>>, vector<8x128xf32>
      tpu.vector_store %arg7[%c0_180, %c0_181], %492 {strides = array<i32>} : memref<8x128xf32, #tpu.memory_space<vmem>>, vector<8x128xf32>,
      %c0_182 = arith.constant 0 : index
      %c0_183 = arith.constant 0 : index
      %494 = vector.load %arg4[%c0_182, %c0_183] : memref<8x128xf32, #tpu.memory_space<vmem>>, vector<8x128xf32>
      %c0_184 = arith.constant 0 : index
      %c0_185 = arith.constant 0 : index
      %495 = vector.load %arg8[%c0_184, %c0_185] : memref<8x128xf32, #tpu.memory_space<vmem>>, vector<8x128xf32>
      tpu.vector_store %arg8[%c0_184, %c0_185], %494 {strides = array<i32>} : memref<8x128xf32, #tpu.memory_space<vmem>>, vector<8x128xf32>,
    } else {
    }
    %c0 = arith.constant 0 : index
    %c0_1 = arith.constant 0 : index
    %3 = vector.load %arg2[%c0, %c0_1] : memref<128x512xf32, #tpu.memory_space<vmem>>, vector<128x512xf32>
    %c0_2 = arith.constant 0 : index
    %c0_3 = arith.constant 0 : index
    %4 = vector.load %arg7[%c0_2, %c0_3] : memref<8x128xf32, #tpu.memory_space<vmem>>, vector<8x128xf32>
    %c0_4 = arith.constant 0 : index
    %c0_5 = arith.constant 0 : index
    %5 = vector.load %arg8[%c0_4, %c0_5] : memref<8x128xf32, #tpu.memory_space<vmem>>, vector<8x128xf32>
    %c0_i32_6 = arith.constant 0 : i32
    %6 = arith.index_cast %c0_i32_6 : i32 to index
    %c0_7 = arith.constant 0 : index
    %c0_8 = arith.constant 0 : index
    %7 = vector.load %arg1[%6, %c0_7, %c0_8] : memref<12x8x512xf32, #tpu.memory_space<vmem>>, vector<1x8x512xf32>
    %8 = vector.shape_cast %7 : vector<1x8x512xf32> to vector<8x512xf32>
    %cst = arith.constant dense<0.000000e+00> : vector<8x512xf32>
    %9 = tpu.matmul %4, %3, %cst {dimension_numbers = #tpu.dot_dimension_numbers<[1], [0], [0], [1], [0, 0, 1, 1], [], []>} : vector<8x128xf32>, vector<128x512xf32>, vector<8x512xf32> -> vector<8x512xf32>
    %10 = arith.addf %8, %9 : vector<8x512xf32>
    %11 = vector.extract_strided_slice %10 {offsets = [0, 0], sizes = [8, 128], strides = [1, 1]} : vector<8x512xf32> to vector<8x128xf32>
    %cst_9 = arith.constant 5.000000e-01 : f32
    %12 = vector.broadcast %cst_9 : f32 to vector<8x128xf32>
    %13 = arith.mulf %12, %11 : vector<8x128xf32>
    %14 = math.tanh %13 : vector<8x128xf32>
    %cst_10 = arith.constant 5.000000e-01 : f32
    %15 = vector.broadcast %cst_10 : f32 to vector<8x128xf32>
    %16 = arith.mulf %15, %14 : vector<8x128xf32>
    %cst_11 = arith.constant 5.000000e-01 : f32
    %17 = vector.broadcast %cst_11 : f32 to vector<8x128xf32>
    %18 = arith.addf %16, %17 : vector<8x128xf32>
    %19 = vector.extract_strided_slice %10 {offsets = [0, 128], sizes = [8, 128], strides = [1, 1]} : vector<8x512xf32> to vector<8x128xf32>
    %cst_12 = arith.constant 5.000000e-01 : f32
    %20 = vector.broadcast %cst_12 : f32 to vector<8x128xf32>
    %21 = arith.mulf %20, %19 : vector<8x128xf32>
    %22 = math.tanh %21 : vector<8x128xf32>
    %cst_13 = arith.constant 5.000000e-01 : f32
    %23 = vector.broadcast %cst_13 : f32 to vector<8x128xf32>
    %24 = arith.mulf %23, %22 : vector<8x128xf32>
    %cst_14 = arith.constant 5.000000e-01 : f32
    %25 = vector.broadcast %cst_14 : f32 to vector<8x128xf32>
    %26 = arith.addf %24, %25 : vector<8x128xf32>
    %27 = vector.extract_strided_slice %10 {offsets = [0, 256], sizes = [8, 128], strides = [1, 1]} : vector<8x512xf32> to vector<8x128xf32>
    %28 = math.tanh %27 : vector<8x128xf32>
    %29 = vector.extract_strided_slice %10 {offsets = [0, 384], sizes = [8, 128], strides = [1, 1]} : vector<8x512xf32> to vector<8x128xf32>
    %cst_15 = arith.constant 5.000000e-01 : f32
    %30 = vector.broadcast %cst_15 : f32 to vector<8x128xf32>
    %31 = arith.mulf %30, %29 : vector<8x128xf32>
    %32 = math.tanh %31 : vector<8x128xf32>
    %cst_16 = arith.constant 5.000000e-01 : f32
    %33 = vector.broadcast %cst_16 : f32 to vector<8x128xf32>
    %34 = arith.mulf %33, %32 : vector<8x128xf32>
    %cst_17 = arith.constant 5.000000e-01 : f32
    %35 = vector.broadcast %cst_17 : f32 to vector<8x128xf32>
    %36 = arith.addf %34, %35 : vector<8x128xf32>
    %37 = arith.mulf %26, %5 : vector<8x128xf32>
    %38 = arith.mulf %18, %28 : vector<8x128xf32>
    %39 = arith.addf %37, %38 : vector<8x128xf32>
    %40 = math.tanh %39 : vector<8x128xf32>
    %41 = arith.mulf %36, %40 : vector<8x128xf32>
    %42 = arith.index_cast %c0_i32_6 : i32 to index
    %c0_18 = arith.constant 0 : index
    %c0_19 = arith.constant 0 : index
    %43 = vector.load %arg5[%42, %c0_18, %c0_19] : memref<12x8x128xf32, #tpu.memory_space<vmem>>, vector<1x8x128xf32>
    %44 = vector.shape_cast %43 : vector<1x8x128xf32> to vector<8x128xf32>
    %45 = vector.shape_cast %41 : vector<8x128xf32> to vector<1x8x128xf32>
    tpu.vector_store %arg5[%42, %c0_18, %c0_19], %45 {strides = array<i32>} : memref<12x8x128xf32, #tpu.memory_space<vmem>>, vector<1x8x128xf32>,
    %c1_i32 = arith.constant 1 : i32
    %46 = arith.index_cast %c1_i32 : i32 to index
    %c0_20 = arith.constant 0 : index
    %c0_21 = arith.constant 0 : index
    %47 = vector.load %arg1[%46, %c0_20, %c0_21] : memref<12x8x512xf32, #tpu.memory_space<vmem>>, vector<1x8x512xf32>
    %48 = vector.shape_cast %47 : vector<1x8x512xf32> to vector<8x512xf32>
    %cst_22 = arith.constant dense<0.000000e+00> : vector<8x512xf32>
    %49 = tpu.matmul %41, %3, %cst_22 {dimension_numbers = #tpu.dot_dimension_numbers<[1], [0], [0], [1], [0, 0, 1, 1], [], []>} : vector<8x128xf32>, vector<128x512xf32>, vector<8x512xf32> -> vector<8x512xf32>
    %50 = arith.addf %48, %49 : vector<8x512xf32>
    %51 = vector.extract_strided_slice %50 {offsets = [0, 0], sizes = [8, 128], strides = [1, 1]} : vector<8x512xf32> to vector<8x128xf32>
    %cst_23 = arith.constant 5.000000e-01 : f32
    %52 = vector.broadcast %cst_23 : f32 to vector<8x128xf32>
    %53 = arith.mulf %52, %51 : vector<8x128xf32>
    %54 = math.tanh %53 : vector<8x128xf32>
    %cst_24 = arith.constant 5.000000e-01 : f32
    %55 = vector.broadcast %cst_24 : f32 to vector<8x128xf32>
    %56 = arith.mulf %55, %54 : vector<8x128xf32>
    %cst_25 = arith.constant 5.000000e-01 : f32
    %57 = vector.broadcast %cst_25 : f32 to vector<8x128xf32>
    %58 = arith.addf %56, %57 : vector<8x128xf32>
    %59 = vector.extract_strided_slice %50 {offsets = [0, 128], sizes = [8, 128], strides = [1, 1]} : vector<8x512xf32> to vector<8x128xf32>
    %cst_26 = arith.constant 5.000000e-01 : f32
    %60 = vector.broadcast %cst_26 : f32 to vector<8x128xf32>
    %61 = arith.mulf %60, %59 : vector<8x128xf32>
    %62 = math.tanh %61 : vector<8x128xf32>
    %cst_27 = arith.constant 5.000000e-01 : f32
    %63 = vector.broadcast %cst_27 : f32 to vector<8x128xf32>
    %64 = arith.mulf %63, %62 : vector<8x128xf32>
    %cst_28 = arith.constant 5.000000e-01 : f32
    %65 = vector.broadcast %cst_28 : f32 to vector<8x128xf32>
    %66 = arith.addf %64, %65 : vector<8x128xf32>
    %67 = vector.extract_strided_slice %50 {offsets = [0, 256], sizes = [8, 128], strides = [1, 1]} : vector<8x512xf32> to vector<8x128xf32>
    %68 = math.tanh %67 : vector<8x128xf32>
    %69 = vector.extract_strided_slice %50 {offsets = [0, 384], sizes = [8, 128], strides = [1, 1]} : vector<8x512xf32> to vector<8x128xf32>
    %cst_29 = arith.constant 5.000000e-01 : f32
    %70 = vector.broadcast %cst_29 : f32 to vector<8x128xf32>
    %71 = arith.mulf %70, %69 : vector<8x128xf32>
    %72 = math.tanh %71 : vector<8x128xf32>
    %cst_30 = arith.constant 5.000000e-01 : f32
    %73 = vector.broadcast %cst_30 : f32 to vector<8x128xf32>
    %74 = arith.mulf %73, %72 : vector<8x128xf32>
    %cst_31 = arith.constant 5.000000e-01 : f32
    %75 = vector.broadcast %cst_31 : f32 to vector<8x128xf32>
    %76 = arith.addf %74, %75 : vector<8x128xf32>
    %77 = arith.mulf %66, %39 : vector<8x128xf32>
    %78 = arith.mulf %58, %68 : vector<8x128xf32>
    %79 = arith.addf %77, %78 : vector<8x128xf32>
    %80 = math.tanh %79 : vector<8x128xf32>
    %81 = arith.mulf %76, %80 : vector<8x128xf32>
    %82 = arith.index_cast %c1_i32 : i32 to index
    %c0_32 = arith.constant 0 : index
    %c0_33 = arith.constant 0 : index
    %83 = vector.load %arg5[%82, %c0_32, %c0_33] : memref<12x8x128xf32, #tpu.memory_space<vmem>>, vector<1x8x128xf32>
    %84 = vector.shape_cast %83 : vector<1x8x128xf32> to vector<8x128xf32>
    %85 = vector.shape_cast %81 : vector<8x128xf32> to vector<1x8x128xf32>
    tpu.vector_store %arg5[%82, %c0_32, %c0_33], %85 {strides = array<i32>} : memref<12x8x128xf32, #tpu.memory_space<vmem>>, vector<1x8x128xf32>,
    %c2_i32 = arith.constant 2 : i32
    %86 = arith.index_cast %c2_i32 : i32 to index
    %c0_34 = arith.constant 0 : index
    %c0_35 = arith.constant 0 : index
    %87 = vector.load %arg1[%86, %c0_34, %c0_35] : memref<12x8x512xf32, #tpu.memory_space<vmem>>, vector<1x8x512xf32>
    %88 = vector.shape_cast %87 : vector<1x8x512xf32> to vector<8x512xf32>
    %cst_36 = arith.constant dense<0.000000e+00> : vector<8x512xf32>
    %89 = tpu.matmul %81, %3, %cst_36 {dimension_numbers = #tpu.dot_dimension_numbers<[1], [0], [0], [1], [0, 0, 1, 1], [], []>} : vector<8x128xf32>, vector<128x512xf32>, vector<8x512xf32> -> vector<8x512xf32>
    %90 = arith.addf %88, %89 : vector<8x512xf32>
    %91 = vector.extract_strided_slice %90 {offsets = [0, 0], sizes = [8, 128], strides = [1, 1]} : vector<8x512xf32> to vector<8x128xf32>
    %cst_37 = arith.constant 5.000000e-01 : f32
    %92 = vector.broadcast %cst_37 : f32 to vector<8x128xf32>
    %93 = arith.mulf %92, %91 : vector<8x128xf32>
    %94 = math.tanh %93 : vector<8x128xf32>
    %cst_38 = arith.constant 5.000000e-01 : f32
    %95 = vector.broadcast %cst_38 : f32 to vector<8x128xf32>
    %96 = arith.mulf %95, %94 : vector<8x128xf32>
    %cst_39 = arith.constant 5.000000e-01 : f32
    %97 = vector.broadcast %cst_39 : f32 to vector<8x128xf32>
    %98 = arith.addf %96, %97 : vector<8x128xf32>
    %99 = vector.extract_strided_slice %90 {offsets = [0, 128], sizes = [8, 128], strides = [1, 1]} : vector<8x512xf32> to vector<8x128xf32>
    %cst_40 = arith.constant 5.000000e-01 : f32
    %100 = vector.broadcast %cst_40 : f32 to vector<8x128xf32>
    %101 = arith.mulf %100, %99 : vector<8x128xf32>
    %102 = math.tanh %101 : vector<8x128xf32>
    %cst_41 = arith.constant 5.000000e-01 : f32
    %103 = vector.broadcast %cst_41 : f32 to vector<8x128xf32>
    %104 = arith.mulf %103, %102 : vector<8x128xf32>
    %cst_42 = arith.constant 5.000000e-01 : f32
    %105 = vector.broadcast %cst_42 : f32 to vector<8x128xf32>
    %106 = arith.addf %104, %105 : vector<8x128xf32>
    %107 = vector.extract_strided_slice %90 {offsets = [0, 256], sizes = [8, 128], strides = [1, 1]} : vector<8x512xf32> to vector<8x128xf32>
    %108 = math.tanh %107 : vector<8x128xf32>
    %109 = vector.extract_strided_slice %90 {offsets = [0, 384], sizes = [8, 128], strides = [1, 1]} : vector<8x512xf32> to vector<8x128xf32>
    %cst_43 = arith.constant 5.000000e-01 : f32
    %110 = vector.broadcast %cst_43 : f32 to vector<8x128xf32>
    %111 = arith.mulf %110, %109 : vector<8x128xf32>
    %112 = math.tanh %111 : vector<8x128xf32>
    %cst_44 = arith.constant 5.000000e-01 : f32
    %113 = vector.broadcast %cst_44 : f32 to vector<8x128xf32>
    %114 = arith.mulf %113, %112 : vector<8x128xf32>
    %cst_45 = arith.constant 5.000000e-01 : f32
    %115 = vector.broadcast %cst_45 : f32 to vector<8x128xf32>
    %116 = arith.addf %114, %115 : vector<8x128xf32>
    %117 = arith.mulf %106, %79 : vector<8x128xf32>
    %118 = arith.mulf %98, %108 : vector<8x128xf32>
    %119 = arith.addf %117, %118 : vector<8x128xf32>
    %120 = math.tanh %119 : vector<8x128xf32>
    %121 = arith.mulf %116, %120 : vector<8x128xf32>
    %122 = arith.index_cast %c2_i32 : i32 to index
    %c0_46 = arith.constant 0 : index
    %c0_47 = arith.constant 0 : index
    %123 = vector.load %arg5[%122, %c0_46, %c0_47] : memref<12x8x128xf32, #tpu.memory_space<vmem>>, vector<1x8x128xf32>
    %124 = vector.shape_cast %123 : vector<1x8x128xf32> to vector<8x128xf32>
    %125 = vector.shape_cast %121 : vector<8x128xf32> to vector<1x8x128xf32>
    tpu.vector_store %arg5[%122, %c0_46, %c0_47], %125 {strides = array<i32>} : memref<12x8x128xf32, #tpu.memory_space<vmem>>, vector<1x8x128xf32>,
    %c3_i32 = arith.constant 3 : i32
    %126 = arith.index_cast %c3_i32 : i32 to index
    %c0_48 = arith.constant 0 : index
    %c0_49 = arith.constant 0 : index
    %127 = vector.load %arg1[%126, %c0_48, %c0_49] : memref<12x8x512xf32, #tpu.memory_space<vmem>>, vector<1x8x512xf32>
    %128 = vector.shape_cast %127 : vector<1x8x512xf32> to vector<8x512xf32>
    %cst_50 = arith.constant dense<0.000000e+00> : vector<8x512xf32>
    %129 = tpu.matmul %121, %3, %cst_50 {dimension_numbers = #tpu.dot_dimension_numbers<[1], [0], [0], [1], [0, 0, 1, 1], [], []>} : vector<8x128xf32>, vector<128x512xf32>, vector<8x512xf32> -> vector<8x512xf32>
    %130 = arith.addf %128, %129 : vector<8x512xf32>
    %131 = vector.extract_strided_slice %130 {offsets = [0, 0], sizes = [8, 128], strides = [1, 1]} : vector<8x512xf32> to vector<8x128xf32>
    %cst_51 = arith.constant 5.000000e-01 : f32
    %132 = vector.broadcast %cst_51 : f32 to vector<8x128xf32>
    %133 = arith.mulf %132, %131 : vector<8x128xf32>
    %134 = math.tanh %133 : vector<8x128xf32>
    %cst_52 = arith.constant 5.000000e-01 : f32
    %135 = vector.broadcast %cst_52 : f32 to vector<8x128xf32>
    %136 = arith.mulf %135, %134 : vector<8x128xf32>
    %cst_53 = arith.constant 5.000000e-01 : f32
    %137 = vector.broadcast %cst_53 : f32 to vector<8x128xf32>
    %138 = arith.addf %136, %137 : vector<8x128xf32>
    %139 = vector.extract_strided_slice %130 {offsets = [0, 128], sizes = [8, 128], strides = [1, 1]} : vector<8x512xf32> to vector<8x128xf32>
    %cst_54 = arith.constant 5.000000e-01 : f32
    %140 = vector.broadcast %cst_54 : f32 to vector<8x128xf32>
    %141 = arith.mulf %140, %139 : vector<8x128xf32>
    %142 = math.tanh %141 : vector<8x128xf32>
    %cst_55 = arith.constant 5.000000e-01 : f32
    %143 = vector.broadcast %cst_55 : f32 to vector<8x128xf32>
    %144 = arith.mulf %143, %142 : vector<8x128xf32>
    %cst_56 = arith.constant 5.000000e-01 : f32
    %145 = vector.broadcast %cst_56 : f32 to vector<8x128xf32>
    %146 = arith.addf %144, %145 : vector<8x128xf32>
    %147 = vector.extract_strided_slice %130 {offsets = [0, 256], sizes = [8, 128], strides = [1, 1]} : vector<8x512xf32> to vector<8x128xf32>
    %148 = math.tanh %147 : vector<8x128xf32>
    %149 = vector.extract_strided_slice %130 {offsets = [0, 384], sizes = [8, 128], strides = [1, 1]} : vector<8x512xf32> to vector<8x128xf32>
    %cst_57 = arith.constant 5.000000e-01 : f32
    %150 = vector.broadcast %cst_57 : f32 to vector<8x128xf32>
    %151 = arith.mulf %150, %149 : vector<8x128xf32>
    %152 = math.tanh %151 : vector<8x128xf32>
    %cst_58 = arith.constant 5.000000e-01 : f32
    %153 = vector.broadcast %cst_58 : f32 to vector<8x128xf32>
    %154 = arith.mulf %153, %152 : vector<8x128xf32>
    %cst_59 = arith.constant 5.000000e-01 : f32
    %155 = vector.broadcast %cst_59 : f32 to vector<8x128xf32>
    %156 = arith.addf %154, %155 : vector<8x128xf32>
    %157 = arith.mulf %146, %119 : vector<8x128xf32>
    %158 = arith.mulf %138, %148 : vector<8x128xf32>
    %159 = arith.addf %157, %158 : vector<8x128xf32>
    %160 = math.tanh %159 : vector<8x128xf32>
    %161 = arith.mulf %156, %160 : vector<8x128xf32>
    %162 = arith.index_cast %c3_i32 : i32 to index
    %c0_60 = arith.constant 0 : index
    %c0_61 = arith.constant 0 : index
    %163 = vector.load %arg5[%162, %c0_60, %c0_61] : memref<12x8x128xf32, #tpu.memory_space<vmem>>, vector<1x8x128xf32>
    %164 = vector.shape_cast %163 : vector<1x8x128xf32> to vector<8x128xf32>
    %165 = vector.shape_cast %161 : vector<8x128xf32> to vector<1x8x128xf32>
    tpu.vector_store %arg5[%162, %c0_60, %c0_61], %165 {strides = array<i32>} : memref<12x8x128xf32, #tpu.memory_space<vmem>>, vector<1x8x128xf32>,
    %c4_i32 = arith.constant 4 : i32
    %166 = arith.index_cast %c4_i32 : i32 to index
    %c0_62 = arith.constant 0 : index
    %c0_63 = arith.constant 0 : index
    %167 = vector.load %arg1[%166, %c0_62, %c0_63] : memref<12x8x512xf32, #tpu.memory_space<vmem>>, vector<1x8x512xf32>
    %168 = vector.shape_cast %167 : vector<1x8x512xf32> to vector<8x512xf32>
    %cst_64 = arith.constant dense<0.000000e+00> : vector<8x512xf32>
    %169 = tpu.matmul %161, %3, %cst_64 {dimension_numbers = #tpu.dot_dimension_numbers<[1], [0], [0], [1], [0, 0, 1, 1], [], []>} : vector<8x128xf32>, vector<128x512xf32>, vector<8x512xf32> -> vector<8x512xf32>
    %170 = arith.addf %168, %169 : vector<8x512xf32>
    %171 = vector.extract_strided_slice %170 {offsets = [0, 0], sizes = [8, 128], strides = [1, 1]} : vector<8x512xf32> to vector<8x128xf32>
    %cst_65 = arith.constant 5.000000e-01 : f32
    %172 = vector.broadcast %cst_65 : f32 to vector<8x128xf32>
    %173 = arith.mulf %172, %171 : vector<8x128xf32>
    %174 = math.tanh %173 : vector<8x128xf32>
    %cst_66 = arith.constant 5.000000e-01 : f32
    %175 = vector.broadcast %cst_66 : f32 to vector<8x128xf32>
    %176 = arith.mulf %175, %174 : vector<8x128xf32>
    %cst_67 = arith.constant 5.000000e-01 : f32
    %177 = vector.broadcast %cst_67 : f32 to vector<8x128xf32>
    %178 = arith.addf %176, %177 : vector<8x128xf32>
    %179 = vector.extract_strided_slice %170 {offsets = [0, 128], sizes = [8, 128], strides = [1, 1]} : vector<8x512xf32> to vector<8x128xf32>
    %cst_68 = arith.constant 5.000000e-01 : f32
    %180 = vector.broadcast %cst_68 : f32 to vector<8x128xf32>
    %181 = arith.mulf %180, %179 : vector<8x128xf32>
    %182 = math.tanh %181 : vector<8x128xf32>
    %cst_69 = arith.constant 5.000000e-01 : f32
    %183 = vector.broadcast %cst_69 : f32 to vector<8x128xf32>
    %184 = arith.mulf %183, %182 : vector<8x128xf32>
    %cst_70 = arith.constant 5.000000e-01 : f32
    %185 = vector.broadcast %cst_70 : f32 to vector<8x128xf32>
    %186 = arith.addf %184, %185 : vector<8x128xf32>
    %187 = vector.extract_strided_slice %170 {offsets = [0, 256], sizes = [8, 128], strides = [1, 1]} : vector<8x512xf32> to vector<8x128xf32>
    %188 = math.tanh %187 : vector<8x128xf32>
    %189 = vector.extract_strided_slice %170 {offsets = [0, 384], sizes = [8, 128], strides = [1, 1]} : vector<8x512xf32> to vector<8x128xf32>
    %cst_71 = arith.constant 5.000000e-01 : f32
    %190 = vector.broadcast %cst_71 : f32 to vector<8x128xf32>
    %191 = arith.mulf %190, %189 : vector<8x128xf32>
    %192 = math.tanh %191 : vector<8x128xf32>
    %cst_72 = arith.constant 5.000000e-01 : f32
    %193 = vector.broadcast %cst_72 : f32 to vector<8x128xf32>
    %194 = arith.mulf %193, %192 : vector<8x128xf32>
    %cst_73 = arith.constant 5.000000e-01 : f32
    %195 = vector.broadcast %cst_73 : f32 to vector<8x128xf32>
    %196 = arith.addf %194, %195 : vector<8x128xf32>
    %197 = arith.mulf %186, %159 : vector<8x128xf32>
    %198 = arith.mulf %178, %188 : vector<8x128xf32>
    %199 = arith.addf %197, %198 : vector<8x128xf32>
    %200 = math.tanh %199 : vector<8x128xf32>
    %201 = arith.mulf %196, %200 : vector<8x128xf32>
    %202 = arith.index_cast %c4_i32 : i32 to index
    %c0_74 = arith.constant 0 : index
    %c0_75 = arith.constant 0 : index
    %203 = vector.load %arg5[%202, %c0_74, %c0_75] : memref<12x8x128xf32, #tpu.memory_space<vmem>>, vector<1x8x128xf32>
    %204 = vector.shape_cast %203 : vector<1x8x128xf32> to vector<8x128xf32>
    %205 = vector.shape_cast %201 : vector<8x128xf32> to vector<1x8x128xf32>
    tpu.vector_store %arg5[%202, %c0_74, %c0_75], %205 {strides = array<i32>} : memref<12x8x128xf32, #tpu.memory_space<vmem>>, vector<1x8x128xf32>,
    %c5_i32 = arith.constant 5 : i32
    %206 = arith.index_cast %c5_i32 : i32 to index
    %c0_76 = arith.constant 0 : index
    %c0_77 = arith.constant 0 : index
    %207 = vector.load %arg1[%206, %c0_76, %c0_77] : memref<12x8x512xf32, #tpu.memory_space<vmem>>, vector<1x8x512xf32>
    %208 = vector.shape_cast %207 : vector<1x8x512xf32> to vector<8x512xf32>
    %cst_78 = arith.constant dense<0.000000e+00> : vector<8x512xf32>
    %209 = tpu.matmul %201, %3, %cst_78 {dimension_numbers = #tpu.dot_dimension_numbers<[1], [0], [0], [1], [0, 0, 1, 1], [], []>} : vector<8x128xf32>, vector<128x512xf32>, vector<8x512xf32> -> vector<8x512xf32>
    %210 = arith.addf %208, %209 : vector<8x512xf32>
    %211 = vector.extract_strided_slice %210 {offsets = [0, 0], sizes = [8, 128], strides = [1, 1]} : vector<8x512xf32> to vector<8x128xf32>
    %cst_79 = arith.constant 5.000000e-01 : f32
    %212 = vector.broadcast %cst_79 : f32 to vector<8x128xf32>
    %213 = arith.mulf %212, %211 : vector<8x128xf32>
    %214 = math.tanh %213 : vector<8x128xf32>
    %cst_80 = arith.constant 5.000000e-01 : f32
    %215 = vector.broadcast %cst_80 : f32 to vector<8x128xf32>
    %216 = arith.mulf %215, %214 : vector<8x128xf32>
    %cst_81 = arith.constant 5.000000e-01 : f32
    %217 = vector.broadcast %cst_81 : f32 to vector<8x128xf32>
    %218 = arith.addf %216, %217 : vector<8x128xf32>
    %219 = vector.extract_strided_slice %210 {offsets = [0, 128], sizes = [8, 128], strides = [1, 1]} : vector<8x512xf32> to vector<8x128xf32>
    %cst_82 = arith.constant 5.000000e-01 : f32
    %220 = vector.broadcast %cst_82 : f32 to vector<8x128xf32>
    %221 = arith.mulf %220, %219 : vector<8x128xf32>
    %222 = math.tanh %221 : vector<8x128xf32>
    %cst_83 = arith.constant 5.000000e-01 : f32
    %223 = vector.broadcast %cst_83 : f32 to vector<8x128xf32>
    %224 = arith.mulf %223, %222 : vector<8x128xf32>
    %cst_84 = arith.constant 5.000000e-01 : f32
    %225 = vector.broadcast %cst_84 : f32 to vector<8x128xf32>
    %226 = arith.addf %224, %225 : vector<8x128xf32>
    %227 = vector.extract_strided_slice %210 {offsets = [0, 256], sizes = [8, 128], strides = [1, 1]} : vector<8x512xf32> to vector<8x128xf32>
    %228 = math.tanh %227 : vector<8x128xf32>
    %229 = vector.extract_strided_slice %210 {offsets = [0, 384], sizes = [8, 128], strides = [1, 1]} : vector<8x512xf32> to vector<8x128xf32>
    %cst_85 = arith.constant 5.000000e-01 : f32
    %230 = vector.broadcast %cst_85 : f32 to vector<8x128xf32>
    %231 = arith.mulf %230, %229 : vector<8x128xf32>
    %232 = math.tanh %231 : vector<8x128xf32>
    %cst_86 = arith.constant 5.000000e-01 : f32
    %233 = vector.broadcast %cst_86 : f32 to vector<8x128xf32>
    %234 = arith.mulf %233, %232 : vector<8x128xf32>
    %cst_87 = arith.constant 5.000000e-01 : f32
    %235 = vector.broadcast %cst_87 : f32 to vector<8x128xf32>
    %236 = arith.addf %234, %235 : vector<8x128xf32>
    %237 = arith.mulf %226, %199 : vector<8x128xf32>
    %238 = arith.mulf %218, %228 : vector<8x128xf32>
    %239 = arith.addf %237, %238 : vector<8x128xf32>
    %240 = math.tanh %239 : vector<8x128xf32>
    %241 = arith.mulf %236, %240 : vector<8x128xf32>
    %242 = arith.index_cast %c5_i32 : i32 to index
    %c0_88 = arith.constant 0 : index
    %c0_89 = arith.constant 0 : index
    %243 = vector.load %arg5[%242, %c0_88, %c0_89] : memref<12x8x128xf32, #tpu.memory_space<vmem>>, vector<1x8x128xf32>
    %244 = vector.shape_cast %243 : vector<1x8x128xf32> to vector<8x128xf32>
    %245 = vector.shape_cast %241 : vector<8x128xf32> to vector<1x8x128xf32>
    tpu.vector_store %arg5[%242, %c0_88, %c0_89], %245 {strides = array<i32>} : memref<12x8x128xf32, #tpu.memory_space<vmem>>, vector<1x8x128xf32>,
    %c6_i32 = arith.constant 6 : i32
    %246 = arith.index_cast %c6_i32 : i32 to index
    %c0_90 = arith.constant 0 : index
    %c0_91 = arith.constant 0 : index
    %247 = vector.load %arg1[%246, %c0_90, %c0_91] : memref<12x8x512xf32, #tpu.memory_space<vmem>>, vector<1x8x512xf32>
    %248 = vector.shape_cast %247 : vector<1x8x512xf32> to vector<8x512xf32>
    %cst_92 = arith.constant dense<0.000000e+00> : vector<8x512xf32>
    %249 = tpu.matmul %241, %3, %cst_92 {dimension_numbers = #tpu.dot_dimension_numbers<[1], [0], [0], [1], [0, 0, 1, 1], [], []>} : vector<8x128xf32>, vector<128x512xf32>, vector<8x512xf32> -> vector<8x512xf32>
    %250 = arith.addf %248, %249 : vector<8x512xf32>
    %251 = vector.extract_strided_slice %250 {offsets = [0, 0], sizes = [8, 128], strides = [1, 1]} : vector<8x512xf32> to vector<8x128xf32>
    %cst_93 = arith.constant 5.000000e-01 : f32
    %252 = vector.broadcast %cst_93 : f32 to vector<8x128xf32>
    %253 = arith.mulf %252, %251 : vector<8x128xf32>
    %254 = math.tanh %253 : vector<8x128xf32>
    %cst_94 = arith.constant 5.000000e-01 : f32
    %255 = vector.broadcast %cst_94 : f32 to vector<8x128xf32>
    %256 = arith.mulf %255, %254 : vector<8x128xf32>
    %cst_95 = arith.constant 5.000000e-01 : f32
    %257 = vector.broadcast %cst_95 : f32 to vector<8x128xf32>
    %258 = arith.addf %256, %257 : vector<8x128xf32>
    %259 = vector.extract_strided_slice %250 {offsets = [0, 128], sizes = [8, 128], strides = [1, 1]} : vector<8x512xf32> to vector<8x128xf32>
    %cst_96 = arith.constant 5.000000e-01 : f32
    %260 = vector.broadcast %cst_96 : f32 to vector<8x128xf32>
    %261 = arith.mulf %260, %259 : vector<8x128xf32>
    %262 = math.tanh %261 : vector<8x128xf32>
    %cst_97 = arith.constant 5.000000e-01 : f32
    %263 = vector.broadcast %cst_97 : f32 to vector<8x128xf32>
    %264 = arith.mulf %263, %262 : vector<8x128xf32>
    %cst_98 = arith.constant 5.000000e-01 : f32
    %265 = vector.broadcast %cst_98 : f32 to vector<8x128xf32>
    %266 = arith.addf %264, %265 : vector<8x128xf32>
    %267 = vector.extract_strided_slice %250 {offsets = [0, 256], sizes = [8, 128], strides = [1, 1]} : vector<8x512xf32> to vector<8x128xf32>
    %268 = math.tanh %267 : vector<8x128xf32>
    %269 = vector.extract_strided_slice %250 {offsets = [0, 384], sizes = [8, 128], strides = [1, 1]} : vector<8x512xf32> to vector<8x128xf32>
    %cst_99 = arith.constant 5.000000e-01 : f32
    %270 = vector.broadcast %cst_99 : f32 to vector<8x128xf32>
    %271 = arith.mulf %270, %269 : vector<8x128xf32>
    %272 = math.tanh %271 : vector<8x128xf32>
    %cst_100 = arith.constant 5.000000e-01 : f32
    %273 = vector.broadcast %cst_100 : f32 to vector<8x128xf32>
    %274 = arith.mulf %273, %272 : vector<8x128xf32>
    %cst_101 = arith.constant 5.000000e-01 : f32
    %275 = vector.broadcast %cst_101 : f32 to vector<8x128xf32>
    %276 = arith.addf %274, %275 : vector<8x128xf32>
    %277 = arith.mulf %266, %239 : vector<8x128xf32>
    %278 = arith.mulf %258, %268 : vector<8x128xf32>
    %279 = arith.addf %277, %278 : vector<8x128xf32>
    %280 = math.tanh %279 : vector<8x128xf32>
    %281 = arith.mulf %276, %280 : vector<8x128xf32>
    %282 = arith.index_cast %c6_i32 : i32 to index
    %c0_102 = arith.constant 0 : index
    %c0_103 = arith.constant 0 : index
    %283 = vector.load %arg5[%282, %c0_102, %c0_103] : memref<12x8x128xf32, #tpu.memory_space<vmem>>, vector<1x8x128xf32>
    %284 = vector.shape_cast %283 : vector<1x8x128xf32> to vector<8x128xf32>
    %285 = vector.shape_cast %281 : vector<8x128xf32> to vector<1x8x128xf32>
    tpu.vector_store %arg5[%282, %c0_102, %c0_103], %285 {strides = array<i32>} : memref<12x8x128xf32, #tpu.memory_space<vmem>>, vector<1x8x128xf32>,
    %c7_i32 = arith.constant 7 : i32
    %286 = arith.index_cast %c7_i32 : i32 to index
    %c0_104 = arith.constant 0 : index
    %c0_105 = arith.constant 0 : index
    %287 = vector.load %arg1[%286, %c0_104, %c0_105] : memref<12x8x512xf32, #tpu.memory_space<vmem>>, vector<1x8x512xf32>
    %288 = vector.shape_cast %287 : vector<1x8x512xf32> to vector<8x512xf32>
    %cst_106 = arith.constant dense<0.000000e+00> : vector<8x512xf32>
    %289 = tpu.matmul %281, %3, %cst_106 {dimension_numbers = #tpu.dot_dimension_numbers<[1], [0], [0], [1], [0, 0, 1, 1], [], []>} : vector<8x128xf32>, vector<128x512xf32>, vector<8x512xf32> -> vector<8x512xf32>
    %290 = arith.addf %288, %289 : vector<8x512xf32>
    %291 = vector.extract_strided_slice %290 {offsets = [0, 0], sizes = [8, 128], strides = [1, 1]} : vector<8x512xf32> to vector<8x128xf32>
    %cst_107 = arith.constant 5.000000e-01 : f32
    %292 = vector.broadcast %cst_107 : f32 to vector<8x128xf32>
    %293 = arith.mulf %292, %291 : vector<8x128xf32>
    %294 = math.tanh %293 : vector<8x128xf32>
    %cst_108 = arith.constant 5.000000e-01 : f32
    %295 = vector.broadcast %cst_108 : f32 to vector<8x128xf32>
    %296 = arith.mulf %295, %294 : vector<8x128xf32>
    %cst_109 = arith.constant 5.000000e-01 : f32
    %297 = vector.broadcast %cst_109 : f32 to vector<8x128xf32>
    %298 = arith.addf %296, %297 : vector<8x128xf32>
    %299 = vector.extract_strided_slice %290 {offsets = [0, 128], sizes = [8, 128], strides = [1, 1]} : vector<8x512xf32> to vector<8x128xf32>
    %cst_110 = arith.constant 5.000000e-01 : f32
    %300 = vector.broadcast %cst_110 : f32 to vector<8x128xf32>
    %301 = arith.mulf %300, %299 : vector<8x128xf32>
    %302 = math.tanh %301 : vector<8x128xf32>
    %cst_111 = arith.constant 5.000000e-01 : f32
    %303 = vector.broadcast %cst_111 : f32 to vector<8x128xf32>
    %304 = arith.mulf %303, %302 : vector<8x128xf32>
    %cst_112 = arith.constant 5.000000e-01 : f32
    %305 = vector.broadcast %cst_112 : f32 to vector<8x128xf32>
    %306 = arith.addf %304, %305 : vector<8x128xf32>
    %307 = vector.extract_strided_slice %290 {offsets = [0, 256], sizes = [8, 128], strides = [1, 1]} : vector<8x512xf32> to vector<8x128xf32>
    %308 = math.tanh %307 : vector<8x128xf32>
    %309 = vector.extract_strided_slice %290 {offsets = [0, 384], sizes = [8, 128], strides = [1, 1]} : vector<8x512xf32> to vector<8x128xf32>
    %cst_113 = arith.constant 5.000000e-01 : f32
    %310 = vector.broadcast %cst_113 : f32 to vector<8x128xf32>
    %311 = arith.mulf %310, %309 : vector<8x128xf32>
    %312 = math.tanh %311 : vector<8x128xf32>
    %cst_114 = arith.constant 5.000000e-01 : f32
    %313 = vector.broadcast %cst_114 : f32 to vector<8x128xf32>
    %314 = arith.mulf %313, %312 : vector<8x128xf32>
    %cst_115 = arith.constant 5.000000e-01 : f32
    %315 = vector.broadcast %cst_115 : f32 to vector<8x128xf32>
    %316 = arith.addf %314, %315 : vector<8x128xf32>
    %317 = arith.mulf %306, %279 : vector<8x128xf32>
    %318 = arith.mulf %298, %308 : vector<8x128xf32>
    %319 = arith.addf %317, %318 : vector<8x128xf32>
    %320 = math.tanh %319 : vector<8x128xf32>
    %321 = arith.mulf %316, %320 : vector<8x128xf32>
    %322 = arith.index_cast %c7_i32 : i32 to index
    %c0_116 = arith.constant 0 : index
    %c0_117 = arith.constant 0 : index
    %323 = vector.load %arg5[%322, %c0_116, %c0_117] : memref<12x8x128xf32, #tpu.memory_space<vmem>>, vector<1x8x128xf32>
    %324 = vector.shape_cast %323 : vector<1x8x128xf32> to vector<8x128xf32>
    %325 = vector.shape_cast %321 : vector<8x128xf32> to vector<1x8x128xf32>
    tpu.vector_store %arg5[%322, %c0_116, %c0_117], %325 {strides = array<i32>} : memref<12x8x128xf32, #tpu.memory_space<vmem>>, vector<1x8x128xf32>,
    %c8_i32 = arith.constant 8 : i32
    %326 = arith.index_cast %c8_i32 : i32 to index
    %c0_118 = arith.constant 0 : index
    %c0_119 = arith.constant 0 : index
    %327 = vector.load %arg1[%326, %c0_118, %c0_119] : memref<12x8x512xf32, #tpu.memory_space<vmem>>, vector<1x8x512xf32>
    %328 = vector.shape_cast %327 : vector<1x8x512xf32> to vector<8x512xf32>
    %cst_120 = arith.constant dense<0.000000e+00> : vector<8x512xf32>
    %329 = tpu.matmul %321, %3, %cst_120 {dimension_numbers = #tpu.dot_dimension_numbers<[1], [0], [0], [1], [0, 0, 1, 1], [], []>} : vector<8x128xf32>, vector<128x512xf32>, vector<8x512xf32> -> vector<8x512xf32>
    %330 = arith.addf %328, %329 : vector<8x512xf32>
    %331 = vector.extract_strided_slice %330 {offsets = [0, 0], sizes = [8, 128], strides = [1, 1]} : vector<8x512xf32> to vector<8x128xf32>
    %cst_121 = arith.constant 5.000000e-01 : f32
    %332 = vector.broadcast %cst_121 : f32 to vector<8x128xf32>
    %333 = arith.mulf %332, %331 : vector<8x128xf32>
    %334 = math.tanh %333 : vector<8x128xf32>
    %cst_122 = arith.constant 5.000000e-01 : f32
    %335 = vector.broadcast %cst_122 : f32 to vector<8x128xf32>
    %336 = arith.mulf %335, %334 : vector<8x128xf32>
    %cst_123 = arith.constant 5.000000e-01 : f32
    %337 = vector.broadcast %cst_123 : f32 to vector<8x128xf32>
    %338 = arith.addf %336, %337 : vector<8x128xf32>
    %339 = vector.extract_strided_slice %330 {offsets = [0, 128], sizes = [8, 128], strides = [1, 1]} : vector<8x512xf32> to vector<8x128xf32>
    %cst_124 = arith.constant 5.000000e-01 : f32
    %340 = vector.broadcast %cst_124 : f32 to vector<8x128xf32>
    %341 = arith.mulf %340, %339 : vector<8x128xf32>
    %342 = math.tanh %341 : vector<8x128xf32>
    %cst_125 = arith.constant 5.000000e-01 : f32
    %343 = vector.broadcast %cst_125 : f32 to vector<8x128xf32>
    %344 = arith.mulf %343, %342 : vector<8x128xf32>
    %cst_126 = arith.constant 5.000000e-01 : f32
    %345 = vector.broadcast %cst_126 : f32 to vector<8x128xf32>
    %346 = arith.addf %344, %345 : vector<8x128xf32>
    %347 = vector.extract_strided_slice %330 {offsets = [0, 256], sizes = [8, 128], strides = [1, 1]} : vector<8x512xf32> to vector<8x128xf32>
    %348 = math.tanh %347 : vector<8x128xf32>
    %349 = vector.extract_strided_slice %330 {offsets = [0, 384], sizes = [8, 128], strides = [1, 1]} : vector<8x512xf32> to vector<8x128xf32>
    %cst_127 = arith.constant 5.000000e-01 : f32
    %350 = vector.broadcast %cst_127 : f32 to vector<8x128xf32>
    %351 = arith.mulf %350, %349 : vector<8x128xf32>
    %352 = math.tanh %351 : vector<8x128xf32>
    %cst_128 = arith.constant 5.000000e-01 : f32
    %353 = vector.broadcast %cst_128 : f32 to vector<8x128xf32>
    %354 = arith.mulf %353, %352 : vector<8x128xf32>
    %cst_129 = arith.constant 5.000000e-01 : f32
    %355 = vector.broadcast %cst_129 : f32 to vector<8x128xf32>
    %356 = arith.addf %354, %355 : vector<8x128xf32>
    %357 = arith.mulf %346, %319 : vector<8x128xf32>
    %358 = arith.mulf %338, %348 : vector<8x128xf32>
    %359 = arith.addf %357, %358 : vector<8x128xf32>
    %360 = math.tanh %359 : vector<8x128xf32>
    %361 = arith.mulf %356, %360 : vector<8x128xf32>
    %362 = arith.index_cast %c8_i32 : i32 to index
    %c0_130 = arith.constant 0 : index
    %c0_131 = arith.constant 0 : index
    %363 = vector.load %arg5[%362, %c0_130, %c0_131] : memref<12x8x128xf32, #tpu.memory_space<vmem>>, vector<1x8x128xf32>
    %364 = vector.shape_cast %363 : vector<1x8x128xf32> to vector<8x128xf32>
    %365 = vector.shape_cast %361 : vector<8x128xf32> to vector<1x8x128xf32>
    tpu.vector_store %arg5[%362, %c0_130, %c0_131], %365 {strides = array<i32>} : memref<12x8x128xf32, #tpu.memory_space<vmem>>, vector<1x8x128xf32>,
    %c9_i32 = arith.constant 9 : i32
    %366 = arith.index_cast %c9_i32 : i32 to index
    %c0_132 = arith.constant 0 : index
    %c0_133 = arith.constant 0 : index
    %367 = vector.load %arg1[%366, %c0_132, %c0_133] : memref<12x8x512xf32, #tpu.memory_space<vmem>>, vector<1x8x512xf32>
    %368 = vector.shape_cast %367 : vector<1x8x512xf32> to vector<8x512xf32>
    %cst_134 = arith.constant dense<0.000000e+00> : vector<8x512xf32>
    %369 = tpu.matmul %361, %3, %cst_134 {dimension_numbers = #tpu.dot_dimension_numbers<[1], [0], [0], [1], [0, 0, 1, 1], [], []>} : vector<8x128xf32>, vector<128x512xf32>, vector<8x512xf32> -> vector<8x512xf32>
    %370 = arith.addf %368, %369 : vector<8x512xf32>
    %371 = vector.extract_strided_slice %370 {offsets = [0, 0], sizes = [8, 128], strides = [1, 1]} : vector<8x512xf32> to vector<8x128xf32>
    %cst_135 = arith.constant 5.000000e-01 : f32
    %372 = vector.broadcast %cst_135 : f32 to vector<8x128xf32>
    %373 = arith.mulf %372, %371 : vector<8x128xf32>
    %374 = math.tanh %373 : vector<8x128xf32>
    %cst_136 = arith.constant 5.000000e-01 : f32
    %375 = vector.broadcast %cst_136 : f32 to vector<8x128xf32>
    %376 = arith.mulf %375, %374 : vector<8x128xf32>
    %cst_137 = arith.constant 5.000000e-01 : f32
    %377 = vector.broadcast %cst_137 : f32 to vector<8x128xf32>
    %378 = arith.addf %376, %377 : vector<8x128xf32>
    %379 = vector.extract_strided_slice %370 {offsets = [0, 128], sizes = [8, 128], strides = [1, 1]} : vector<8x512xf32> to vector<8x128xf32>
    %cst_138 = arith.constant 5.000000e-01 : f32
    %380 = vector.broadcast %cst_138 : f32 to vector<8x128xf32>
    %381 = arith.mulf %380, %379 : vector<8x128xf32>
    %382 = math.tanh %381 : vector<8x128xf32>
    %cst_139 = arith.constant 5.000000e-01 : f32
    %383 = vector.broadcast %cst_139 : f32 to vector<8x128xf32>
    %384 = arith.mulf %383, %382 : vector<8x128xf32>
    %cst_140 = arith.constant 5.000000e-01 : f32
    %385 = vector.broadcast %cst_140 : f32 to vector<8x128xf32>
    %386 = arith.addf %384, %385 : vector<8x128xf32>
    %387 = vector.extract_strided_slice %370 {offsets = [0, 256], sizes = [8, 128], strides = [1, 1]} : vector<8x512xf32> to vector<8x128xf32>
    %388 = math.tanh %387 : vector<8x128xf32>
    %389 = vector.extract_strided_slice %370 {offsets = [0, 384], sizes = [8, 128], strides = [1, 1]} : vector<8x512xf32> to vector<8x128xf32>
    %cst_141 = arith.constant 5.000000e-01 : f32
    %390 = vector.broadcast %cst_141 : f32 to vector<8x128xf32>
    %391 = arith.mulf %390, %389 : vector<8x128xf32>
    %392 = math.tanh %391 : vector<8x128xf32>
    %cst_142 = arith.constant 5.000000e-01 : f32
    %393 = vector.broadcast %cst_142 : f32 to vector<8x128xf32>
    %394 = arith.mulf %393, %392 : vector<8x128xf32>
    %cst_143 = arith.constant 5.000000e-01 : f32
    %395 = vector.broadcast %cst_143 : f32 to vector<8x128xf32>
    %396 = arith.addf %394, %395 : vector<8x128xf32>
    %397 = arith.mulf %386, %359 : vector<8x128xf32>
    %398 = arith.mulf %378, %388 : vector<8x128xf32>
    %399 = arith.addf %397, %398 : vector<8x128xf32>
    %400 = math.tanh %399 : vector<8x128xf32>
    %401 = arith.mulf %396, %400 : vector<8x128xf32>
    %402 = arith.index_cast %c9_i32 : i32 to index
    %c0_144 = arith.constant 0 : index
    %c0_145 = arith.constant 0 : index
    %403 = vector.load %arg5[%402, %c0_144, %c0_145] : memref<12x8x128xf32, #tpu.memory_space<vmem>>, vector<1x8x128xf32>
    %404 = vector.shape_cast %403 : vector<1x8x128xf32> to vector<8x128xf32>
    %405 = vector.shape_cast %401 : vector<8x128xf32> to vector<1x8x128xf32>
    tpu.vector_store %arg5[%402, %c0_144, %c0_145], %405 {strides = array<i32>} : memref<12x8x128xf32, #tpu.memory_space<vmem>>, vector<1x8x128xf32>,
    %c10_i32 = arith.constant 10 : i32
    %406 = arith.index_cast %c10_i32 : i32 to index
    %c0_146 = arith.constant 0 : index
    %c0_147 = arith.constant 0 : index
    %407 = vector.load %arg1[%406, %c0_146, %c0_147] : memref<12x8x512xf32, #tpu.memory_space<vmem>>, vector<1x8x512xf32>
    %408 = vector.shape_cast %407 : vector<1x8x512xf32> to vector<8x512xf32>
    %cst_148 = arith.constant dense<0.000000e+00> : vector<8x512xf32>
    %409 = tpu.matmul %401, %3, %cst_148 {dimension_numbers = #tpu.dot_dimension_numbers<[1], [0], [0], [1], [0, 0, 1, 1], [], []>} : vector<8x128xf32>, vector<128x512xf32>, vector<8x512xf32> -> vector<8x512xf32>
    %410 = arith.addf %408, %409 : vector<8x512xf32>
    %411 = vector.extract_strided_slice %410 {offsets = [0, 0], sizes = [8, 128], strides = [1, 1]} : vector<8x512xf32> to vector<8x128xf32>
    %cst_149 = arith.constant 5.000000e-01 : f32
    %412 = vector.broadcast %cst_149 : f32 to vector<8x128xf32>
    %413 = arith.mulf %412, %411 : vector<8x128xf32>
    %414 = math.tanh %413 : vector<8x128xf32>
    %cst_150 = arith.constant 5.000000e-01 : f32
    %415 = vector.broadcast %cst_150 : f32 to vector<8x128xf32>
    %416 = arith.mulf %415, %414 : vector<8x128xf32>
    %cst_151 = arith.constant 5.000000e-01 : f32
    %417 = vector.broadcast %cst_151 : f32 to vector<8x128xf32>
    %418 = arith.addf %416, %417 : vector<8x128xf32>
    %419 = vector.extract_strided_slice %410 {offsets = [0, 128], sizes = [8, 128], strides = [1, 1]} : vector<8x512xf32> to vector<8x128xf32>
    %cst_152 = arith.constant 5.000000e-01 : f32
    %420 = vector.broadcast %cst_152 : f32 to vector<8x128xf32>
    %421 = arith.mulf %420, %419 : vector<8x128xf32>
    %422 = math.tanh %421 : vector<8x128xf32>
    %cst_153 = arith.constant 5.000000e-01 : f32
    %423 = vector.broadcast %cst_153 : f32 to vector<8x128xf32>
    %424 = arith.mulf %423, %422 : vector<8x128xf32>
    %cst_154 = arith.constant 5.000000e-01 : f32
    %425 = vector.broadcast %cst_154 : f32 to vector<8x128xf32>
    %426 = arith.addf %424, %425 : vector<8x128xf32>
    %427 = vector.extract_strided_slice %410 {offsets = [0, 256], sizes = [8, 128], strides = [1, 1]} : vector<8x512xf32> to vector<8x128xf32>
    %428 = math.tanh %427 : vector<8x128xf32>
    %429 = vector.extract_strided_slice %410 {offsets = [0, 384], sizes = [8, 128], strides = [1, 1]} : vector<8x512xf32> to vector<8x128xf32>
    %cst_155 = arith.constant 5.000000e-01 : f32
    %430 = vector.broadcast %cst_155 : f32 to vector<8x128xf32>
    %431 = arith.mulf %430, %429 : vector<8x128xf32>
    %432 = math.tanh %431 : vector<8x128xf32>
    %cst_156 = arith.constant 5.000000e-01 : f32
    %433 = vector.broadcast %cst_156 : f32 to vector<8x128xf32>
    %434 = arith.mulf %433, %432 : vector<8x128xf32>
    %cst_157 = arith.constant 5.000000e-01 : f32
    %435 = vector.broadcast %cst_157 : f32 to vector<8x128xf32>
    %436 = arith.addf %434, %435 : vector<8x128xf32>
    %437 = arith.mulf %426, %399 : vector<8x128xf32>
    %438 = arith.mulf %418, %428 : vector<8x128xf32>
    %439 = arith.addf %437, %438 : vector<8x128xf32>
    %440 = math.tanh %439 : vector<8x128xf32>
    %441 = arith.mulf %436, %440 : vector<8x128xf32>
    %442 = arith.index_cast %c10_i32 : i32 to index
    %c0_158 = arith.constant 0 : index
    %c0_159 = arith.constant 0 : index
    %443 = vector.load %arg5[%442, %c0_158, %c0_159] : memref<12x8x128xf32, #tpu.memory_space<vmem>>, vector<1x8x128xf32>
    %444 = vector.shape_cast %443 : vector<1x8x128xf32> to vector<8x128xf32>
    %445 = vector.shape_cast %441 : vector<8x128xf32> to vector<1x8x128xf32>
    tpu.vector_store %arg5[%442, %c0_158, %c0_159], %445 {strides = array<i32>} : memref<12x8x128xf32, #tpu.memory_space<vmem>>, vector<1x8x128xf32>,
    %c11_i32 = arith.constant 11 : i32
    %446 = arith.index_cast %c11_i32 : i32 to index
    %c0_160 = arith.constant 0 : index
    %c0_161 = arith.constant 0 : index
    %447 = vector.load %arg1[%446, %c0_160, %c0_161] : memref<12x8x512xf32, #tpu.memory_space<vmem>>, vector<1x8x512xf32>
    %448 = vector.shape_cast %447 : vector<1x8x512xf32> to vector<8x512xf32>
    %cst_162 = arith.constant dense<0.000000e+00> : vector<8x512xf32>
    %449 = tpu.matmul %441, %3, %cst_162 {dimension_numbers = #tpu.dot_dimension_numbers<[1], [0], [0], [1], [0, 0, 1, 1], [], []>} : vector<8x128xf32>, vector<128x512xf32>, vector<8x512xf32> -> vector<8x512xf32>
    %450 = arith.addf %448, %449 : vector<8x512xf32>
    %451 = vector.extract_strided_slice %450 {offsets = [0, 0], sizes = [8, 128], strides = [1, 1]} : vector<8x512xf32> to vector<8x128xf32>
    %cst_163 = arith.constant 5.000000e-01 : f32
    %452 = vector.broadcast %cst_163 : f32 to vector<8x128xf32>
    %453 = arith.mulf %452, %451 : vector<8x128xf32>
    %454 = math.tanh %453 : vector<8x128xf32>
    %cst_164 = arith.constant 5.000000e-01 : f32
    %455 = vector.broadcast %cst_164 : f32 to vector<8x128xf32>
    %456 = arith.mulf %455, %454 : vector<8x128xf32>
    %cst_165 = arith.constant 5.000000e-01 : f32
    %457 = vector.broadcast %cst_165 : f32 to vector<8x128xf32>
    %458 = arith.addf %456, %457 : vector<8x128xf32>
    %459 = vector.extract_strided_slice %450 {offsets = [0, 128], sizes = [8, 128], strides = [1, 1]} : vector<8x512xf32> to vector<8x128xf32>
    %cst_166 = arith.constant 5.000000e-01 : f32
    %460 = vector.broadcast %cst_166 : f32 to vector<8x128xf32>
    %461 = arith.mulf %460, %459 : vector<8x128xf32>
    %462 = math.tanh %461 : vector<8x128xf32>
    %cst_167 = arith.constant 5.000000e-01 : f32
    %463 = vector.broadcast %cst_167 : f32 to vector<8x128xf32>
    %464 = arith.mulf %463, %462 : vector<8x128xf32>
    %cst_168 = arith.constant 5.000000e-01 : f32
    %465 = vector.broadcast %cst_168 : f32 to vector<8x128xf32>
    %466 = arith.addf %464, %465 : vector<8x128xf32>
    %467 = vector.extract_strided_slice %450 {offsets = [0, 256], sizes = [8, 128], strides = [1, 1]} : vector<8x512xf32> to vector<8x128xf32>
    %468 = math.tanh %467 : vector<8x128xf32>
    %469 = vector.extract_strided_slice %450 {offsets = [0, 384], sizes = [8, 128], strides = [1, 1]} : vector<8x512xf32> to vector<8x128xf32>
    %cst_169 = arith.constant 5.000000e-01 : f32
    %470 = vector.broadcast %cst_169 : f32 to vector<8x128xf32>
    %471 = arith.mulf %470, %469 : vector<8x128xf32>
    %472 = math.tanh %471 : vector<8x128xf32>
    %cst_170 = arith.constant 5.000000e-01 : f32
    %473 = vector.broadcast %cst_170 : f32 to vector<8x128xf32>
    %474 = arith.mulf %473, %472 : vector<8x128xf32>
    %cst_171 = arith.constant 5.000000e-01 : f32
    %475 = vector.broadcast %cst_171 : f32 to vector<8x128xf32>
    %476 = arith.addf %474, %475 : vector<8x128xf32>
    %477 = arith.mulf %466, %439 : vector<8x128xf32>
    %478 = arith.mulf %458, %468 : vector<8x128xf32>
    %479 = arith.addf %477, %478 : vector<8x128xf32>
    %480 = math.tanh %479 : vector<8x128xf32>
    %481 = arith.mulf %476, %480 : vector<8x128xf32>
    %482 = arith.index_cast %c11_i32 : i32 to index
    %c0_172 = arith.constant 0 : index
    %c0_173 = arith.constant 0 : index
    %483 = vector.load %arg5[%482, %c0_172, %c0_173] : memref<12x8x128xf32, #tpu.memory_space<vmem>>, vector<1x8x128xf32>
    %484 = vector.shape_cast %483 : vector<1x8x128xf32> to vector<8x128xf32>
    %485 = vector.shape_cast %481 : vector<8x128xf32> to vector<1x8x128xf32>
    tpu.vector_store %arg5[%482, %c0_172, %c0_173], %485 {strides = array<i32>} : memref<12x8x128xf32, #tpu.memory_space<vmem>>, vector<1x8x128xf32>,
    %c12_i32 = arith.constant 12 : i32
    %c0_i32_174 = arith.constant 0 : i32
    %486 = arith.cmpi ne, %arg0, %c0_i32_174 : i32
    %487 = arith.extui %486 : i1 to i32
    %c0_i32_175 = arith.constant 0 : i32
    %488 = arith.cmpi ne, %487, %c0_i32_175 : i32
    scf.if %488 {
      %c0_178 = arith.constant 0 : index
      %c0_179 = arith.constant 0 : index
      %492 = vector.load %arg7[%c0_178, %c0_179] : memref<8x128xf32, #tpu.memory_space<vmem>>, vector<8x128xf32>
      tpu.vector_store %arg7[%c0_178, %c0_179], %481 {strides = array<i32>} : memref<8x128xf32, #tpu.memory_space<vmem>>, vector<8x128xf32>,
      %c0_180 = arith.constant 0 : index
      %c0_181 = arith.constant 0 : index
      %493 = vector.load %arg8[%c0_180, %c0_181] : memref<8x128xf32, #tpu.memory_space<vmem>>, vector<8x128xf32>
      tpu.vector_store %arg8[%c0_180, %c0_181], %479 {strides = array<i32>} : memref<8x128xf32, #tpu.memory_space<vmem>>, vector<8x128xf32>,
    } else {
    }
    %c0_i32_176 = arith.constant 0 : i32
    %489 = arith.cmpi eq, %arg0, %c0_i32_176 : i32
    %490 = arith.extui %489 : i1 to i32
    %c0_i32_177 = arith.constant 0 : i32
    %491 = arith.cmpi ne, %490, %c0_i32_177 : i32
    scf.if %491 {
      %c0_178 = arith.constant 0 : index
      %c0_179 = arith.constant 0 : index
      %492 = vector.load %arg6[%c0_178, %c0_179] : memref<8x128xf32, #tpu.memory_space<vmem>>, vector<8x128xf32>
      tpu.vector_store %arg6[%c0_178, %c0_179], %479 {strides = array<i32>} : memref<8x128xf32, #tpu.memory_space<vmem>>, vector<8x128xf32>,
    } else {
    }
    return
  }
  func.func @transform_0(%arg0: i32) -> (i32, i32, i32) {
    %c0_i32 = arith.constant 0 : i32
    %c0_i32_0 = arith.constant 0 : i32
    %c0_i32_1 = arith.constant 0 : i32
    return %arg0, %c0_i32, %c0_i32_0 : i32, i32, i32
  }
  func.func @transform_1(%arg0: i32) -> (i32, i32) {
    %c0_i32 = arith.constant 0 : i32
    %c0_i32_0 = arith.constant 0 : i32
    %c0_i32_1 = arith.constant 0 : i32
    return %c0_i32, %c0_i32_0 : i32, i32
  }
  func.func @transform_2(%arg0: i32) -> (i32, i32) {
    %c0_i32 = arith.constant 0 : i32
    %c0_i32_0 = arith.constant 0 : i32
    %c0_i32_1 = arith.constant 0 : i32
    return %c0_i32, %c0_i32_0 : i32, i32
  }
  func.func @transform_3(%arg0: i32) -> (i32, i32) {
    %c0_i32 = arith.constant 0 : i32
    %c0_i32_0 = arith.constant 0 : i32
    %c0_i32_1 = arith.constant 0 : i32
    return %c0_i32, %c0_i32_0 : i32, i32
  }
  func.func @transform_4(%arg0: i32) -> (i32, i32, i32) {
    %c0_i32 = arith.constant 0 : i32
    %c0_i32_0 = arith.constant 0 : i32
    %c0_i32_1 = arith.constant 0 : i32
    return %arg0, %c0_i32, %c0_i32_0 : i32, i32, i32
  }
  func.func @transform_5(%arg0: i32) -> (i32, i32) {
    %c0_i32 = arith.constant 0 : i32
    %c0_i32_0 = arith.constant 0 : i32
    %c0_i32_1 = arith.constant 0 : i32
    return %c0_i32, %c0_i32_0 : i32, i32
  }
}

</mosaic_0001>

<bundles_post_ra>
// kernel: tpu_custom_call.1
= control target key start
LH: loop header
LB: loop body
LE: loop exit
PB: predicated region body
PF: predicated region fallthrough
CT: control target
= control target key end

     0   :  { %11 = vsyncpa [#allocation5], 0  ;;  %s3831_s0 = inlined_call_operand.hbm [shape: f32[12,8,512], index: 0, kind: input, shape index: {}]   ;;  %s3832_s1 = inlined_call_operand.hbm [shape: f32[128,512], index: 1, kind: input, shape index: {}]   ;;  %s3833_s2 = inlined_call_operand.hbm [shape: f32[8,128], index: 2, kind: input, shape index: {}]   ;;  %s3834_s3 = inlined_call_operand.hbm [shape: f32[8,128], index: 3, kind: input, shape index: {}]   ;;  %s3835_s4 = inlined_call_operand.hbm [shape: f32[12,8,128], index: 4, kind: output, shape index: {0}]   ;;  %s3836_s5 = inlined_call_operand.hbm [shape: f32[8,128], index: 5, kind: output, shape index: {1}]  }
   0x1   :  { %12 = vsyncpa [#allocation8], 0 }
   0x2   :  { %13 = vsyncpa [#allocation11], 0 }
   0x3   :  { %14 = vsyncpa [#allocation6], 0 }
   0x4   :  { %15 = vsyncpa [#allocation14], 0  ;;  %s2628_s18 = smov [#allocation7]   ;;  %s2629_s20 = smov [#allocation4]  }
   0x5   :  { %s33_s19 = sshll.u32 %s2628_s18, 4  ;;  %s21_s21 = sshll.u32 %s2629_s20, 4  ;;  %s34_s19 = int_to_ptr.vmem [resolvable:$true] %s33_s19  ;;  %s22_s21 = int_to_ptr.vmem [resolvable:$true] %s21_s21 }
   0x6   :  { %s2506_s22 = scalar_lea.vmem %s34_s19, 8192  ;;  %p2511_p1 = scmp.lt.s32.totalorder %s34_s19, %s34_s19 }
   0x7   :  { %p2507_p0 = scmp.ne.s32.totalorder %s34_s19, %s2506_s22  ;;  %p2512_p2 = scmp.lt.s32.totalorder %s2506_s22, %s2506_s22 }
   0x9   :  { %p2513_p3 = por %p2512_p2, %p2511_p1 }
   0xb   :  { %p2514_p4 = pnand %p2513_p3, %p2507_p0 }
   0xd   :  { %2517 = shalt.err (!%p2514_p4)
}
   0xe   :  { %s2630_s23 = smov 512   ;;  %s2631_s24 = smov 32  }
   0xf   :  { %39 = dma.hbm_to_vmem [thread:$0]  %s3832_s1, 8192, %s34_s19, [#allocation8], %s2630_s23, %s2630_s23, %s2631_s24  }
  0x10   :  { %s2526_s27 = scalar_lea.vmem %s22_s21, 6144  ;;  %p2531_p6 = scmp.lt.s32.totalorder %s22_s21, %s22_s21 }
  0x11   :  { %p2527_p5 = scmp.ne.s32.totalorder %s22_s21, %s2526_s27  ;;  %p2532_p7 = scmp.lt.s32.totalorder %s2526_s27, %s2526_s27 }
  0x13   :  { %p2533_p8 = por %p2532_p7, %p2531_p6 }
  0x15   :  { %p2534_p9 = pnand %p2533_p8, %p2527_p5 }
  0x17   :  { %2537 = shalt.err (!%p2534_p9)
}
  0x18   :  { %27 = dma.hbm_to_vmem [thread:$0]  %s3831_s0, 6144, %s22_s21, [#allocation5], %s2630_s23, %s2630_s23, %s2631_s24  }
  0x19   :  { %s2632_s30 = smov [#allocation9]   ;;  %s2633_s7 = smov [#allocation10]  }
  0x1a   :  { %s46_s6 = sshll.u32 %s2632_s30, 4  ;;  %s56_s8 = sshll.u32 %s2633_s7, 4  ;;  %s47_s6 = int_to_ptr.vmem [resolvable:$true] %s46_s6  ;;  %s57_s8 = int_to_ptr.vmem [resolvable:$true] %s56_s8 }
  0x1b   :  { %s2546_s9 = scalar_lea.vmem %s47_s6, 128  ;;  %p2551_p11 = scmp.lt.s32.totalorder %s47_s6, %s47_s6 }
  0x1c   :  { %p2547_p10 = scmp.ne.s32.totalorder %s47_s6, %s2546_s9  ;;  %p2552_p12 = scmp.lt.s32.totalorder %s2546_s9, %s2546_s9 }
  0x1e   :  { %p2553_p13 = por %p2552_p12, %p2551_p11 }
  0x20   :  { %p2554_p0 = pnand %p2553_p13, %p2547_p10 }
  0x22   :  { %2557 = shalt.err (!%p2554_p0)
}
  0x23   :  { %49 = dma.hbm_to_vmem [thread:$0]  %s3833_s2, 128, %s47_s6, [#allocation8]  }
  0x24   :  { %s2566_s11 = scalar_lea.vmem %s57_s8, 128  ;;  %p2571_p2 = scmp.lt.s32.totalorder %s57_s8, %s57_s8 }
  0x25   :  { %p2567_p1 = scmp.ne.s32.totalorder %s57_s8, %s2566_s11  ;;  %p2572_p3 = scmp.lt.s32.totalorder %s2566_s11, %s2566_s11 }
  0x27   :  { %p2573_p4 = por %p2572_p3, %p2571_p2 }
  0x29   :  { %p2574_p5 = pnand %p2573_p4, %p2567_p1 }
  0x2b   :  { %2577 = shalt.err (!%p2574_p5)
}
  0x2c   :  { %59 = dma.hbm_to_vmem [thread:$0]  %s3834_s3, 128, %s57_s8, [#allocation11]  }
  0x2d   :  { %2618 = dma.done.wait [#allocation5], 6144  }
  0x2e   :  { %2619 = vsyncadd [#allocation5], 4294961152 }
  0x2f   :  { %2620 = dma.done.wait [#allocation8], 8320  }
  0x30   :  { %2621 = vsyncadd [#allocation8], 4294958976 }
  0x31   :  { %2622 = dma.done.wait [#allocation11], 128  }
  0x32   :  { %2623 = vsyncadd [#allocation11], 4294967168  ;;  %v3837_v0 = vmov 0.0   ;;  %v2683_v1 = vld [vmem:[#allocation7 + $0x1e8] sm:$0xff]  ;;  %v2685_v2 = vld [vmem:[#allocation7 + $0x1e0] sm:$0xff]  ;;  %s2635_s2 = smov [#allocation13]  }
  0x33   :  { %214 = vmatprep.mubr.f32.mxu0 %v3837_v0  ;;  %285 = vmatprep.mubr.f32.mxu1 %v3837_v0  ;;  %3929 = vst [vmem:[#allocation20_spill] sm:$0xff] %v2683_v1  ;;  %v2687_v3 = vld [vmem:[#allocation7 + $0x1c8] sm:$0xff]  ;;  %v2690_v4 = vld [vmem:[#allocation7 + $0x1c0] sm:$0xff]  ;;  %v2695_v6 = vld [vmem:[#allocation7 + $0x1f8] sm:$0xff]  ;;  %s2224_s3 = sshll.u32 %s2635_s2, 4  ;;  %s2225_s3 = int_to_ptr.vmem [resolvable:$true] %s2224_s3 }
  0x34   :  { %150 = vmatprep.subr.mxu0 %v2683_v1  ;;  %v2693_v5 = vld [vmem:[#allocation7 + $0x1a8] sm:$0xff]  ;;  %3930 = vst [vmem:[#allocation21_spill] sm:$0xff] %v2695_v6  ;;  %v2698_v7 = vld [vmem:[#allocation7 + $0x1a0] sm:$0xff]  ;;  %221 = vmatprep.subr.mxu1 %v2695_v6  ;;  %v2701_v8 = vld [vmem:[#allocation7 + $0x1f0] sm:$0xff]  ;;  %s2578_s13 = scalar_lea.vmem %s2225_s3, 128  ;;  %p2583_p7 = scmp.lt.s32.totalorder %s2225_s3, %s2225_s3 }
  0x35   :  { %151 = vmatpush1.msra.mxu0 %v2685_v2  ;;  %v2703_v9 = vld [vmem:[#allocation7 + $0x1d8] sm:$0xff]  ;;  %v2706_v10 = vld [vmem:[#allocation7 + $0x188] sm:$0xff]  ;;  %222 = vmatpush1.msra.mxu1 %v2701_v8  ;;  %v2709_v11 = vld [vmem:[#allocation7 + $0x1d0] sm:$0xff]  ;;  %p2579_p6 = scmp.ne.s32.totalorder %s2225_s3, %s2578_s13  ;;  %p2584_p8 = scmp.lt.s32.totalorder %s2578_s13, %s2578_s13 }
  0x36   :  { %152 = vmatprep.subr.mxu0 %v2687_v3  ;;  %v2712_v12 = vld [vmem:[#allocation7 + $0x180] sm:$0xff]  ;;  %223 = vmatprep.subr.mxu1 %v2703_v9  ;;  %v2715_v13 = vld [vmem:[#allocation7 + $0x1b8] sm:$0xff]  ;;  %v2717_v14 = vld [vmem:[#allocation7 + $0x1b0] sm:$0xff] }
  0x37   :  { %153 = vmatpush1.msra.mxu0 %v2690_v4  ;;  %v2720_v15 = vld [vmem:[#allocation7 + $0x168] sm:$0xff]  ;;  %224 = vmatpush1.msra.mxu1 %v2709_v11  ;;  %v2723_v16 = vld [vmem:[#allocation7 + $0x198] sm:$0xff]  ;;  %v2726_v17 = vld [vmem:[#allocation7 + $0x160] sm:$0xff]  ;;  %p2585_p9 = por %p2584_p8, %p2583_p7 }
  0x38   :  { %154 = vmatprep.subr.mxu0 %v2693_v5  ;;  %225 = vmatprep.subr.mxu1 %v2715_v13  ;;  %v2729_v18 = vld [vmem:[#allocation7 + $0x190] sm:$0xff]  ;;  %v2732_v19 = vld [vmem:[#allocation7 + $0x148] sm:$0xff]  ;;  %v2735_v20 = vld [vmem:[#allocation7 + $0x178] sm:$0xff] }
  0x39   :  { %155 = vmatpush1.msra.mxu0 %v2698_v7  ;;  %226 = vmatpush1.msra.mxu1 %v2717_v14  ;;  %v2738_v21 = vld [vmem:[#allocation7 + $0x140] sm:$0xff]  ;;  %v2741_v22 = vld [vmem:[#allocation7 + $0x170] sm:$0xff]  ;;  %v2744_v23 = vld [vmem:[#allocation7 + $0x128] sm:$0xff]  ;;  %p2586_p10 = pnand %p2585_p9, %p2579_p6 }
  0x3a   :  { %156 = vmatprep.subr.mxu0 %v2706_v10  ;;  %227 = vmatprep.subr.mxu1 %v2723_v16  ;;  %v2747_v24 = vld [vmem:[#allocation7 + $0x158] sm:$0xff]  ;;  %v2750_v25 = vld [vmem:[#allocation7 + $0x120] sm:$0xff]  ;;  %v2753_v26 = vld [vmem:[#allocation7 + $0x150] sm:$0xff] }
  0x3b   :  { %157 = vmatpush1.msra.mxu0 %v2712_v12  ;;  %228 = vmatpush1.msra.mxu1 %v2729_v18  ;;  %v2756_v27 = vld [vmem:[#allocation7 + $0x108] sm:$0xff]  ;;  %v2759_v28 = vld [vmem:[#allocation7 + $0x138] sm:$0xff]  ;;  %v2762_v29 = vld [vmem:[#allocation7 + $0x100] sm:$0xff] }
  0x3c   :  { %158 = vmatprep.subr.mxu0 %v2720_v15  ;;  %229 = vmatprep.subr.mxu1 %v2735_v20  ;;  %v2765_v30 = vld [vmem:[#allocation7 + $0x130] sm:$0xff]  ;;  %v2768_v31 = vld [vmem:[#allocation7 + $0xe8] sm:$0xff]  ;;  %v2771_v32 = vld [vmem:[#allocation7 + $0x118] sm:$0xff] }
  0x3d   :  { %159 = vmatpush1.msra.mxu0 %v2726_v17  ;;  %230 = vmatpush1.msra.mxu1 %v2741_v22  ;;  %v2774_v33 = vld [vmem:[#allocation7 + $0xe0] sm:$0xff]  ;;  %v2777_v34 = vld [vmem:[#allocation7 + $0x110] sm:$0xff]  ;;  %v2780_v35 = vld [vmem:[#allocation7 + $0xc8] sm:$0xff] }
  0x3e   :  { %160 = vmatprep.subr.mxu0 %v2732_v19  ;;  %231 = vmatprep.subr.mxu1 %v2747_v24  ;;  %v2783_v36 = vld [vmem:[#allocation7 + $0xf8] sm:$0xff]  ;;  %v2786_v37 = vld [vmem:[#allocation7 + $0xc0] sm:$0xff]  ;;  %v2789_v38 = vld [vmem:[#allocation7 + $0xf0] sm:$0xff] }
  0x3f   :  { %161 = vmatpush1.msra.mxu0 %v2738_v21  ;;  %232 = vmatpush1.msra.mxu1 %v2753_v26  ;;  %v2792_v39 = vld [vmem:[#allocation7 + $0xa8] sm:$0xff]  ;;  %v2795_v40 = vld [vmem:[#allocation7 + $0xd8] sm:$0xff]  ;;  %v2798_v41 = vld [vmem:[#allocation7 + $0xa0] sm:$0xff] }
  0x40   :  { %162 = vmatprep.subr.mxu0 %v2744_v23  ;;  %233 = vmatprep.subr.mxu1 %v2759_v28  ;;  %v2801_v42 = vld [vmem:[#allocation7 + $0xd0] sm:$0xff]  ;;  %v2804_v43 = vld [vmem:[#allocation7 + $0x88] sm:$0xff]  ;;  %v2807_v44 = vld [vmem:[#allocation7 + $0xb8] sm:$0xff] }
  0x41   :  { %163 = vmatpush1.msra.mxu0 %v2750_v25  ;;  %234 = vmatpush1.msra.mxu1 %v2765_v30  ;;  %v2810_v45 = vld [vmem:[#allocation7 + $0x80] sm:$0xff]  ;;  %v2813_v46 = vld [vmem:[#allocation7 + $0xb0] sm:$0xff]  ;;  %v2816_v47 = vld [vmem:[#allocation7 + $0x68] sm:$0xff] }
  0x42   :  { %164 = vmatprep.subr.mxu0 %v2756_v27  ;;  %235 = vmatprep.subr.mxu1 %v2771_v32  ;;  %3931 = vst [vmem:[#allocation22_spill] sm:$0xff] %v2810_v45  ;;  %3932 = vst [vmem:[#allocation23_spill] sm:$0xff] %v2816_v47  ;;  %v2819_v48 = vld [vmem:[#allocation7 + $0x98] sm:$0xff]  ;;  %v2822_v49 = vld [vmem:[#allocation7 + $0x60] sm:$0xff] }
  0x43   :  { %165 = vmatpush1.msra.mxu0 %v2762_v29  ;;  %236 = vmatpush1.msra.mxu1 %v2777_v34  ;;  %3933 = vst [vmem:[#allocation24_spill] sm:$0xff] %v2819_v48  ;;  %3934 = vst [vmem:[#allocation25_spill] sm:$0xff] %v2822_v49  ;;  %v2825_v50 = vld [vmem:[#allocation7 + $0x90] sm:$0xff]  ;;  %v2828_v51 = vld [vmem:[#allocation7 + $0x48] sm:$0xff] }
  0x44   :  { %166 = vmatprep.subr.mxu0 %v2768_v31  ;;  %237 = vmatprep.subr.mxu1 %v2783_v36  ;;  %3935 = vst [vmem:[#allocation26_spill] sm:$0xff] %v2825_v50  ;;  %3936 = vst [vmem:[#allocation27_spill] sm:$0xff] %v2828_v51  ;;  %v2831_v52 = vld [vmem:[#allocation7 + $0x78] sm:$0xff]  ;;  %v2834_v53 = vld [vmem:[#allocation7 + $0x40] sm:$0xff] }
  0x45   :  { %167 = vmatpush1.msra.mxu0 %v2774_v33  ;;  %238 = vmatpush1.msra.mxu1 %v2789_v38  ;;  %3937 = vst [vmem:[#allocation28_spill] sm:$0xff] %v2831_v52  ;;  %3938 = vst [vmem:[#allocation29_spill] sm:$0xff] %v2834_v53  ;;  %v2837_v54 = vld [vmem:[#allocation7 + $0x70] sm:$0xff]  ;;  %v2840_v55 = vld [vmem:[#allocation7 + $0x28] sm:$0xff] }
  0x46   :  { %168 = vmatprep.subr.mxu0 %v2780_v35  ;;  %239 = vmatprep.subr.mxu1 %v2795_v40  ;;  %3939 = vst [vmem:[#allocation30_spill] sm:$0xff] %v2837_v54  ;;  %3940 = vst [vmem:[#allocation31_spill] sm:$0xff] %v2840_v55  ;;  %v2843_v56 = vld [vmem:[#allocation7 + $0x58] sm:$0xff]  ;;  %v2846_v57 = vld [vmem:[#allocation7 + $0x20] sm:$0xff] }
  0x47   :  { %169 = vmatpush1.msra.mxu0 %v2786_v37  ;;  %240 = vmatpush1.msra.mxu1 %v2801_v42  ;;  %3941 = vst [vmem:[#allocation32_spill] sm:$0xff] %v2843_v56  ;;  %3942 = vst [vmem:[#allocation33_spill] sm:$0xff] %v2846_v57  ;;  %v2849_v58 = vld [vmem:[#allocation7 + $0x50] sm:$0xff]  ;;  %v2852_v59 = vld [vmem:[#allocation7 + $0x8] sm:$0xff] }
  0x48   :  { %170 = vmatprep.subr.mxu0 %v2792_v39  ;;  %241 = vmatprep.subr.mxu1 %v2807_v44  ;;  %3943 = vst [vmem:[#allocation34_spill] sm:$0xff] %v2849_v58  ;;  %3944 = vst [vmem:[#allocation35_spill] sm:$0xff] %v2852_v59  ;;  %v2855_v60 = vld [vmem:[#allocation7 + $0x38] sm:$0xff]  ;;  %v2858_v61 = vld [vmem:[#allocation7] sm:$0xff] }
  0x49   :  { %171 = vmatpush1.msra.mxu0 %v2798_v41  ;;  %242 = vmatpush1.msra.mxu1 %v2813_v46  ;;  %3945 = vst [vmem:[#allocation36_spill] sm:$0xff] %v2855_v60  ;;  %3946 = vst [vmem:[#allocation37_spill] sm:$0xff] %v2858_v61  ;;  %v2861_v62 = vld [vmem:[#allocation7 + $0x30] sm:$0xff]  ;;  %v76_v63 = vld [vmem:[#allocation9] sm:$0xff] }
  0x4a   :  { %172 = vmatprep.subr.mxu0 %v2804_v43  ;;  %243 = vmatprep.subr.mxu1 %v2819_v48  ;;  %3947 = vst [vmem:[#allocation38_spill] sm:$0xff] %v2861_v62  ;;  %v2865_v0 = vld [vmem:[#allocation7 + $0x18] sm:$0xff] }
  0x4b   :  { %173 = vmatpush1.msra.mxu0 %v2810_v45  ;;  %244 = vmatpush1.msra.mxu1 %v2825_v50  ;;  %3948 = vst [vmem:[#allocation39_spill] sm:$0xff] %v2865_v0 }
  0x4c   :  { %174 = vmatprep.subr.mxu0 %v2816_v47  ;;  %245 = vmatprep.subr.mxu1 %v2831_v52 }
  0x4d   :  { %175 = vmatpush1.msra.mxu0 %v2822_v49  ;;  %246 = vmatpush1.msra.mxu1 %v2837_v54 }
  0x4e   :  { %176 = vmatprep.subr.mxu0 %v2828_v51  ;;  %247 = vmatprep.subr.mxu1 %v2843_v56 }
  0x4f   :  { %177 = vmatpush1.msra.mxu0 %v2834_v53  ;;  %248 = vmatpush1.msra.mxu1 %v2849_v58  ;;  %v2869_v53 = vld [vmem:[#allocation7 + $0x10] sm:$0xff] }
  0x50   :  { %178 = vmatprep.subr.mxu0 %v2840_v55  ;;  %249 = vmatprep.subr.mxu1 %v2855_v60  ;;  %3949 = vst [vmem:[#allocation40_spill] sm:$0xff] %v2869_v53 }
  0x51   :  { %179 = vmatpush1.msra.mxu0 %v2846_v57  ;;  %250 = vmatpush1.msra.mxu1 %v2861_v62 }
  0x52   :  { %180 = vmatprep.subr.mxu0 %v2852_v59  ;;  %251 = vmatprep.subr.mxu1 %v2865_v0 }
  0x53   :  { %181 = vmatpush1.msra.mxu0 %v2858_v61  ;;  %252 = vmatpush1.msra.mxu1 %v2869_v53 }
  0x54   :  { %215 = vmatmul.mubr.f32.vlgmr.msra.gmra.mxu0 %v76_v63  ;;  %320 = vmatprep.subr.mxu0 %v2683_v1 }
  0x55   :  { %286 = vmatmul.mubr.f32.vlgmr.msra.gmra.mxu1 %v76_v63  ;;  %391 = vmatprep.subr.mxu1 %v2695_v6  ;;  %v3950_v63 = vld [vmem:[#allocation29_spill] sm:$0xff] }
  0x56   :  { %321 = vmatpush1.msra.mxu0 %v2685_v2  ;;  %392 = vmatpush1.msra.mxu1 %v2701_v8 }
  0x57   :  { %322 = vmatprep.subr.mxu0 %v2687_v3  ;;  %393 = vmatprep.subr.mxu1 %v2703_v9 }
  0x58   :  { %323 = vmatpush1.msra.mxu0 %v2690_v4  ;;  %394 = vmatpush1.msra.mxu1 %v2709_v11 }
  0x59   :  { %324 = vmatprep.subr.mxu0 %v2693_v5  ;;  %395 = vmatprep.subr.mxu1 %v2715_v13 }
  0x5a   :  { %325 = vmatpush1.msra.mxu0 %v2698_v7  ;;  %396 = vmatpush1.msra.mxu1 %v2717_v14 }
  0x5b   :  { %326 = vmatprep.subr.mxu0 %v2706_v10  ;;  %397 = vmatprep.subr.mxu1 %v2723_v16 }
  0x5c   :  { %327 = vmatpush1.msra.mxu0 %v2712_v12  ;;  %398 = vmatpush1.msra.mxu1 %v2729_v18 }
  0x5d   :  { %328 = vmatprep.subr.mxu0 %v2720_v15  ;;  %399 = vmatprep.subr.mxu1 %v2735_v20 }
  0x5e   :  { %329 = vmatpush1.msra.mxu0 %v2726_v17  ;;  %400 = vmatpush1.msra.mxu1 %v2741_v22 }
  0x5f   :  { %330 = vmatprep.subr.mxu0 %v2732_v19  ;;  %401 = vmatprep.subr.mxu1 %v2747_v24 }
  0x60   :  { %331 = vmatpush1.msra.mxu0 %v2738_v21  ;;  %402 = vmatpush1.msra.mxu1 %v2753_v26 }
  0x61   :  { %332 = vmatprep.subr.mxu0 %v2744_v23  ;;  %403 = vmatprep.subr.mxu1 %v2759_v28 }
  0x62   :  { %333 = vmatpush1.msra.mxu0 %v2750_v25  ;;  %404 = vmatpush1.msra.mxu1 %v2765_v30 }
  0x63   :  { %334 = vmatprep.subr.mxu0 %v2756_v27  ;;  %405 = vmatprep.subr.mxu1 %v2771_v32 }
  0x64   :  { %335 = vmatpush1.msra.mxu0 %v2762_v29  ;;  %406 = vmatpush1.msra.mxu1 %v2777_v34 }
  0x65   :  { %336 = vmatprep.subr.mxu0 %v2768_v31  ;;  %407 = vmatprep.subr.mxu1 %v2783_v36 }
  0x66   :  { %337 = vmatpush1.msra.mxu0 %v2774_v33  ;;  %408 = vmatpush1.msra.mxu1 %v2789_v38 }
  0x67   :  { %338 = vmatprep.subr.mxu0 %v2780_v35  ;;  %409 = vmatprep.subr.mxu1 %v2795_v40 }
  0x68   :  { %339 = vmatpush1.msra.mxu0 %v2786_v37  ;;  %410 = vmatpush1.msra.mxu1 %v2801_v42 }
  0x69   :  { %340 = vmatprep.subr.mxu0 %v2792_v39  ;;  %411 = vmatprep.subr.mxu1 %v2807_v44 }
  0x6a   :  { %341 = vmatpush1.msra.mxu0 %v2798_v41  ;;  %412 = vmatpush1.msra.mxu1 %v2813_v46 }
  0x6b   :  { %342 = vmatprep.subr.mxu0 %v2804_v43  ;;  %413 = vmatprep.subr.mxu1 %v2819_v48 }
  0x6c   :  { %343 = vmatpush1.msra.mxu0 %v2810_v45  ;;  %414 = vmatpush1.msra.mxu1 %v2825_v50 }
  0x6d   :  { %344 = vmatprep.subr.mxu0 %v2816_v47  ;;  %415 = vmatprep.subr.mxu1 %v2831_v52 }
  0x6e   :  { %345 = vmatpush1.msra.mxu0 %v2822_v49  ;;  %416 = vmatpush1.msra.mxu1 %v2837_v54 }
  0x6f   :  { %346 = vmatprep.subr.mxu0 %v2828_v51  ;;  %417 = vmatprep.subr.mxu1 %v2843_v56  ;;  %v3951_v51 = vmov 0.0  }
  0x70   :  { %347 = vmatpush1.msra.mxu0 %v3950_v63  ;;  %418 = vmatpush1.msra.mxu1 %v2849_v58 }
  0x71   :  { %348 = vmatprep.subr.mxu0 %v2840_v55  ;;  %419 = vmatprep.subr.mxu1 %v2855_v60  ;;  %v146_v60 = vld [vmem:[#allocation4] sm:$0xff]  ;;  %v147_v55 = vld [vmem:[#allocation4 + $0x8] sm:$0xff] }
  0x72   :  { %349 = vmatpush1.msra.mxu0 %v2846_v57  ;;  %420 = vmatpush1.msra.mxu1 %v2861_v62 }
  0x73   :  { %350 = vmatprep.subr.mxu0 %v2852_v59  ;;  %421 = vmatprep.subr.mxu1 %v2865_v0  ;;  %v148_v59 = vld [vmem:[#allocation4 + $0x10] sm:$0xff] }
  0x74   :  { %351 = vmatpush1.msra.mxu0 %v2858_v61  ;;  %384 = vmatprep.mubr.f32.mxu0 %v3951_v51 }
  0x75   :  { %422 = vmatpush1.msra.mxu1 %v2869_v53  ;;  %455 = vmatprep.mubr.f32.mxu1 %v3951_v51  ;;  %v149_v53 = vld [vmem:[#allocation4 + $0x18] sm:$0xff] }
  0x76   :  { %491 = vmatprep.subr.mxu0 %v2683_v1  ;;  %562 = vmatprep.subr.mxu1 %v2695_v6 }
 0x114   :  { %v216_v57 = vpop.f32.mrf.mxu0 }
 0x115   :  { %v292_v62 = vadd.f32 %v216_v57, %v146_v60  ;;  %v287_v63 = vpop.f32.mrf.mxu1  ;;  %v78_v60 = vld [vmem:[#allocation10] sm:$0xff] }
 0x116   :  { %v218_v58 = vpop.f32.mrf.mxu0  ;;  %v294_v54 = vadd.f32 %v287_v63, %v148_v59  ;;  %v3960_v59 = vld [vmem:[#allocation32_spill] sm:$0xff]  ;;  %v3962_v63 = vld [vmem:[#allocation34_spill] sm:$0xff] }
 0x117   :  { %v296_v0 = vmul.f32 0.5, %v292_v62  ;;  %v293_v56 = vadd.f32 %v218_v58, %v147_v55  ;;  %v289_v51 = vpop.f32.mrf.mxu1 }
 0x118   :  { %v295_v49 = vadd.f32 %v289_v51, %v149_v53  ;;  %v3959_v53 = vld [vmem:[#allocation27_spill] sm:$0xff] }
 0x119   :  { %2250 = vtanh.f32 %v296_v0  ;;  %v300_v61 = vmul.f32 0.5, %v293_v56 }
 0x11a   :  { %v305_v1 = vmul.f32 0.5, %v295_v49 }
 0x11b   :  { %2252 = vtanh.f32 %v300_v61  ;;  %v3961_v61 = vld [vmem:[#allocation29_spill] sm:$0xff] }
 0x11c   :  { %2254 = vtanh.f32 %v294_v54 }
 0x11d   :  { %2256 = vtanh.f32 %v305_v1  ;;  %v3952_v1 = vld [vmem:[#allocation24_spill] sm:$0xff] }
 0x126   :  { %v2251_v52 = vpop.eup %2250 }
 0x127   :  { %v298_v6 = vmul.f32 0.5, %v2251_v52  ;;  %v3958_v52 = vld [vmem:[#allocation30_spill] sm:$0xff] }
 0x128   :  { %v2253_v47 = vpop.eup %2252 }
 0x129   :  { %v299_v50 = vadd.f32 0.5, %v298_v6  ;;  %v302_v45 = vmul.f32 0.5, %v2253_v47  ;;  %v2255_v57 = vpop.eup %2254  ;;  %v3953_v6 = vld [vmem:[#allocation22_spill] sm:$0xff]  ;;  %v3955_v47 = vld [vmem:[#allocation23_spill] sm:$0xff] }
 0x12a   :  { %v2257_v54 = vpop.eup %2256 }
 0x12b   :  { %v303_v48 = vadd.f32 0.5, %v302_v45  ;;  %v310_v55 = vmul.f32 %v2255_v57, %v299_v50  ;;  %v307_v56 = vmul.f32 0.5, %v2257_v54  ;;  %v3954_v45 = vld [vmem:[#allocation26_spill] sm:$0xff]  ;;  %v3957_v50 = vld [vmem:[#allocation25_spill] sm:$0xff]  ;;  %v3963_v57 = vld [vmem:[#allocation31_spill] sm:$0xff] }
 0x12c   :  { %v3967_v54 = vld [vmem:[#allocation35_spill] sm:$0xff] }
 0x12d   :  { %v309_v62 = vmul.f32 %v303_v48, %v78_v60  ;;  %v308_v58 = vadd.f32 0.5, %v307_v56  ;;  %v3956_v48 = vld [vmem:[#allocation28_spill] sm:$0xff]  ;;  %v3968_v56 = vld [vmem:[#allocation39_spill] sm:$0xff] }
 0x12e   :  { %v3964_v60 = vld [vmem:[#allocation36_spill] sm:$0xff] }
 0x12f   :  { %v2943_v0 = vadd.f32 %v310_v55, %v309_v62  ;;  %v3965_v62 = vld [vmem:[#allocation33_spill] sm:$0xff]  ;;  %v3966_v55 = vld [vmem:[#allocation38_spill] sm:$0xff] }
 0x131   :  { %2258 = vtanh.f32 %v2943_v0 }
 0x13e   :  { %v2259_v51 = vpop.eup %2258 }
 0x13f   :  { %v313_v49 = vmul.f32 %v2259_v51, %v308_v58  ;;  %v3969_v58 = vld [vmem:[#allocation37_spill] sm:$0xff]  ;;  %v3970_v51 = vmov 0.0  }
 0x141   :  { %314 = vst [vmem:[#allocation12] sm:$0xff] %v313_v49  ;;  %385 = vmatmul.mubr.f32.vlgmr.msra.gmra.mxu0 %v313_v49  ;;  %456 = vmatmul.mubr.f32.vlgmr.msra.gmra.mxu1 %v313_v49  ;;  %v3971_v49 = vld [vmem:[#allocation40_spill] sm:$0xff] }
 0x142   :  { %492 = vmatpush1.msra.mxu0 %v2685_v2  ;;  %563 = vmatpush1.msra.mxu1 %v2701_v8 }
 0x143   :  { %493 = vmatprep.subr.mxu0 %v2687_v3  ;;  %564 = vmatprep.subr.mxu1 %v2703_v9 }
 0x144   :  { %494 = vmatpush1.msra.mxu0 %v2690_v4  ;;  %565 = vmatpush1.msra.mxu1 %v2709_v11 }
 0x145   :  { %495 = vmatprep.subr.mxu0 %v2693_v5  ;;  %566 = vmatprep.subr.mxu1 %v2715_v13 }
 0x146   :  { %496 = vmatpush1.msra.mxu0 %v2698_v7  ;;  %567 = vmatpush1.msra.mxu1 %v2717_v14 }
 0x147   :  { %497 = vmatprep.subr.mxu0 %v2706_v10  ;;  %568 = vmatprep.subr.mxu1 %v2723_v16 }
 0x148   :  { %498 = vmatpush1.msra.mxu0 %v2712_v12  ;;  %569 = vmatpush1.msra.mxu1 %v2729_v18 }
 0x149   :  { %499 = vmatprep.subr.mxu0 %v2720_v15  ;;  %570 = vmatprep.subr.mxu1 %v2735_v20 }
 0x14a   :  { %500 = vmatpush1.msra.mxu0 %v2726_v17  ;;  %571 = vmatpush1.msra.mxu1 %v2741_v22 }
 0x14b   :  { %501 = vmatprep.subr.mxu0 %v2732_v19  ;;  %572 = vmatprep.subr.mxu1 %v2747_v24 }
 0x14c   :  { %502 = vmatpush1.msra.mxu0 %v2738_v21  ;;  %573 = vmatpush1.msra.mxu1 %v2753_v26 }
 0x14d   :  { %503 = vmatprep.subr.mxu0 %v2744_v23  ;;  %574 = vmatprep.subr.mxu1 %v2759_v28 }
 0x14e   :  { %504 = vmatpush1.msra.mxu0 %v2750_v25  ;;  %575 = vmatpush1.msra.mxu1 %v2765_v30 }
 0x14f   :  { %505 = vmatprep.subr.mxu0 %v2756_v27  ;;  %576 = vmatprep.subr.mxu1 %v2771_v32 }
 0x150   :  { %506 = vmatpush1.msra.mxu0 %v2762_v29  ;;  %577 = vmatpush1.msra.mxu1 %v2777_v34 }
 0x151   :  { %507 = vmatprep.subr.mxu0 %v2768_v31  ;;  %578 = vmatprep.subr.mxu1 %v2783_v36 }
 0x152   :  { %508 = vmatpush1.msra.mxu0 %v2774_v33  ;;  %579 = vmatpush1.msra.mxu1 %v2789_v38 }
 0x153   :  { %509 = vmatprep.subr.mxu0 %v2780_v35  ;;  %580 = vmatprep.subr.mxu1 %v2795_v40 }
 0x154   :  { %510 = vmatpush1.msra.mxu0 %v2786_v37  ;;  %581 = vmatpush1.msra.mxu1 %v2801_v42 }
 0x155   :  { %511 = vmatprep.subr.mxu0 %v2792_v39  ;;  %582 = vmatprep.subr.mxu1 %v2807_v44 }
 0x156   :  { %512 = vmatpush1.msra.mxu0 %v2798_v41  ;;  %583 = vmatpush1.msra.mxu1 %v2813_v46 }
 0x157   :  { %513 = vmatprep.subr.mxu0 %v2804_v43  ;;  %584 = vmatprep.subr.mxu1 %v3952_v1 }
 0x158   :  { %514 = vmatpush1.msra.mxu0 %v3953_v6  ;;  %585 = vmatpush1.msra.mxu1 %v3954_v45 }
 0x159   :  { %515 = vmatprep.subr.mxu0 %v3955_v47  ;;  %586 = vmatprep.subr.mxu1 %v3956_v48 }
 0x15a   :  { %516 = vmatpush1.msra.mxu0 %v3957_v50  ;;  %587 = vmatpush1.msra.mxu1 %v3958_v52 }
 0x15b   :  { %517 = vmatprep.subr.mxu0 %v3959_v53  ;;  %588 = vmatprep.subr.mxu1 %v3960_v59 }
 0x15c   :  { %518 = vmatpush1.msra.mxu0 %v3961_v61  ;;  %589 = vmatpush1.msra.mxu1 %v3962_v63  ;;  %v3972_v63 = vld [vmem:[#allocation20_spill] sm:$0xff]  ;;  %v317_v61 = vld [vmem:[#allocation4 + $0x28] sm:$0xff] }
 0x15d   :  { %519 = vmatprep.subr.mxu0 %v3963_v57  ;;  %590 = vmatprep.subr.mxu1 %v3964_v60  ;;  %v3973_v57 = vld [vmem:[#allocation21_spill] sm:$0xff] }
 0x15e   :  { %520 = vmatpush1.msra.mxu0 %v3965_v62  ;;  %591 = vmatpush1.msra.mxu1 %v3966_v55  ;;  %v316_v60 = vld [vmem:[#allocation4 + $0x20] sm:$0xff] }
 0x15f   :  { %521 = vmatprep.subr.mxu0 %v3967_v54  ;;  %592 = vmatprep.subr.mxu1 %v3968_v56  ;;  %v318_v56 = vld [vmem:[#allocation4 + $0x30] sm:$0xff] }
 0x160   :  { %522 = vmatpush1.msra.mxu0 %v3969_v58  ;;  %555 = vmatprep.mubr.f32.mxu0 %v3970_v51 }
 0x161   :  { %593 = vmatpush1.msra.mxu1 %v3971_v49  ;;  %626 = vmatprep.mubr.f32.mxu1 %v3970_v51  ;;  %v319_v49 = vld [vmem:[#allocation4 + $0x38] sm:$0xff] }
 0x162   :  { %662 = vmatprep.subr.mxu0 %v3972_v63  ;;  %733 = vmatprep.subr.mxu1 %v3973_v57 }
 0x201   :  { %v386_v62 = vpop.f32.mrf.mxu0  ;;  %v457_v52 = vpop.f32.mrf.mxu1 }
 0x202   :  { %v462_v55 = vadd.f32 %v386_v62, %v316_v60  ;;  %v464_v50 = vadd.f32 %v457_v52, %v318_v56  ;;  %v3981_v56 = vld [vmem:[#allocation27_spill] sm:$0xff] }
 0x203   :  { %v388_v59 = vpop.f32.mrf.mxu0  ;;  %v459_v48 = vpop.f32.mrf.mxu1 }
 0x204   :  { %v466_v54 = vmul.f32 0.5, %v462_v55  ;;  %v463_v53 = vadd.f32 %v388_v59, %v317_v61  ;;  %v465_v51 = vadd.f32 %v459_v48, %v319_v49  ;;  %v3984_v49 = vld [vmem:[#allocation34_spill] sm:$0xff] }
 0x206   :  { %2260 = vtanh.f32 %v466_v54  ;;  %v470_v58 = vmul.f32 0.5, %v463_v53  ;;  %v475_v63 = vmul.f32 0.5, %v465_v51  ;;  %v3983_v51 = vld [vmem:[#allocation29_spill] sm:$0xff] }
 0x208   :  { %2262 = vtanh.f32 %v470_v58  ;;  %v3982_v58 = vld [vmem:[#allocation32_spill] sm:$0xff] }
 0x209   :  { %2264 = vtanh.f32 %v464_v50 }
 0x20a   :  { %2266 = vtanh.f32 %v475_v63  ;;  %v3979_v63 = vld [vmem:[#allocation25_spill] sm:$0xff] }
 0x213   :  { %v2261_v47 = vpop.eup %2260 }
 0x214   :  { %v468_v57 = vmul.f32 0.5, %v2261_v47  ;;  %v3978_v47 = vld [vmem:[#allocation28_spill] sm:$0xff] }
 0x215   :  { %v2263_v45 = vpop.eup %2262 }
 0x216   :  { %v469_v6 = vadd.f32 0.5, %v468_v57  ;;  %v472_v1 = vmul.f32 0.5, %v2263_v45  ;;  %v2265_v62 = vpop.eup %2264  ;;  %v3977_v45 = vld [vmem:[#allocation23_spill] sm:$0xff]  ;;  %v3980_v57 = vld [vmem:[#allocation30_spill] sm:$0xff] }
 0x217   :  { %v2267_v52 = vpop.eup %2266 }
 0x218   :  { %v473_v60 = vadd.f32 0.5, %v472_v1  ;;  %v480_v61 = vmul.f32 %v2265_v62, %v469_v6  ;;  %v477_v53 = vmul.f32 0.5, %v2267_v52  ;;  %v3975_v1 = vld [vmem:[#allocation22_spill] sm:$0xff]  ;;  %v3986_v62 = vld [vmem:[#allocation36_spill] sm:$0xff]  ;;  %v3989_v52 = vld [vmem:[#allocation35_spill] sm:$0xff] }
 0x219   :  { %v3976_v6 = vld [vmem:[#allocation26_spill] sm:$0xff] }
 0x21a   :  { %v479_v59 = vmul.f32 %v473_v60, %v2943_v0  ;;  %v478_v50 = vadd.f32 0.5, %v477_v53  ;;  %v3974_v0 = vld [vmem:[#allocation24_spill] sm:$0xff]  ;;  %v3985_v60 = vld [vmem:[#allocation31_spill] sm:$0xff] }
 0x21b   :  { %v3990_v53 = vld [vmem:[#allocation39_spill] sm:$0xff] }
 0x21c   :  { %v3013_v55 = vadd.f32 %v480_v61, %v479_v59  ;;  %v3987_v59 = vld [vmem:[#allocation33_spill] sm:$0xff]  ;;  %v3988_v61 = vld [vmem:[#allocation38_spill] sm:$0xff] }
 0x21e   :  { %2268 = vtanh.f32 %v3013_v55 }
 0x22b   :  { %v2269_v48 = vpop.eup %2268 }
 0x22c   :  { %v483_v54 = vmul.f32 %v2269_v48, %v478_v50  ;;  %v3991_v50 = vld [vmem:[#allocation37_spill] sm:$0xff]  ;;  %v3992_v48 = vmov 0.0  }
 0x22e   :  { %485 = vst [vmem:[#allocation12 + $0x8] sm:$0xff] %v483_v54  ;;  %556 = vmatmul.mubr.f32.vlgmr.msra.gmra.mxu0 %v483_v54  ;;  %627 = vmatmul.mubr.f32.vlgmr.msra.gmra.mxu1 %v483_v54  ;;  %v3993_v54 = vld [vmem:[#allocation40_spill] sm:$0xff] }
 0x22f   :  { %663 = vmatpush1.msra.mxu0 %v2685_v2  ;;  %734 = vmatpush1.msra.mxu1 %v2701_v8 }
 0x230   :  { %664 = vmatprep.subr.mxu0 %v2687_v3  ;;  %735 = vmatprep.subr.mxu1 %v2703_v9 }
 0x231   :  { %665 = vmatpush1.msra.mxu0 %v2690_v4  ;;  %736 = vmatpush1.msra.mxu1 %v2709_v11 }
 0x232   :  { %666 = vmatprep.subr.mxu0 %v2693_v5  ;;  %737 = vmatprep.subr.mxu1 %v2715_v13 }
 0x233   :  { %667 = vmatpush1.msra.mxu0 %v2698_v7  ;;  %738 = vmatpush1.msra.mxu1 %v2717_v14 }
 0x234   :  { %668 = vmatprep.subr.mxu0 %v2706_v10  ;;  %739 = vmatprep.subr.mxu1 %v2723_v16 }
 0x235   :  { %669 = vmatpush1.msra.mxu0 %v2712_v12  ;;  %740 = vmatpush1.msra.mxu1 %v2729_v18 }
 0x236   :  { %670 = vmatprep.subr.mxu0 %v2720_v15  ;;  %741 = vmatprep.subr.mxu1 %v2735_v20 }
 0x237   :  { %671 = vmatpush1.msra.mxu0 %v2726_v17  ;;  %742 = vmatpush1.msra.mxu1 %v2741_v22 }
 0x238   :  { %672 = vmatprep.subr.mxu0 %v2732_v19  ;;  %743 = vmatprep.subr.mxu1 %v2747_v24 }
 0x239   :  { %673 = vmatpush1.msra.mxu0 %v2738_v21  ;;  %744 = vmatpush1.msra.mxu1 %v2753_v26 }
 0x23a   :  { %674 = vmatprep.subr.mxu0 %v2744_v23  ;;  %745 = vmatprep.subr.mxu1 %v2759_v28 }
 0x23b   :  { %675 = vmatpush1.msra.mxu0 %v2750_v25  ;;  %746 = vmatpush1.msra.mxu1 %v2765_v30 }
 0x23c   :  { %676 = vmatprep.subr.mxu0 %v2756_v27  ;;  %747 = vmatprep.subr.mxu1 %v2771_v32 }
 0x23d   :  { %677 = vmatpush1.msra.mxu0 %v2762_v29  ;;  %748 = vmatpush1.msra.mxu1 %v2777_v34 }
 0x23e   :  { %678 = vmatprep.subr.mxu0 %v2768_v31  ;;  %749 = vmatprep.subr.mxu1 %v2783_v36 }
 0x23f   :  { %679 = vmatpush1.msra.mxu0 %v2774_v33  ;;  %750 = vmatpush1.msra.mxu1 %v2789_v38 }
 0x240   :  { %680 = vmatprep.subr.mxu0 %v2780_v35  ;;  %751 = vmatprep.subr.mxu1 %v2795_v40 }
 0x241   :  { %681 = vmatpush1.msra.mxu0 %v2786_v37  ;;  %752 = vmatpush1.msra.mxu1 %v2801_v42 }
 0x242   :  { %682 = vmatprep.subr.mxu0 %v2792_v39  ;;  %753 = vmatprep.subr.mxu1 %v2807_v44 }
 0x243   :  { %683 = vmatpush1.msra.mxu0 %v2798_v41  ;;  %754 = vmatpush1.msra.mxu1 %v2813_v46 }
 0x244   :  { %684 = vmatprep.subr.mxu0 %v2804_v43  ;;  %755 = vmatprep.subr.mxu1 %v3974_v0 }
 0x245   :  { %685 = vmatpush1.msra.mxu0 %v3975_v1  ;;  %756 = vmatpush1.msra.mxu1 %v3976_v6 }
 0x246   :  { %686 = vmatprep.subr.mxu0 %v3977_v45  ;;  %757 = vmatprep.subr.mxu1 %v3978_v47 }
 0x247   :  { %687 = vmatpush1.msra.mxu0 %v3979_v63  ;;  %758 = vmatpush1.msra.mxu1 %v3980_v57 }
 0x248   :  { %688 = vmatprep.subr.mxu0 %v3981_v56  ;;  %759 = vmatprep.subr.mxu1 %v3982_v58 }
 0x249   :  { %689 = vmatpush1.msra.mxu0 %v3983_v51  ;;  %760 = vmatpush1.msra.mxu1 %v3984_v49  ;;  %v3994_v49 = vld [vmem:[#allocation20_spill] sm:$0xff]  ;;  %v488_v51 = vld [vmem:[#allocation4 + $0x48] sm:$0xff] }
 0x24a   :  { %690 = vmatprep.subr.mxu0 %v3985_v60  ;;  %761 = vmatprep.subr.mxu1 %v3986_v62  ;;  %v3995_v60 = vld [vmem:[#allocation21_spill] sm:$0xff] }
 0x24b   :  { %691 = vmatpush1.msra.mxu0 %v3987_v59  ;;  %762 = vmatpush1.msra.mxu1 %v3988_v61  ;;  %v487_v62 = vld [vmem:[#allocation4 + $0x40] sm:$0xff] }
 0x24c   :  { %692 = vmatprep.subr.mxu0 %v3989_v52  ;;  %763 = vmatprep.subr.mxu1 %v3990_v53  ;;  %v489_v53 = vld [vmem:[#allocation4 + $0x50] sm:$0xff] }
 0x24d   :  { %693 = vmatpush1.msra.mxu0 %v3991_v50  ;;  %726 = vmatprep.mubr.f32.mxu0 %v3992_v48 }
 0x24e   :  { %764 = vmatpush1.msra.mxu1 %v3993_v54  ;;  %797 = vmatprep.mubr.f32.mxu1 %v3992_v48  ;;  %v490_v54 = vld [vmem:[#allocation4 + $0x58] sm:$0xff] }
 0x24f   :  { %833 = vmatprep.subr.mxu0 %v3994_v49  ;;  %904 = vmatprep.subr.mxu1 %v3995_v60 }
 0x2ee   :  { %v557_v59 = vpop.f32.mrf.mxu0  ;;  %v628_v57 = vpop.f32.mrf.mxu1 }
 0x2ef   :  { %v633_v61 = vadd.f32 %v557_v59, %v487_v62  ;;  %v635_v63 = vadd.f32 %v628_v57, %v489_v53 }
 0x2f0   :  { %v559_v58 = vpop.f32.mrf.mxu0  ;;  %v630_v47 = vpop.f32.mrf.mxu1 }
 0x2f1   :  { %v637_v52 = vmul.f32 0.5, %v633_v61  ;;  %v634_v56 = vadd.f32 %v559_v58, %v488_v51  ;;  %v636_v48 = vadd.f32 %v630_v47, %v490_v54 }
 0x2f3   :  { %2270 = vtanh.f32 %v637_v52  ;;  %v641_v50 = vmul.f32 0.5, %v634_v56  ;;  %v646_v49 = vmul.f32 0.5, %v636_v48 }
 0x2f5   :  { %2272 = vtanh.f32 %v641_v50 }
 0x2f6   :  { %2274 = vtanh.f32 %v635_v63 }
 0x2f7   :  { %2276 = vtanh.f32 %v646_v49 }
 0x300   :  { %v2271_v45 = vpop.eup %2270 }
 0x301   :  { %v639_v60 = vmul.f32 0.5, %v2271_v45 }
 0x302   :  { %v2273_v6 = vpop.eup %2272 }
 0x303   :  { %v640_v1 = vadd.f32 0.5, %v639_v60  ;;  %v643_v0 = vmul.f32 0.5, %v2273_v6  ;;  %v2275_v59 = vpop.eup %2274 }
 0x304   :  { %v2277_v57 = vpop.eup %2276 }
 0x305   :  { %v644_v62 = vadd.f32 0.5, %v643_v0  ;;  %v651_v51 = vmul.f32 %v2275_v59, %v640_v1  ;;  %v648_v56 = vmul.f32 0.5, %v2277_v57  ;;  %v3156_v59 = vld [vmem:[#allocation7 + $0x1e0] sm:$0xff] }
 0x306   :  { %v3168_v57 = vld [vmem:[#allocation7 + $0x1c0] sm:$0xff] }
 0x307   :  { %v650_v58 = vmul.f32 %v644_v62, %v3013_v55  ;;  %v649_v63 = vadd.f32 0.5, %v648_v56  ;;  %v3171_v56 = vld [vmem:[#allocation7 + $0x1d0] sm:$0xff] }
 0x309   :  { %v3083_v61 = vadd.f32 %v651_v51, %v650_v58  ;;  %v3159_v58 = vld [vmem:[#allocation7 + $0x1f0] sm:$0xff]  ;;  %v3162_v51 = vld [vmem:[#allocation7 + $0x1c8] sm:$0xff] }
 0x30b   :  { %2278 = vtanh.f32 %v3083_v61 }
 0x318   :  { %v2279_v47 = vpop.eup %2278 }
 0x319   :  { %v654_v52 = vmul.f32 %v2279_v47, %v649_v63  ;;  %v3174_v63 = vld [vmem:[#allocation7 + $0x1a8] sm:$0xff]  ;;  %v3177_v47 = vld [vmem:[#allocation7 + $0x1b8] sm:$0xff] }
 0x31b   :  { %656 = vst [vmem:[#allocation12 + $0x10] sm:$0xff] %v654_v52  ;;  %727 = vmatmul.mubr.f32.vlgmr.msra.gmra.mxu0 %v654_v52  ;;  %798 = vmatmul.mubr.f32.vlgmr.msra.gmra.mxu1 %v654_v52  ;;  %v3180_v52 = vld [vmem:[#allocation7 + $0x1a0] sm:$0xff] }
 0x31c   :  { %834 = vmatpush1.msra.mxu0 %v2685_v2  ;;  %905 = vmatpush1.msra.mxu1 %v2701_v8  ;;  %v3996_v2 = vld [vmem:[#allocation24_spill] sm:$0xff]  ;;  %v4001_v8 = vld [vmem:[#allocation25_spill] sm:$0xff] }
 0x31d   :  { %835 = vmatprep.subr.mxu0 %v2687_v3  ;;  %906 = vmatprep.subr.mxu1 %v2703_v9  ;;  %v3997_v3 = vld [vmem:[#allocation22_spill] sm:$0xff] }
 0x31e   :  { %836 = vmatpush1.msra.mxu0 %v2690_v4  ;;  %907 = vmatpush1.msra.mxu1 %v2709_v11  ;;  %v3998_v4 = vld [vmem:[#allocation26_spill] sm:$0xff]  ;;  %v4004_v11 = vld [vmem:[#allocation32_spill] sm:$0xff] }
 0x31f   :  { %837 = vmatprep.subr.mxu0 %v2693_v5  ;;  %908 = vmatprep.subr.mxu1 %v2715_v13  ;;  %v3999_v5 = vld [vmem:[#allocation23_spill] sm:$0xff]  ;;  %v4002_v9 = vld [vmem:[#allocation30_spill] sm:$0xff] }
 0x320   :  { %838 = vmatpush1.msra.mxu0 %v2698_v7  ;;  %909 = vmatpush1.msra.mxu1 %v2717_v14  ;;  %v4000_v7 = vld [vmem:[#allocation28_spill] sm:$0xff]  ;;  %v4006_v13 = vld [vmem:[#allocation34_spill] sm:$0xff]  ;;  %v4007_v14 = vld [vmem:[#allocation31_spill] sm:$0xff] }
 0x321   :  { %839 = vmatprep.subr.mxu0 %v2706_v10  ;;  %910 = vmatprep.subr.mxu1 %v2723_v16  ;;  %v4003_v10 = vld [vmem:[#allocation27_spill] sm:$0xff]  ;;  %v4009_v16 = vld [vmem:[#allocation33_spill] sm:$0xff] }
 0x322   :  { %840 = vmatpush1.msra.mxu0 %v2712_v12  ;;  %911 = vmatpush1.msra.mxu1 %v2729_v18  ;;  %v4005_v12 = vld [vmem:[#allocation29_spill] sm:$0xff]  ;;  %v4011_v18 = vld [vmem:[#allocation35_spill] sm:$0xff] }
 0x323   :  { %841 = vmatprep.subr.mxu0 %v2720_v15  ;;  %912 = vmatprep.subr.mxu1 %v2735_v20  ;;  %v4008_v15 = vld [vmem:[#allocation36_spill] sm:$0xff]  ;;  %v4013_v20 = vld [vmem:[#allocation37_spill] sm:$0xff] }
 0x324   :  { %842 = vmatpush1.msra.mxu0 %v2726_v17  ;;  %913 = vmatpush1.msra.mxu1 %v2741_v22  ;;  %v4010_v17 = vld [vmem:[#allocation38_spill] sm:$0xff]  ;;  %v4015_v22 = vld [vmem:[#allocation40_spill] sm:$0xff] }
 0x325   :  { %843 = vmatprep.subr.mxu0 %v2732_v19  ;;  %914 = vmatprep.subr.mxu1 %v2747_v24  ;;  %v4012_v19 = vld [vmem:[#allocation39_spill] sm:$0xff]  ;;  %v4017_v24 = vld [vmem:[#allocation21_spill] sm:$0xff] }
 0x326   :  { %844 = vmatpush1.msra.mxu0 %v2738_v21  ;;  %915 = vmatpush1.msra.mxu1 %v2753_v26  ;;  %v4014_v21 = vmov 0.0  }
 0x327   :  { %845 = vmatprep.subr.mxu0 %v2744_v23  ;;  %916 = vmatprep.subr.mxu1 %v2759_v28  ;;  %v4016_v23 = vld [vmem:[#allocation20_spill] sm:$0xff] }
 0x328   :  { %846 = vmatpush1.msra.mxu0 %v2750_v25  ;;  %917 = vmatpush1.msra.mxu1 %v2765_v30  ;;  %v658_v25 = vld [vmem:[#allocation4 + $0x60] sm:$0xff] }
 0x329   :  { %847 = vmatprep.subr.mxu0 %v2756_v27  ;;  %918 = vmatprep.subr.mxu1 %v2771_v32  ;;  %v659_v27 = vld [vmem:[#allocation4 + $0x68] sm:$0xff]  ;;  %v660_v32 = vld [vmem:[#allocation4 + $0x70] sm:$0xff] }
 0x32a   :  { %848 = vmatpush1.msra.mxu0 %v2762_v29  ;;  %919 = vmatpush1.msra.mxu1 %v2777_v34 }
 0x32b   :  { %849 = vmatprep.subr.mxu0 %v2768_v31  ;;  %920 = vmatprep.subr.mxu1 %v2783_v36  ;;  %v661_v36 = vld [vmem:[#allocation4 + $0x78] sm:$0xff] }
 0x32c   :  { %850 = vmatpush1.msra.mxu0 %v2774_v33  ;;  %921 = vmatpush1.msra.mxu1 %v2789_v38 }
 0x32d   :  { %851 = vmatprep.subr.mxu0 %v2780_v35  ;;  %922 = vmatprep.subr.mxu1 %v2795_v40 }
 0x32e   :  { %852 = vmatpush1.msra.mxu0 %v2786_v37  ;;  %923 = vmatpush1.msra.mxu1 %v2801_v42 }
 0x32f   :  { %853 = vmatprep.subr.mxu0 %v2792_v39  ;;  %924 = vmatprep.subr.mxu1 %v2807_v44 }
 0x330   :  { %854 = vmatpush1.msra.mxu0 %v2798_v41  ;;  %925 = vmatpush1.msra.mxu1 %v2813_v46 }
 0x331   :  { %855 = vmatprep.subr.mxu0 %v2804_v43  ;;  %926 = vmatprep.subr.mxu1 %v3996_v2 }
 0x332   :  { %856 = vmatpush1.msra.mxu0 %v3997_v3  ;;  %927 = vmatpush1.msra.mxu1 %v3998_v4 }
 0x333   :  { %857 = vmatprep.subr.mxu0 %v3999_v5  ;;  %928 = vmatprep.subr.mxu1 %v4000_v7 }
 0x334   :  { %858 = vmatpush1.msra.mxu0 %v4001_v8  ;;  %929 = vmatpush1.msra.mxu1 %v4002_v9 }
 0x335   :  { %859 = vmatprep.subr.mxu0 %v4003_v10  ;;  %930 = vmatprep.subr.mxu1 %v4004_v11 }
 0x336   :  { %860 = vmatpush1.msra.mxu0 %v4005_v12  ;;  %931 = vmatpush1.msra.mxu1 %v4006_v13 }
 0x337   :  { %861 = vmatprep.subr.mxu0 %v4007_v14  ;;  %932 = vmatprep.subr.mxu1 %v4008_v15 }
 0x338   :  { %862 = vmatpush1.msra.mxu0 %v4009_v16  ;;  %933 = vmatpush1.msra.mxu1 %v4010_v17 }
 0x339   :  { %863 = vmatprep.subr.mxu0 %v4011_v18  ;;  %934 = vmatprep.subr.mxu1 %v4012_v19 }
 0x33a   :  { %864 = vmatpush1.msra.mxu0 %v4013_v20  ;;  %897 = vmatprep.mubr.f32.mxu0 %v4014_v21 }
 0x33b   :  { %935 = vmatpush1.msra.mxu1 %v4015_v22  ;;  %968 = vmatprep.mubr.f32.mxu1 %v4014_v21 }
 0x33c   :  { %1004 = vmatprep.subr.mxu0 %v4016_v23  ;;  %1075 = vmatprep.subr.mxu1 %v4017_v24  ;;  %v3183_v23 = vld [vmem:[#allocation7 + $0x1b0] sm:$0xff]  ;;  %v3186_v24 = vld [vmem:[#allocation7 + $0x188] sm:$0xff] }
 0x3db   :  { %v728_v26 = vpop.f32.mrf.mxu0  ;;  %v799_v33 = vpop.f32.mrf.mxu1 }
 0x3dc   :  { %v804_v28 = vadd.f32 %v728_v26, %v658_v25  ;;  %v806_v35 = vadd.f32 %v799_v33, %v660_v32  ;;  %v3189_v25 = vld [vmem:[#allocation7 + $0x198] sm:$0xff]  ;;  %v3192_v26 = vld [vmem:[#allocation7 + $0x180] sm:$0xff]  ;;  %v3210_v32 = vld [vmem:[#allocation7 + $0x148] sm:$0xff] }
 0x3dd   :  { %v730_v29 = vpop.f32.mrf.mxu0  ;;  %v801_v37 = vpop.f32.mrf.mxu1  ;;  %v3213_v33 = vld [vmem:[#allocation7 + $0x158] sm:$0xff] }
 0x3de   :  { %v808_v30 = vmul.f32 0.5, %v804_v28  ;;  %v805_v31 = vadd.f32 %v730_v29, %v659_v27  ;;  %v807_v38 = vadd.f32 %v801_v37, %v661_v36  ;;  %v3195_v27 = vld [vmem:[#allocation7 + $0x190] sm:$0xff]  ;;  %v3198_v28 = vld [vmem:[#allocation7 + $0x168] sm:$0xff]  ;;  %v3201_v29 = vld [vmem:[#allocation7 + $0x178] sm:$0xff] }
 0x3df   :  { %v3222_v36 = vld [vmem:[#allocation7 + $0x128] sm:$0xff]  ;;  %v3225_v37 = vld [vmem:[#allocation7 + $0x138] sm:$0xff] }
 0x3e0   :  { %2280 = vtanh.f32 %v808_v30  ;;  %v812_v34 = vmul.f32 0.5, %v805_v31  ;;  %v817_v39 = vmul.f32 0.5, %v807_v38  ;;  %v3204_v30 = vld [vmem:[#allocation7 + $0x160] sm:$0xff]  ;;  %v3207_v31 = vld [vmem:[#allocation7 + $0x170] sm:$0xff] }
 0x3e1   :  { %v3228_v38 = vld [vmem:[#allocation7 + $0x120] sm:$0xff] }
 0x3e2   :  { %2282 = vtanh.f32 %v812_v34  ;;  %v3216_v34 = vld [vmem:[#allocation7 + $0x140] sm:$0xff] }
 0x3e3   :  { %2284 = vtanh.f32 %v806_v35  ;;  %v3219_v35 = vld [vmem:[#allocation7 + $0x150] sm:$0xff] }
 0x3e4   :  { %2286 = vtanh.f32 %v817_v39  ;;  %v3231_v39 = vld [vmem:[#allocation7 + $0x130] sm:$0xff] }
 0x3ed   :  { %v2281_v40 = vpop.eup %2280 }
 0x3ee   :  { %v810_v41 = vmul.f32 0.5, %v2281_v40  ;;  %v3234_v40 = vld [vmem:[#allocation7 + $0x108] sm:$0xff] }
 0x3ef   :  { %v2283_v43 = vpop.eup %2282 }
 0x3f0   :  { %v811_v55 = vadd.f32 0.5, %v810_v41  ;;  %v814_v0 = vmul.f32 0.5, %v2283_v43  ;;  %v2285_v6 = vpop.eup %2284  ;;  %v3237_v41 = vld [vmem:[#allocation7 + $0x118] sm:$0xff]  ;;  %v3240_v43 = vld [vmem:[#allocation7 + $0x100] sm:$0xff] }
 0x3f1   :  { %v2287_v53 = vpop.eup %2286 }
 0x3f2   :  { %v815_v1 = vadd.f32 0.5, %v814_v0  ;;  %v822_v49 = vmul.f32 %v2285_v6, %v811_v55  ;;  %v819_v50 = vmul.f32 0.5, %v2287_v53  ;;  %v3243_v55 = vld [vmem:[#allocation7 + $0x110] sm:$0xff]  ;;  %v3246_v0 = vld [vmem:[#allocation7 + $0xe8] sm:$0xff]  ;;  %v3252_v6 = vld [vmem:[#allocation7 + $0xe0] sm:$0xff] }
 0x3f3   :  { %v3261_v53 = vld [vmem:[#allocation7 + $0xd8] sm:$0xff] }
 0x3f4   :  { %v821_v45 = vmul.f32 %v815_v1, %v3083_v61  ;;  %v820_v48 = vadd.f32 0.5, %v819_v50  ;;  %v3165_v61 = vld [vmem:[#allocation7 + $0x1d8] sm:$0xff]  ;;  %v3264_v50 = vld [vmem:[#allocation7 + $0xc0] sm:$0xff] }
 0x3f5   :  { %v3249_v1 = vld [vmem:[#allocation7 + $0xf8] sm:$0xff] }
 0x3f6   :  { %v3153_v60 = vadd.f32 %v822_v49, %v821_v45  ;;  %v3255_v45 = vld [vmem:[#allocation7 + $0xf0] sm:$0xff]  ;;  %v3258_v49 = vld [vmem:[#allocation7 + $0xc8] sm:$0xff] }
 0x3f8   :  { %2288 = vtanh.f32 %v3153_v60 }
 0x405   :  { %v2289_v54 = vpop.eup %2288 }
 0x406   :  { %v825_v62 = vmul.f32 %v2289_v54, %v820_v48  ;;  %v3268_v48 = vld [vmem:[#allocation7 + $0xa8] sm:$0xff]  ;;  %v3272_v54 = vld [vmem:[#allocation7 + $0xa0] sm:$0xff] }
 0x408   :  { %827 = vst [vmem:[#allocation12 + $0x18] sm:$0xff] %v825_v62  ;;  %898 = vmatmul.mubr.f32.vlgmr.msra.gmra.mxu0 %v825_v62  ;;  %969 = vmatmul.mubr.f32.vlgmr.msra.gmra.mxu1 %v825_v62  ;;  %v3276_v62 = vld [vmem:[#allocation7 + $0x88] sm:$0xff] }
 0x409   :  { %1005 = vmatpush1.msra.mxu0 %v3156_v59  ;;  %1076 = vmatpush1.msra.mxu1 %v3159_v58 }
 0x40a   :  { %1006 = vmatprep.subr.mxu0 %v3162_v51  ;;  %1077 = vmatprep.subr.mxu1 %v3165_v61 }
 0x40b   :  { %1007 = vmatpush1.msra.mxu0 %v3168_v57  ;;  %1078 = vmatpush1.msra.mxu1 %v3171_v56 }
 0x40c   :  { %1008 = vmatprep.subr.mxu0 %v3174_v63  ;;  %1079 = vmatprep.subr.mxu1 %v3177_v47 }
 0x40d   :  { %1009 = vmatpush1.msra.mxu0 %v3180_v52  ;;  %1080 = vmatpush1.msra.mxu1 %v3183_v23 }
 0x40e   :  { %1010 = vmatprep.subr.mxu0 %v3186_v24  ;;  %1081 = vmatprep.subr.mxu1 %v3189_v25 }
 0x40f   :  { %1011 = vmatpush1.msra.mxu0 %v3192_v26  ;;  %1082 = vmatpush1.msra.mxu1 %v3195_v27 }
 0x410   :  { %1012 = vmatprep.subr.mxu0 %v3198_v28  ;;  %1083 = vmatprep.subr.mxu1 %v3201_v29 }
 0x411   :  { %1013 = vmatpush1.msra.mxu0 %v3204_v30  ;;  %1084 = vmatpush1.msra.mxu1 %v3207_v31 }
 0x412   :  { %1014 = vmatprep.subr.mxu0 %v3210_v32  ;;  %1085 = vmatprep.subr.mxu1 %v3213_v33 }
 0x413   :  { %1015 = vmatpush1.msra.mxu0 %v3216_v34  ;;  %1086 = vmatpush1.msra.mxu1 %v3219_v35 }
 0x414   :  { %1016 = vmatprep.subr.mxu0 %v3222_v36  ;;  %1087 = vmatprep.subr.mxu1 %v3225_v37 }
 0x415   :  { %1017 = vmatpush1.msra.mxu0 %v3228_v38  ;;  %1088 = vmatpush1.msra.mxu1 %v3231_v39 }
 0x416   :  { %1018 = vmatprep.subr.mxu0 %v3234_v40  ;;  %1089 = vmatprep.subr.mxu1 %v3237_v41 }
 0x417   :  { %1019 = vmatpush1.msra.mxu0 %v3240_v43  ;;  %1090 = vmatpush1.msra.mxu1 %v3243_v55 }
 0x418   :  { %1020 = vmatprep.subr.mxu0 %v3246_v0  ;;  %1091 = vmatprep.subr.mxu1 %v3249_v1 }
 0x419   :  { %1021 = vmatpush1.msra.mxu0 %v3252_v6  ;;  %1092 = vmatpush1.msra.mxu1 %v3255_v45 }
 0x41a   :  { %1022 = vmatprep.subr.mxu0 %v3258_v49  ;;  %1093 = vmatprep.subr.mxu1 %v3261_v53 }
 0x41b   :  { %1023 = vmatpush1.msra.mxu0 %v3264_v50  ;;  %1094 = vmatpush1.msra.mxu1 %v2801_v42  ;;  %v3300_v42 = vld [vmem:[#allocation7 + $0x1e8] sm:$0xff] }
 0x41c   :  { %1024 = vmatprep.subr.mxu0 %v3268_v48  ;;  %1095 = vmatprep.subr.mxu1 %v2807_v44  ;;  %4018 = vst [vmem:[#allocation24_spill] sm:$0xff] %v3300_v42  ;;  %v3303_v44 = vld [vmem:[#allocation7 + $0x1f8] sm:$0xff] }
 0x41d   :  { %1025 = vmatpush1.msra.mxu0 %v3272_v54  ;;  %1096 = vmatpush1.msra.mxu1 %v2813_v46  ;;  %4019 = vst [vmem:[#allocation22_spill] sm:$0xff] %v3303_v44  ;;  %v829_v46 = vld [vmem:[#allocation4 + $0x80] sm:$0xff] }
 0x41e   :  { %1026 = vmatprep.subr.mxu0 %v3276_v62  ;;  %1097 = vmatprep.subr.mxu1 %v3996_v2 }
 0x41f   :  { %1027 = vmatpush1.msra.mxu0 %v3997_v3  ;;  %1098 = vmatpush1.msra.mxu1 %v3998_v4  ;;  %v830_v3 = vld [vmem:[#allocation4 + $0x88] sm:$0xff] }
 0x420   :  { %1028 = vmatprep.subr.mxu0 %v3999_v5  ;;  %1099 = vmatprep.subr.mxu1 %v4000_v7 }
 0x421   :  { %1029 = vmatpush1.msra.mxu0 %v4001_v8  ;;  %1100 = vmatpush1.msra.mxu1 %v4002_v9  ;;  %v831_v9 = vld [vmem:[#allocation4 + $0x90] sm:$0xff] }
 0x422   :  { %1030 = vmatprep.subr.mxu0 %v4003_v10  ;;  %1101 = vmatprep.subr.mxu1 %v4004_v11 }
 0x423   :  { %1031 = vmatpush1.msra.mxu0 %v4005_v12  ;;  %1102 = vmatpush1.msra.mxu1 %v4006_v13  ;;  %v832_v13 = vld [vmem:[#allocation4 + $0x98] sm:$0xff] }
 0x424   :  { %1032 = vmatprep.subr.mxu0 %v4007_v14  ;;  %1103 = vmatprep.subr.mxu1 %v4008_v15 }
 0x425   :  { %1033 = vmatpush1.msra.mxu0 %v4009_v16  ;;  %1104 = vmatpush1.msra.mxu1 %v4010_v17 }
 0x426   :  { %1034 = vmatprep.subr.mxu0 %v4011_v18  ;;  %1105 = vmatprep.subr.mxu1 %v4012_v19 }
 0x427   :  { %1035 = vmatpush1.msra.mxu0 %v4013_v20  ;;  %1068 = vmatprep.mubr.f32.mxu0 %v4014_v21 }
 0x428   :  { %1106 = vmatpush1.msra.mxu1 %v4015_v22  ;;  %1139 = vmatprep.mubr.f32.mxu1 %v4014_v21 }
 0x429   :  { %1175 = vmatprep.subr.mxu0 %v3300_v42  ;;  %1246 = vmatprep.subr.mxu1 %v3303_v44 }
 0x4c8   :  { %v899_v2 = vpop.f32.mrf.mxu0  ;;  %v970_v10 = vpop.f32.mrf.mxu1 }
 0x4c9   :  { %v975_v4 = vadd.f32 %v899_v2, %v829_v46  ;;  %v977_v12 = vadd.f32 %v970_v10, %v831_v9 }
 0x4ca   :  { %v901_v5 = vpop.f32.mrf.mxu0  ;;  %v972_v14 = vpop.f32.mrf.mxu1 }
 0x4cb   :  { %v979_v7 = vmul.f32 0.5, %v975_v4  ;;  %v976_v8 = vadd.f32 %v901_v5, %v830_v3  ;;  %v978_v15 = vadd.f32 %v972_v14, %v832_v13  ;;  %v3355_v13 = vld [vmem:[#allocation7 + $0xb0] sm:$0xff]  ;;  %v3359_v14 = vld [vmem:[#allocation7 + $0x98] sm:$0xff] }
 0x4cc   :  { %4020 = vst [vmem:[#allocation26_spill] sm:$0xff] %v3359_v14 }
 0x4cd   :  { %2290 = vtanh.f32 %v979_v7  ;;  %v983_v11 = vmul.f32 0.5, %v976_v8  ;;  %v988_v16 = vmul.f32 0.5, %v978_v15  ;;  %v3362_v15 = vld [vmem:[#allocation7 + $0x80] sm:$0xff] }
 0x4ce   :  { %4021 = vst [vmem:[#allocation23_spill] sm:$0xff] %v3362_v15 }
 0x4cf   :  { %2292 = vtanh.f32 %v983_v11 }
 0x4d0   :  { %2294 = vtanh.f32 %v977_v12  ;;  %v3351_v12 = vld [vmem:[#allocation7 + $0xb8] sm:$0xff] }
 0x4d1   :  { %2296 = vtanh.f32 %v988_v16  ;;  %v3365_v16 = vld [vmem:[#allocation7 + $0x90] sm:$0xff] }
 0x4d2   :  { %4022 = vst [vmem:[#allocation28_spill] sm:$0xff] %v3365_v16 }
 0x4da   :  { %v2291_v17 = vpop.eup %2290 }
 0x4db   :  { %v981_v18 = vmul.f32 0.5, %v2291_v17  ;;  %v3368_v17 = vld [vmem:[#allocation7 + $0x68] sm:$0xff] }
 0x4dc   :  { %v2293_v19 = vpop.eup %2292  ;;  %4023 = vst [vmem:[#allocation25_spill] sm:$0xff] %v3368_v17 }
 0x4dd   :  { %v982_v20 = vadd.f32 0.5, %v981_v18  ;;  %v985_v22 = vmul.f32 0.5, %v2293_v19  ;;  %v2295_v2 = vpop.eup %2294  ;;  %v3371_v18 = vld [vmem:[#allocation7 + $0x78] sm:$0xff]  ;;  %v3374_v19 = vld [vmem:[#allocation7 + $0x60] sm:$0xff] }
 0x4de   :  { %v2297_v7 = vpop.eup %2296  ;;  %4024 = vst [vmem:[#allocation30_spill] sm:$0xff] %v3371_v18  ;;  %4025 = vst [vmem:[#allocation27_spill] sm:$0xff] %v3374_v19 }
 0x4df   :  { %v986_v46 = vadd.f32 0.5, %v985_v22  ;;  %v993_v4 = vmul.f32 %v2295_v2, %v982_v20  ;;  %v990_v8 = vmul.f32 0.5, %v2297_v7  ;;  %v3377_v20 = vld [vmem:[#allocation7 + $0x70] sm:$0xff]  ;;  %v3380_v22 = vld [vmem:[#allocation7 + $0x48] sm:$0xff]  ;;  %v3386_v2 = vld [vmem:[#allocation7 + $0x40] sm:$0xff] }
 0x4e0   :  { %4026 = vst [vmem:[#allocation32_spill] sm:$0xff] %v3377_v20  ;;  %4027 = vst [vmem:[#allocation29_spill] sm:$0xff] %v3380_v22  ;;  %v3395_v7 = vld [vmem:[#allocation7 + $0x38] sm:$0xff] }
 0x4e1   :  { %v992_v3 = vmul.f32 %v986_v46, %v3153_v60  ;;  %v991_v9 = vadd.f32 0.5, %v990_v8  ;;  %v3347_v60 = vld [vmem:[#allocation7 + $0xd0] sm:$0xff]  ;;  %v3383_v46 = vld [vmem:[#allocation7 + $0x58] sm:$0xff]  ;;  %4029 = vst [vmem:[#allocation31_spill] sm:$0xff] %v3386_v2  ;;  %4032 = vst [vmem:[#allocation38_spill] sm:$0xff] %v3395_v7 }
 0x4e2   :  { %4028 = vst [vmem:[#allocation34_spill] sm:$0xff] %v3383_v46  ;;  %v3398_v8 = vld [vmem:[#allocation7 + $0x20] sm:$0xff] }
 0x4e3   :  { %v3307_v5 = vadd.f32 %v993_v4, %v992_v3  ;;  %v3389_v3 = vld [vmem:[#allocation7 + $0x50] sm:$0xff]  ;;  %v3392_v4 = vld [vmem:[#allocation7 + $0x28] sm:$0xff]  ;;  %4033 = vst [vmem:[#allocation35_spill] sm:$0xff] %v3398_v8 }
 0x4e4   :  { %4030 = vst [vmem:[#allocation36_spill] sm:$0xff] %v3389_v3  ;;  %4031 = vst [vmem:[#allocation33_spill] sm:$0xff] %v3392_v4 }
 0x4e5   :  { %2298 = vtanh.f32 %v3307_v5 }
 0x4f2   :  { %v2299_v10 = vpop.eup %2298 }
 0x4f3   :  { %v996_v11 = vmul.f32 %v2299_v10, %v991_v9  ;;  %v3401_v9 = vld [vmem:[#allocation7 + $0x30] sm:$0xff]  ;;  %v3404_v10 = vld [vmem:[#allocation7 + $0x8] sm:$0xff] }
 0x4f4   :  { %4034 = vst [vmem:[#allocation39_spill] sm:$0xff] %v3401_v9  ;;  %4035 = vst [vmem:[#allocation37_spill] sm:$0xff] %v3404_v10 }
 0x4f5   :  { %998 = vst [vmem:[#allocation12 + $0x20] sm:$0xff] %v996_v11  ;;  %1069 = vmatmul.mubr.f32.vlgmr.msra.gmra.mxu0 %v996_v11  ;;  %1140 = vmatmul.mubr.f32.vlgmr.msra.gmra.mxu1 %v996_v11  ;;  %v3407_v11 = vld [vmem:[#allocation7 + $0x18] sm:$0xff] }
 0x4f6   :  { %1176 = vmatpush1.msra.mxu0 %v3156_v59  ;;  %1247 = vmatpush1.msra.mxu1 %v3159_v58  ;;  %4036 = vst [vmem:[#allocation40_spill] sm:$0xff] %v3407_v11 }
 0x4f7   :  { %1177 = vmatprep.subr.mxu0 %v3162_v51  ;;  %1248 = vmatprep.subr.mxu1 %v3165_v61 }
 0x4f8   :  { %1178 = vmatpush1.msra.mxu0 %v3168_v57  ;;  %1249 = vmatpush1.msra.mxu1 %v3171_v56 }
 0x4f9   :  { %1179 = vmatprep.subr.mxu0 %v3174_v63  ;;  %1250 = vmatprep.subr.mxu1 %v3177_v47 }
 0x4fa   :  { %1180 = vmatpush1.msra.mxu0 %v3180_v52  ;;  %1251 = vmatpush1.msra.mxu1 %v3183_v23 }
 0x4fb   :  { %1181 = vmatprep.subr.mxu0 %v3186_v24  ;;  %1252 = vmatprep.subr.mxu1 %v3189_v25 }
 0x4fc   :  { %1182 = vmatpush1.msra.mxu0 %v3192_v26  ;;  %1253 = vmatpush1.msra.mxu1 %v3195_v27 }
 0x4fd   :  { %1183 = vmatprep.subr.mxu0 %v3198_v28  ;;  %1254 = vmatprep.subr.mxu1 %v3201_v29 }
 0x4fe   :  { %1184 = vmatpush1.msra.mxu0 %v3204_v30  ;;  %1255 = vmatpush1.msra.mxu1 %v3207_v31 }
 0x4ff   :  { %1185 = vmatprep.subr.mxu0 %v3210_v32  ;;  %1256 = vmatprep.subr.mxu1 %v3213_v33 }
 0x500   :  { %1186 = vmatpush1.msra.mxu0 %v3216_v34  ;;  %1257 = vmatpush1.msra.mxu1 %v3219_v35 }
 0x501   :  { %1187 = vmatprep.subr.mxu0 %v3222_v36  ;;  %1258 = vmatprep.subr.mxu1 %v3225_v37 }
 0x502   :  { %1188 = vmatpush1.msra.mxu0 %v3228_v38  ;;  %1259 = vmatpush1.msra.mxu1 %v3231_v39 }
 0x503   :  { %1189 = vmatprep.subr.mxu0 %v3234_v40  ;;  %1260 = vmatprep.subr.mxu1 %v3237_v41 }
 0x504   :  { %1190 = vmatpush1.msra.mxu0 %v3240_v43  ;;  %1261 = vmatpush1.msra.mxu1 %v3243_v55 }
 0x505   :  { %1191 = vmatprep.subr.mxu0 %v3246_v0  ;;  %1262 = vmatprep.subr.mxu1 %v3249_v1 }
 0x506   :  { %1192 = vmatpush1.msra.mxu0 %v3252_v6  ;;  %1263 = vmatpush1.msra.mxu1 %v3255_v45 }
 0x507   :  { %1193 = vmatprep.subr.mxu0 %v3258_v49  ;;  %1264 = vmatprep.subr.mxu1 %v3261_v53 }
 0x508   :  { %1194 = vmatpush1.msra.mxu0 %v3264_v50  ;;  %1265 = vmatpush1.msra.mxu1 %v3347_v60 }
 0x509   :  { %1195 = vmatprep.subr.mxu0 %v3268_v48  ;;  %1266 = vmatprep.subr.mxu1 %v3351_v12 }
 0x50a   :  { %1196 = vmatpush1.msra.mxu0 %v3272_v54  ;;  %1267 = vmatpush1.msra.mxu1 %v3355_v13 }
 0x50b   :  { %1197 = vmatprep.subr.mxu0 %v3276_v62  ;;  %1268 = vmatprep.subr.mxu1 %v3359_v14 }
 0x50c   :  { %1198 = vmatpush1.msra.mxu0 %v3362_v15  ;;  %1269 = vmatpush1.msra.mxu1 %v3365_v16 }
 0x50d   :  { %1199 = vmatprep.subr.mxu0 %v3368_v17  ;;  %1270 = vmatprep.subr.mxu1 %v3371_v18 }
 0x50e   :  { %1200 = vmatpush1.msra.mxu0 %v3374_v19  ;;  %1271 = vmatpush1.msra.mxu1 %v3377_v20 }
 0x50f   :  { %1201 = vmatprep.subr.mxu0 %v3380_v22  ;;  %1272 = vmatprep.subr.mxu1 %v3383_v46 }
 0x510   :  { %1202 = vmatpush1.msra.mxu0 %v3386_v2  ;;  %1273 = vmatpush1.msra.mxu1 %v3389_v3 }
 0x511   :  { %1203 = vmatprep.subr.mxu0 %v3392_v4  ;;  %1274 = vmatprep.subr.mxu1 %v3395_v7  ;;  %v3410_v4 = vld [vmem:[#allocation7] sm:$0xff]  ;;  %v3414_v7 = vld [vmem:[#allocation7 + $0x10] sm:$0xff] }
 0x512   :  { %1204 = vmatpush1.msra.mxu0 %v3398_v8  ;;  %1275 = vmatpush1.msra.mxu1 %v3401_v9  ;;  %4037 = vst [vmem:[#allocation20_spill] sm:$0xff] %v3410_v4  ;;  %4038 = vst [vmem:[#allocation21_spill] sm:$0xff] %v3414_v7  ;;  %v1001_v8 = vld [vmem:[#allocation4 + $0xa8] sm:$0xff] }
 0x513   :  { %1205 = vmatprep.subr.mxu0 %v3404_v10  ;;  %1276 = vmatprep.subr.mxu1 %v3407_v11  ;;  %v1000_v10 = vld [vmem:[#allocation4 + $0xa0] sm:$0xff] }
 0x514   :  { %1206 = vmatpush1.msra.mxu0 %v3410_v4  ;;  %1239 = vmatprep.mubr.f32.mxu0 %v4014_v21  ;;  %v1002_v4 = vld [vmem:[#allocation4 + $0xb0] sm:$0xff] }
 0x515   :  { %1277 = vmatpush1.msra.mxu1 %v3414_v7  ;;  %1310 = vmatprep.mubr.f32.mxu1 %v4014_v21  ;;  %v1003_v7 = vld [vmem:[#allocation4 + $0xb8] sm:$0xff] }
 0x516   :  { %1346 = vmatprep.subr.mxu0 %v3300_v42  ;;  %1417 = vmatprep.subr.mxu1 %v3303_v44 }
 0x5b5   :  { %v1070_v9 = vpop.f32.mrf.mxu0  ;;  %v1141_v22 = vpop.f32.mrf.mxu1 }
 0x5b6   :  { %v1146_v11 = vadd.f32 %v1070_v9, %v1000_v10  ;;  %v1148_v19 = vadd.f32 %v1141_v22, %v1002_v4  ;;  %v4047_v4 = vld [vmem:[#allocation34_spill] sm:$0xff] }
 0x5b7   :  { %v1072_v3 = vpop.f32.mrf.mxu0  ;;  %v1143_v18 = vpop.f32.mrf.mxu1 }
 0x5b8   :  { %v1150_v2 = vmul.f32 0.5, %v1146_v11  ;;  %v1147_v46 = vadd.f32 %v1072_v3, %v1001_v8  ;;  %v1149_v21 = vadd.f32 %v1143_v18, %v1003_v7  ;;  %v4048_v7 = vld [vmem:[#allocation31_spill] sm:$0xff]  ;;  %v4049_v11 = vld [vmem:[#allocation36_spill] sm:$0xff] }
 0x5ba   :  { %2300 = vtanh.f32 %v1150_v2  ;;  %v1154_v20 = vmul.f32 0.5, %v1147_v46  ;;  %v1159_v42 = vmul.f32 0.5, %v1149_v21  ;;  %v4046_v46 = vld [vmem:[#allocation29_spill] sm:$0xff] }
 0x5bc   :  { %2302 = vtanh.f32 %v1154_v20 }
 0x5bd   :  { %2304 = vtanh.f32 %v1148_v19 }
 0x5be   :  { %2306 = vtanh.f32 %v1159_v42  ;;  %v4039_v42 = vld [vmem:[#allocation26_spill] sm:$0xff] }
 0x5c7   :  { %v2301_v17 = vpop.eup %2300 }
 0x5c8   :  { %v1152_v44 = vmul.f32 0.5, %v2301_v17  ;;  %v4045_v17 = vld [vmem:[#allocation32_spill] sm:$0xff] }
 0x5c9   :  { %v2303_v16 = vpop.eup %2302 }
 0x5ca   :  { %v1153_v15 = vadd.f32 0.5, %v1152_v44  ;;  %v1156_v14 = vmul.f32 0.5, %v2303_v16  ;;  %v2305_v10 = vpop.eup %2304  ;;  %v4040_v44 = vld [vmem:[#allocation23_spill] sm:$0xff] }
 0x5cb   :  { %v2307_v20 = vpop.eup %2306  ;;  %v4044_v16 = vld [vmem:[#allocation27_spill] sm:$0xff] }
 0x5cc   :  { %v1157_v9 = vadd.f32 0.5, %v1156_v14  ;;  %v1164_v8 = vmul.f32 %v2305_v10, %v1153_v15  ;;  %v1161_v22 = vmul.f32 0.5, %v2307_v20  ;;  %v4042_v14 = vld [vmem:[#allocation25_spill] sm:$0xff]  ;;  %v4043_v15 = vld [vmem:[#allocation30_spill] sm:$0xff] }
 0x5cd   :  { %v4051_v10 = vld [vmem:[#allocation38_spill] sm:$0xff]  ;;  %v4054_v20 = vld [vmem:[#allocation37_spill] sm:$0xff] }
 0x5ce   :  { %v1163_v3 = vmul.f32 %v1157_v9, %v3307_v5  ;;  %v1162_v19 = vadd.f32 0.5, %v1161_v22  ;;  %v4041_v5 = vld [vmem:[#allocation28_spill] sm:$0xff]  ;;  %v4050_v9 = vld [vmem:[#allocation33_spill] sm:$0xff] }
 0x5cf   :  { %v4055_v22 = vld [vmem:[#allocation40_spill] sm:$0xff] }
 0x5d0   :  { %v3421_v2 = vadd.f32 %v1164_v8, %v1163_v3  ;;  %v4052_v3 = vld [vmem:[#allocation35_spill] sm:$0xff] }
 0x5d1   :  { %v4053_v8 = vld [vmem:[#allocation39_spill] sm:$0xff] }
 0x5d2   :  { %2308 = vtanh.f32 %v3421_v2 }
 0x5df   :  { %v2309_v18 = vpop.eup %2308 }
 0x5e0   :  { %v1167_v21 = vmul.f32 %v2309_v18, %v1162_v19  ;;  %v4056_v19 = vld [vmem:[#allocation20_spill] sm:$0xff]  ;;  %v4057_v18 = vmov 0.0  }
 0x5e2   :  { %1169 = vst [vmem:[#allocation12 + $0x28] sm:$0xff] %v1167_v21  ;;  %1240 = vmatmul.mubr.f32.vlgmr.msra.gmra.mxu0 %v1167_v21  ;;  %1311 = vmatmul.mubr.f32.vlgmr.msra.gmra.mxu1 %v1167_v21  ;;  %v4058_v21 = vld [vmem:[#allocation21_spill] sm:$0xff] }
 0x5e3   :  { %1347 = vmatpush1.msra.mxu0 %v3156_v59  ;;  %1418 = vmatpush1.msra.mxu1 %v3159_v58 }
 0x5e4   :  { %1348 = vmatprep.subr.mxu0 %v3162_v51  ;;  %1419 = vmatprep.subr.mxu1 %v3165_v61 }
 0x5e5   :  { %1349 = vmatpush1.msra.mxu0 %v3168_v57  ;;  %1420 = vmatpush1.msra.mxu1 %v3171_v56 }
 0x5e6   :  { %1350 = vmatprep.subr.mxu0 %v3174_v63  ;;  %1421 = vmatprep.subr.mxu1 %v3177_v47 }
 0x5e7   :  { %1351 = vmatpush1.msra.mxu0 %v3180_v52  ;;  %1422 = vmatpush1.msra.mxu1 %v3183_v23 }
 0x5e8   :  { %1352 = vmatprep.subr.mxu0 %v3186_v24  ;;  %1423 = vmatprep.subr.mxu1 %v3189_v25 }
 0x5e9   :  { %1353 = vmatpush1.msra.mxu0 %v3192_v26  ;;  %1424 = vmatpush1.msra.mxu1 %v3195_v27 }
 0x5ea   :  { %1354 = vmatprep.subr.mxu0 %v3198_v28  ;;  %1425 = vmatprep.subr.mxu1 %v3201_v29 }
 0x5eb   :  { %1355 = vmatpush1.msra.mxu0 %v3204_v30  ;;  %1426 = vmatpush1.msra.mxu1 %v3207_v31 }
 0x5ec   :  { %1356 = vmatprep.subr.mxu0 %v3210_v32  ;;  %1427 = vmatprep.subr.mxu1 %v3213_v33 }
 0x5ed   :  { %1357 = vmatpush1.msra.mxu0 %v3216_v34  ;;  %1428 = vmatpush1.msra.mxu1 %v3219_v35 }
 0x5ee   :  { %1358 = vmatprep.subr.mxu0 %v3222_v36  ;;  %1429 = vmatprep.subr.mxu1 %v3225_v37 }
 0x5ef   :  { %1359 = vmatpush1.msra.mxu0 %v3228_v38  ;;  %1430 = vmatpush1.msra.mxu1 %v3231_v39 }
 0x5f0   :  { %1360 = vmatprep.subr.mxu0 %v3234_v40  ;;  %1431 = vmatprep.subr.mxu1 %v3237_v41 }
 0x5f1   :  { %1361 = vmatpush1.msra.mxu0 %v3240_v43  ;;  %1432 = vmatpush1.msra.mxu1 %v3243_v55 }
 0x5f2   :  { %1362 = vmatprep.subr.mxu0 %v3246_v0  ;;  %1433 = vmatprep.subr.mxu1 %v3249_v1 }
 0x5f3   :  { %1363 = vmatpush1.msra.mxu0 %v3252_v6  ;;  %1434 = vmatpush1.msra.mxu1 %v3255_v45 }
 0x5f4   :  { %1364 = vmatprep.subr.mxu0 %v3258_v49  ;;  %1435 = vmatprep.subr.mxu1 %v3261_v53 }
 0x5f5   :  { %1365 = vmatpush1.msra.mxu0 %v3264_v50  ;;  %1436 = vmatpush1.msra.mxu1 %v3347_v60 }
 0x5f6   :  { %1366 = vmatprep.subr.mxu0 %v3268_v48  ;;  %1437 = vmatprep.subr.mxu1 %v3351_v12 }
 0x5f7   :  { %1367 = vmatpush1.msra.mxu0 %v3272_v54  ;;  %1438 = vmatpush1.msra.mxu1 %v3355_v13 }
 0x5f8   :  { %1368 = vmatprep.subr.mxu0 %v3276_v62  ;;  %1439 = vmatprep.subr.mxu1 %v4039_v42 }
 0x5f9   :  { %1369 = vmatpush1.msra.mxu0 %v4040_v44  ;;  %1440 = vmatpush1.msra.mxu1 %v4041_v5 }
 0x5fa   :  { %1370 = vmatprep.subr.mxu0 %v4042_v14  ;;  %1441 = vmatprep.subr.mxu1 %v4043_v15 }
 0x5fb   :  { %1371 = vmatpush1.msra.mxu0 %v4044_v16  ;;  %1442 = vmatpush1.msra.mxu1 %v4045_v17 }
 0x5fc   :  { %1372 = vmatprep.subr.mxu0 %v4046_v46  ;;  %1443 = vmatprep.subr.mxu1 %v4047_v4 }
 0x5fd   :  { %1373 = vmatpush1.msra.mxu0 %v4048_v7  ;;  %1444 = vmatpush1.msra.mxu1 %v4049_v11  ;;  %v4059_v11 = vld [vmem:[#allocation24_spill] sm:$0xff]  ;;  %v1172_v7 = vld [vmem:[#allocation4 + $0xc8] sm:$0xff] }
 0x5fe   :  { %1374 = vmatprep.subr.mxu0 %v4050_v9  ;;  %1445 = vmatprep.subr.mxu1 %v4051_v10  ;;  %v4060_v9 = vld [vmem:[#allocation22_spill] sm:$0xff]  ;;  %v1171_v10 = vld [vmem:[#allocation4 + $0xc0] sm:$0xff] }
 0x5ff   :  { %1375 = vmatpush1.msra.mxu0 %v4052_v3  ;;  %1446 = vmatpush1.msra.mxu1 %v4053_v8 }
 0x600   :  { %1376 = vmatprep.subr.mxu0 %v4054_v20  ;;  %1447 = vmatprep.subr.mxu1 %v4055_v22  ;;  %v1173_v22 = vld [vmem:[#allocation4 + $0xd0] sm:$0xff] }
 0x601   :  { %1377 = vmatpush1.msra.mxu0 %v4056_v19  ;;  %1410 = vmatprep.mubr.f32.mxu0 %v4057_v18 }
 0x602   :  { %1448 = vmatpush1.msra.mxu1 %v4058_v21  ;;  %1481 = vmatprep.mubr.f32.mxu1 %v4057_v18  ;;  %v1174_v21 = vld [vmem:[#allocation4 + $0xd8] sm:$0xff] }
 0x603   :  { %1517 = vmatprep.subr.mxu0 %v4059_v11  ;;  %1588 = vmatprep.subr.mxu1 %v4060_v9 }
 0x6a2   :  { %v1241_v3 = vpop.f32.mrf.mxu0  ;;  %v1312_v17 = vpop.f32.mrf.mxu1 }
 0x6a3   :  { %v1317_v8 = vadd.f32 %v1241_v3, %v1171_v10  ;;  %v1319_v16 = vadd.f32 %v1312_v17, %v1173_v22  ;;  %v4068_v22 = vld [vmem:[#allocation29_spill] sm:$0xff] }
 0x6a4   :  { %v1243_v4 = vpop.f32.mrf.mxu0  ;;  %v1314_v15 = vpop.f32.mrf.mxu1 }
 0x6a5   :  { %v1321_v20 = vmul.f32 0.5, %v1317_v8  ;;  %v1318_v46 = vadd.f32 %v1243_v4, %v1172_v7  ;;  %v1320_v18 = vadd.f32 %v1314_v15, %v1174_v21  ;;  %v4071_v21 = vld [vmem:[#allocation36_spill] sm:$0xff] }
 0x6a7   :  { %2310 = vtanh.f32 %v1321_v20  ;;  %v1325_v19 = vmul.f32 0.5, %v1318_v46  ;;  %v1330_v11 = vmul.f32 0.5, %v1320_v18  ;;  %v4070_v18 = vld [vmem:[#allocation31_spill] sm:$0xff] }
 0x6a9   :  { %2312 = vtanh.f32 %v1325_v19  ;;  %v4069_v19 = vld [vmem:[#allocation34_spill] sm:$0xff] }
 0x6aa   :  { %2314 = vtanh.f32 %v1319_v16 }
 0x6ab   :  { %2316 = vtanh.f32 %v1330_v11  ;;  %v4066_v11 = vld [vmem:[#allocation27_spill] sm:$0xff] }
 0x6b4   :  { %v2311_v14 = vpop.eup %2310 }
 0x6b5   :  { %v1323_v9 = vmul.f32 0.5, %v2311_v14  ;;  %v4065_v14 = vld [vmem:[#allocation30_spill] sm:$0xff] }
 0x6b6   :  { %v2313_v5 = vpop.eup %2312 }
 0x6b7   :  { %v1324_v44 = vadd.f32 0.5, %v1323_v9  ;;  %v1327_v42 = vmul.f32 0.5, %v2313_v5  ;;  %v2315_v3 = vpop.eup %2314  ;;  %v4064_v5 = vld [vmem:[#allocation25_spill] sm:$0xff]  ;;  %v4067_v9 = vld [vmem:[#allocation32_spill] sm:$0xff] }
 0x6b8   :  { %v2317_v17 = vpop.eup %2316 }
 0x6b9   :  { %v1328_v10 = vadd.f32 0.5, %v1327_v42  ;;  %v1335_v7 = vmul.f32 %v2315_v3, %v1324_v44  ;;  %v1332_v46 = vmul.f32 0.5, %v2317_v17  ;;  %v4062_v42 = vld [vmem:[#allocation23_spill] sm:$0xff]  ;;  %v4063_v44 = vld [vmem:[#allocation28_spill] sm:$0xff]  ;;  %v4073_v3 = vld [vmem:[#allocation38_spill] sm:$0xff] }
 0x6ba   :  { %v4076_v17 = vld [vmem:[#allocation37_spill] sm:$0xff] }
 0x6bb   :  { %v1334_v4 = vmul.f32 %v1328_v10, %v3421_v2  ;;  %v1333_v16 = vadd.f32 0.5, %v1332_v46  ;;  %v4061_v2 = vld [vmem:[#allocation26_spill] sm:$0xff]  ;;  %v4072_v10 = vld [vmem:[#allocation33_spill] sm:$0xff]  ;;  %v4077_v46 = vld [vmem:[#allocation40_spill] sm:$0xff] }
 0x6bd   :  { %v3491_v8 = vadd.f32 %v1335_v7, %v1334_v4  ;;  %v4074_v4 = vld [vmem:[#allocation35_spill] sm:$0xff] }
 0x6be   :  { %v4075_v7 = vld [vmem:[#allocation39_spill] sm:$0xff] }
 0x6bf   :  { %2318 = vtanh.f32 %v3491_v8 }
 0x6cc   :  { %v2319_v15 = vpop.eup %2318 }
 0x6cd   :  { %v1338_v20 = vmul.f32 %v2319_v15, %v1333_v16  ;;  %v4078_v16 = vld [vmem:[#allocation20_spill] sm:$0xff]  ;;  %v4079_v15 = vmov 0.0  }
 0x6cf   :  { %1340 = vst [vmem:[#allocation12 + $0x30] sm:$0xff] %v1338_v20  ;;  %1411 = vmatmul.mubr.f32.vlgmr.msra.gmra.mxu0 %v1338_v20  ;;  %1482 = vmatmul.mubr.f32.vlgmr.msra.gmra.mxu1 %v1338_v20  ;;  %v4080_v20 = vld [vmem:[#allocation21_spill] sm:$0xff] }
 0x6d0   :  { %1518 = vmatpush1.msra.mxu0 %v3156_v59  ;;  %1589 = vmatpush1.msra.mxu1 %v3159_v58 }
 0x6d1   :  { %1519 = vmatprep.subr.mxu0 %v3162_v51  ;;  %1590 = vmatprep.subr.mxu1 %v3165_v61 }
 0x6d2   :  { %1520 = vmatpush1.msra.mxu0 %v3168_v57  ;;  %1591 = vmatpush1.msra.mxu1 %v3171_v56 }
 0x6d3   :  { %1521 = vmatprep.subr.mxu0 %v3174_v63  ;;  %1592 = vmatprep.subr.mxu1 %v3177_v47 }
 0x6d4   :  { %1522 = vmatpush1.msra.mxu0 %v3180_v52  ;;  %1593 = vmatpush1.msra.mxu1 %v3183_v23 }
 0x6d5   :  { %1523 = vmatprep.subr.mxu0 %v3186_v24  ;;  %1594 = vmatprep.subr.mxu1 %v3189_v25 }
 0x6d6   :  { %1524 = vmatpush1.msra.mxu0 %v3192_v26  ;;  %1595 = vmatpush1.msra.mxu1 %v3195_v27 }
 0x6d7   :  { %1525 = vmatprep.subr.mxu0 %v3198_v28  ;;  %1596 = vmatprep.subr.mxu1 %v3201_v29 }
 0x6d8   :  { %1526 = vmatpush1.msra.mxu0 %v3204_v30  ;;  %1597 = vmatpush1.msra.mxu1 %v3207_v31 }
 0x6d9   :  { %1527 = vmatprep.subr.mxu0 %v3210_v32  ;;  %1598 = vmatprep.subr.mxu1 %v3213_v33 }
 0x6da   :  { %1528 = vmatpush1.msra.mxu0 %v3216_v34  ;;  %1599 = vmatpush1.msra.mxu1 %v3219_v35 }
 0x6db   :  { %1529 = vmatprep.subr.mxu0 %v3222_v36  ;;  %1600 = vmatprep.subr.mxu1 %v3225_v37 }
 0x6dc   :  { %1530 = vmatpush1.msra.mxu0 %v3228_v38  ;;  %1601 = vmatpush1.msra.mxu1 %v3231_v39 }
 0x6dd   :  { %1531 = vmatprep.subr.mxu0 %v3234_v40  ;;  %1602 = vmatprep.subr.mxu1 %v3237_v41 }
 0x6de   :  { %1532 = vmatpush1.msra.mxu0 %v3240_v43  ;;  %1603 = vmatpush1.msra.mxu1 %v3243_v55 }
 0x6df   :  { %1533 = vmatprep.subr.mxu0 %v3246_v0  ;;  %1604 = vmatprep.subr.mxu1 %v3249_v1 }
 0x6e0   :  { %1534 = vmatpush1.msra.mxu0 %v3252_v6  ;;  %1605 = vmatpush1.msra.mxu1 %v3255_v45 }
 0x6e1   :  { %1535 = vmatprep.subr.mxu0 %v3258_v49  ;;  %1606 = vmatprep.subr.mxu1 %v3261_v53 }
 0x6e2   :  { %1536 = vmatpush1.msra.mxu0 %v3264_v50  ;;  %1607 = vmatpush1.msra.mxu1 %v3347_v60 }
 0x6e3   :  { %1537 = vmatprep.subr.mxu0 %v3268_v48  ;;  %1608 = vmatprep.subr.mxu1 %v3351_v12 }
 0x6e4   :  { %1538 = vmatpush1.msra.mxu0 %v3272_v54  ;;  %1609 = vmatpush1.msra.mxu1 %v3355_v13 }
 0x6e5   :  { %1539 = vmatprep.subr.mxu0 %v3276_v62  ;;  %1610 = vmatprep.subr.mxu1 %v4061_v2 }
 0x6e6   :  { %1540 = vmatpush1.msra.mxu0 %v4062_v42  ;;  %1611 = vmatpush1.msra.mxu1 %v4063_v44 }
 0x6e7   :  { %1541 = vmatprep.subr.mxu0 %v4064_v5  ;;  %1612 = vmatprep.subr.mxu1 %v4065_v14 }
 0x6e8   :  { %1542 = vmatpush1.msra.mxu0 %v4066_v11  ;;  %1613 = vmatpush1.msra.mxu1 %v4067_v9 }
 0x6e9   :  { %1543 = vmatprep.subr.mxu0 %v4068_v22  ;;  %1614 = vmatprep.subr.mxu1 %v4069_v19 }
 0x6ea   :  { %1544 = vmatpush1.msra.mxu0 %v4070_v18  ;;  %1615 = vmatpush1.msra.mxu1 %v4071_v21  ;;  %v4081_v21 = vld [vmem:[#allocation24_spill] sm:$0xff]  ;;  %v1343_v18 = vld [vmem:[#allocation4 + $0xe8] sm:$0xff] }
 0x6eb   :  { %1545 = vmatprep.subr.mxu0 %v4072_v10  ;;  %1616 = vmatprep.subr.mxu1 %v4073_v3  ;;  %v4082_v10 = vld [vmem:[#allocation22_spill] sm:$0xff]  ;;  %v1342_v3 = vld [vmem:[#allocation4 + $0xe0] sm:$0xff] }
 0x6ec   :  { %1546 = vmatpush1.msra.mxu0 %v4074_v4  ;;  %1617 = vmatpush1.msra.mxu1 %v4075_v7 }
 0x6ed   :  { %1547 = vmatprep.subr.mxu0 %v4076_v17  ;;  %1618 = vmatprep.subr.mxu1 %v4077_v46  ;;  %v1344_v46 = vld [vmem:[#allocation4 + $0xf0] sm:$0xff] }
 0x6ee   :  { %1548 = vmatpush1.msra.mxu0 %v4078_v16  ;;  %1581 = vmatprep.mubr.f32.mxu0 %v4079_v15 }
 0x6ef   :  { %1619 = vmatpush1.msra.mxu1 %v4080_v20  ;;  %1652 = vmatprep.mubr.f32.mxu1 %v4079_v15  ;;  %v1345_v20 = vld [vmem:[#allocation4 + $0xf8] sm:$0xff] }
 0x6f0   :  { %1688 = vmatprep.subr.mxu0 %v4081_v21  ;;  %1759 = vmatprep.subr.mxu1 %v4082_v10 }
 0x78f   :  { %v1412_v4 = vpop.f32.mrf.mxu0  ;;  %v1483_v9 = vpop.f32.mrf.mxu1 }
 0x790   :  { %v1488_v7 = vadd.f32 %v1412_v4, %v1342_v3  ;;  %v1490_v11 = vadd.f32 %v1483_v9, %v1344_v46 }
 0x791   :  { %v1414_v19 = vpop.f32.mrf.mxu0  ;;  %v1485_v14 = vpop.f32.mrf.mxu1 }
 0x792   :  { %v1492_v17 = vmul.f32 0.5, %v1488_v7  ;;  %v1489_v22 = vadd.f32 %v1414_v19, %v1343_v18  ;;  %v1491_v15 = vadd.f32 %v1485_v14, %v1345_v20 }
 0x794   :  { %2320 = vtanh.f32 %v1492_v17  ;;  %v1496_v16 = vmul.f32 0.5, %v1489_v22  ;;  %v1501_v21 = vmul.f32 0.5, %v1491_v15 }
 0x796   :  { %2322 = vtanh.f32 %v1496_v16 }
 0x797   :  { %2324 = vtanh.f32 %v1490_v11 }
 0x798   :  { %2326 = vtanh.f32 %v1501_v21 }
 0x7a1   :  { %v2321_v5 = vpop.eup %2320 }
 0x7a2   :  { %v1494_v10 = vmul.f32 0.5, %v2321_v5 }
 0x7a3   :  { %v2323_v44 = vpop.eup %2322 }
 0x7a4   :  { %v1495_v42 = vadd.f32 0.5, %v1494_v10  ;;  %v1498_v2 = vmul.f32 0.5, %v2323_v44  ;;  %v2325_v4 = vpop.eup %2324 }
 0x7a5   :  { %v2327_v9 = vpop.eup %2326 }
 0x7a6   :  { %v1499_v3 = vadd.f32 0.5, %v1498_v2  ;;  %v1506_v18 = vmul.f32 %v2325_v4, %v1495_v42  ;;  %v1503_v22 = vmul.f32 0.5, %v2327_v9  ;;  %v3634_v4 = vld [vmem:[#allocation7 + $0x1e0] sm:$0xff] }
 0x7a7   :  { %v3646_v9 = vld [vmem:[#allocation7 + $0x1c0] sm:$0xff] }
 0x7a8   :  { %v1505_v19 = vmul.f32 %v1499_v3, %v3491_v8  ;;  %v1504_v11 = vadd.f32 0.5, %v1503_v22  ;;  %v3649_v22 = vld [vmem:[#allocation7 + $0x1d0] sm:$0xff] }
 0x7aa   :  { %v3561_v7 = vadd.f32 %v1506_v18, %v1505_v19  ;;  %v3637_v19 = vld [vmem:[#allocation7 + $0x1f0] sm:$0xff]  ;;  %v3640_v18 = vld [vmem:[#allocation7 + $0x1c8] sm:$0xff] }
 0x7ac   :  { %2328 = vtanh.f32 %v3561_v7 }
 0x7b9   :  { %v2329_v14 = vpop.eup %2328 }
 0x7ba   :  { %v1509_v17 = vmul.f32 %v2329_v14, %v1504_v11  ;;  %v3652_v11 = vld [vmem:[#allocation7 + $0x1a8] sm:$0xff]  ;;  %v3655_v14 = vld [vmem:[#allocation7 + $0x1b8] sm:$0xff] }
 0x7bc   :  { %1511 = vst [vmem:[#allocation12 + $0x38] sm:$0xff] %v1509_v17  ;;  %1582 = vmatmul.mubr.f32.vlgmr.msra.gmra.mxu0 %v1509_v17  ;;  %1653 = vmatmul.mubr.f32.vlgmr.msra.gmra.mxu1 %v1509_v17  ;;  %v3658_v17 = vld [vmem:[#allocation7 + $0x1a0] sm:$0xff] }
 0x7bd   :  { %1689 = vmatpush1.msra.mxu0 %v3156_v59  ;;  %1760 = vmatpush1.msra.mxu1 %v3159_v58  ;;  %v4083_v59 = vld [vmem:[#allocation26_spill] sm:$0xff]  ;;  %v4084_v58 = vld [vmem:[#allocation23_spill] sm:$0xff] }
 0x7be   :  { %1690 = vmatprep.subr.mxu0 %v3162_v51  ;;  %1761 = vmatprep.subr.mxu1 %v3165_v61  ;;  %v4085_v51 = vld [vmem:[#allocation28_spill] sm:$0xff]  ;;  %v4086_v61 = vld [vmem:[#allocation25_spill] sm:$0xff] }
 0x7bf   :  { %1691 = vmatpush1.msra.mxu0 %v3168_v57  ;;  %1762 = vmatpush1.msra.mxu1 %v3171_v56  ;;  %v4087_v57 = vld [vmem:[#allocation30_spill] sm:$0xff]  ;;  %v4088_v56 = vld [vmem:[#allocation27_spill] sm:$0xff] }
 0x7c0   :  { %1692 = vmatprep.subr.mxu0 %v3174_v63  ;;  %1763 = vmatprep.subr.mxu1 %v3177_v47  ;;  %v4089_v63 = vld [vmem:[#allocation32_spill] sm:$0xff]  ;;  %v4090_v47 = vld [vmem:[#allocation29_spill] sm:$0xff] }
 0x7c1   :  { %1693 = vmatpush1.msra.mxu0 %v3180_v52  ;;  %1764 = vmatpush1.msra.mxu1 %v3183_v23  ;;  %v4091_v52 = vld [vmem:[#allocation34_spill] sm:$0xff]  ;;  %v4092_v23 = vld [vmem:[#allocation31_spill] sm:$0xff] }
 0x7c2   :  { %1694 = vmatprep.subr.mxu0 %v3186_v24  ;;  %1765 = vmatprep.subr.mxu1 %v3189_v25  ;;  %v4093_v24 = vld [vmem:[#allocation36_spill] sm:$0xff]  ;;  %v4094_v25 = vld [vmem:[#allocation33_spill] sm:$0xff] }
 0x7c3   :  { %1695 = vmatpush1.msra.mxu0 %v3192_v26  ;;  %1766 = vmatpush1.msra.mxu1 %v3195_v27  ;;  %v4095_v26 = vld [vmem:[#allocation38_spill] sm:$0xff]  ;;  %v4096_v27 = vld [vmem:[#allocation35_spill] sm:$0xff] }
 0x7c4   :  { %1696 = vmatprep.subr.mxu0 %v3198_v28  ;;  %1767 = vmatprep.subr.mxu1 %v3201_v29  ;;  %v4097_v28 = vld [vmem:[#allocation39_spill] sm:$0xff]  ;;  %v4098_v29 = vld [vmem:[#allocation37_spill] sm:$0xff] }
 0x7c5   :  { %1697 = vmatpush1.msra.mxu0 %v3204_v30  ;;  %1768 = vmatpush1.msra.mxu1 %v3207_v31  ;;  %v4099_v30 = vld [vmem:[#allocation40_spill] sm:$0xff] }
 0x7c6   :  { %1698 = vmatprep.subr.mxu0 %v3210_v32  ;;  %1769 = vmatprep.subr.mxu1 %v3213_v33  ;;  %v4100_v31 = vld [vmem:[#allocation20_spill] sm:$0xff]  ;;  %v4101_v32 = vmov 0.0   ;;  %v4102_v33 = vld [vmem:[#allocation21_spill] sm:$0xff] }
 0x7c7   :  { %1699 = vmatpush1.msra.mxu0 %v3216_v34  ;;  %1770 = vmatpush1.msra.mxu1 %v3219_v35  ;;  %v4103_v34 = vld [vmem:[#allocation24_spill] sm:$0xff]  ;;  %v4104_v35 = vld [vmem:[#allocation22_spill] sm:$0xff] }
 0x7c8   :  { %1700 = vmatprep.subr.mxu0 %v3222_v36  ;;  %1771 = vmatprep.subr.mxu1 %v3225_v37  ;;  %v1513_v36 = vld [vmem:[#allocation4 + $0x100] sm:$0xff] }
 0x7c9   :  { %1701 = vmatpush1.msra.mxu0 %v3228_v38  ;;  %1772 = vmatpush1.msra.mxu1 %v3231_v39  ;;  %v1514_v38 = vld [vmem:[#allocation4 + $0x108] sm:$0xff] }
 0x7ca   :  { %1702 = vmatprep.subr.mxu0 %v3234_v40  ;;  %1773 = vmatprep.subr.mxu1 %v3237_v41 }
 0x7cb   :  { %1703 = vmatpush1.msra.mxu0 %v3240_v43  ;;  %1774 = vmatpush1.msra.mxu1 %v3243_v55  ;;  %v1515_v55 = vld [vmem:[#allocation4 + $0x110] sm:$0xff] }
 0x7cc   :  { %1704 = vmatprep.subr.mxu0 %v3246_v0  ;;  %1775 = vmatprep.subr.mxu1 %v3249_v1 }
 0x7cd   :  { %1705 = vmatpush1.msra.mxu0 %v3252_v6  ;;  %1776 = vmatpush1.msra.mxu1 %v3255_v45  ;;  %v1516_v45 = vld [vmem:[#allocation4 + $0x118] sm:$0xff] }
 0x7ce   :  { %1706 = vmatprep.subr.mxu0 %v3258_v49  ;;  %1777 = vmatprep.subr.mxu1 %v3261_v53 }
 0x7cf   :  { %1707 = vmatpush1.msra.mxu0 %v3264_v50  ;;  %1778 = vmatpush1.msra.mxu1 %v3347_v60 }
 0x7d0   :  { %1708 = vmatprep.subr.mxu0 %v3268_v48  ;;  %1779 = vmatprep.subr.mxu1 %v3351_v12 }
 0x7d1   :  { %1709 = vmatpush1.msra.mxu0 %v3272_v54  ;;  %1780 = vmatpush1.msra.mxu1 %v3355_v13 }
 0x7d2   :  { %1710 = vmatprep.subr.mxu0 %v3276_v62  ;;  %1781 = vmatprep.subr.mxu1 %v4083_v59 }
 0x7d3   :  { %1711 = vmatpush1.msra.mxu0 %v4084_v58  ;;  %1782 = vmatpush1.msra.mxu1 %v4085_v51 }
 0x7d4   :  { %1712 = vmatprep.subr.mxu0 %v4086_v61  ;;  %1783 = vmatprep.subr.mxu1 %v4087_v57 }
 0x7d5   :  { %1713 = vmatpush1.msra.mxu0 %v4088_v56  ;;  %1784 = vmatpush1.msra.mxu1 %v4089_v63 }
 0x7d6   :  { %1714 = vmatprep.subr.mxu0 %v4090_v47  ;;  %1785 = vmatprep.subr.mxu1 %v4091_v52 }
 0x7d7   :  { %1715 = vmatpush1.msra.mxu0 %v4092_v23  ;;  %1786 = vmatpush1.msra.mxu1 %v4093_v24 }
 0x7d8   :  { %1716 = vmatprep.subr.mxu0 %v4094_v25  ;;  %1787 = vmatprep.subr.mxu1 %v4095_v26 }
 0x7d9   :  { %1717 = vmatpush1.msra.mxu0 %v4096_v27  ;;  %1788 = vmatpush1.msra.mxu1 %v4097_v28 }
 0x7da   :  { %1718 = vmatprep.subr.mxu0 %v4098_v29  ;;  %1789 = vmatprep.subr.mxu1 %v4099_v30 }
 0x7db   :  { %1719 = vmatpush1.msra.mxu0 %v4100_v31  ;;  %1752 = vmatprep.mubr.f32.mxu0 %v4101_v32 }
 0x7dc   :  { %1790 = vmatpush1.msra.mxu1 %v4102_v33  ;;  %1823 = vmatprep.mubr.f32.mxu1 %v4101_v32 }
 0x7dd   :  { %1859 = vmatprep.subr.mxu0 %v4103_v34  ;;  %1930 = vmatprep.subr.mxu1 %v4104_v35  ;;  %v3661_v34 = vld [vmem:[#allocation7 + $0x1b0] sm:$0xff]  ;;  %v3664_v35 = vld [vmem:[#allocation7 + $0x188] sm:$0xff] }
 0x87c   :  { %v1583_v37 = vpop.f32.mrf.mxu0  ;;  %v1654_v0 = vpop.f32.mrf.mxu1 }
 0x87d   :  { %v1659_v39 = vadd.f32 %v1583_v37, %v1513_v36  ;;  %v1661_v6 = vadd.f32 %v1654_v0, %v1515_v55  ;;  %v3667_v36 = vld [vmem:[#allocation7 + $0x198] sm:$0xff]  ;;  %v3670_v37 = vld [vmem:[#allocation7 + $0x180] sm:$0xff]  ;;  %v3688_v55 = vld [vmem:[#allocation7 + $0x148] sm:$0xff] }
 0x87e   :  { %v1585_v40 = vpop.f32.mrf.mxu0  ;;  %v1656_v49 = vpop.f32.mrf.mxu1  ;;  %v3691_v0 = vld [vmem:[#allocation7 + $0x158] sm:$0xff] }
 0x87f   :  { %v1663_v41 = vmul.f32 0.5, %v1659_v39  ;;  %v1660_v43 = vadd.f32 %v1585_v40, %v1514_v38  ;;  %v1662_v53 = vadd.f32 %v1656_v49, %v1516_v45  ;;  %v3673_v38 = vld [vmem:[#allocation7 + $0x190] sm:$0xff]  ;;  %v3676_v39 = vld [vmem:[#allocation7 + $0x168] sm:$0xff]  ;;  %v3679_v40 = vld [vmem:[#allocation7 + $0x178] sm:$0xff] }
 0x880   :  { %v3700_v45 = vld [vmem:[#allocation7 + $0x128] sm:$0xff]  ;;  %v3703_v49 = vld [vmem:[#allocation7 + $0x138] sm:$0xff] }
 0x881   :  { %2330 = vtanh.f32 %v1663_v41  ;;  %v1667_v1 = vmul.f32 0.5, %v1660_v43  ;;  %v1672_v50 = vmul.f32 0.5, %v1662_v53  ;;  %v3682_v41 = vld [vmem:[#allocation7 + $0x160] sm:$0xff]  ;;  %v3685_v43 = vld [vmem:[#allocation7 + $0x170] sm:$0xff] }
 0x882   :  { %v3706_v53 = vld [vmem:[#allocation7 + $0x120] sm:$0xff] }
 0x883   :  { %2332 = vtanh.f32 %v1667_v1  ;;  %v3694_v1 = vld [vmem:[#allocation7 + $0x140] sm:$0xff] }
 0x884   :  { %2334 = vtanh.f32 %v1661_v6  ;;  %v3697_v6 = vld [vmem:[#allocation7 + $0x150] sm:$0xff] }
 0x885   :  { %2336 = vtanh.f32 %v1672_v50  ;;  %v3709_v50 = vld [vmem:[#allocation7 + $0x130] sm:$0xff] }
 0x88e   :  { %v2331_v48 = vpop.eup %2330 }
 0x88f   :  { %v1665_v54 = vmul.f32 0.5, %v2331_v48  ;;  %v3712_v48 = vld [vmem:[#allocation7 + $0x108] sm:$0xff] }
 0x890   :  { %v2333_v62 = vpop.eup %2332 }
 0x891   :  { %v1666_v8 = vadd.f32 0.5, %v1665_v54  ;;  %v1669_v2 = vmul.f32 0.5, %v2333_v62  ;;  %v2335_v44 = vpop.eup %2334  ;;  %v3715_v54 = vld [vmem:[#allocation7 + $0x118] sm:$0xff]  ;;  %v3718_v62 = vld [vmem:[#allocation7 + $0x100] sm:$0xff] }
 0x892   :  { %v2337_v46 = vpop.eup %2336 }
 0x893   :  { %v1670_v42 = vadd.f32 0.5, %v1669_v2  ;;  %v1677_v21 = vmul.f32 %v2335_v44, %v1666_v8  ;;  %v1674_v16 = vmul.f32 0.5, %v2337_v46  ;;  %v3721_v8 = vld [vmem:[#allocation7 + $0x110] sm:$0xff]  ;;  %v3724_v2 = vld [vmem:[#allocation7 + $0xe8] sm:$0xff]  ;;  %v3730_v44 = vld [vmem:[#allocation7 + $0xe0] sm:$0xff] }
 0x894   :  { %v3739_v46 = vld [vmem:[#allocation7 + $0xd8] sm:$0xff] }
 0x895   :  { %v1676_v5 = vmul.f32 %v1670_v42, %v3561_v7  ;;  %v1675_v15 = vadd.f32 0.5, %v1674_v16  ;;  %v3643_v7 = vld [vmem:[#allocation7 + $0x1d8] sm:$0xff]  ;;  %v3742_v16 = vld [vmem:[#allocation7 + $0xc0] sm:$0xff] }
 0x896   :  { %v3727_v42 = vld [vmem:[#allocation7 + $0xf8] sm:$0xff] }
 0x897   :  { %v3631_v10 = vadd.f32 %v1677_v21, %v1676_v5  ;;  %v3733_v5 = vld [vmem:[#allocation7 + $0xf0] sm:$0xff]  ;;  %v3736_v21 = vld [vmem:[#allocation7 + $0xc8] sm:$0xff] }
 0x899   :  { %2338 = vtanh.f32 %v3631_v10 }
 0x8a6   :  { %v2339_v20 = vpop.eup %2338 }
 0x8a7   :  { %v1680_v3 = vmul.f32 %v2339_v20, %v1675_v15  ;;  %v3746_v15 = vld [vmem:[#allocation7 + $0xa8] sm:$0xff]  ;;  %v3750_v20 = vld [vmem:[#allocation7 + $0xa0] sm:$0xff] }
 0x8a9   :  { %1682 = vst [vmem:[#allocation12 + $0x40] sm:$0xff] %v1680_v3  ;;  %1753 = vmatmul.mubr.f32.vlgmr.msra.gmra.mxu0 %v1680_v3  ;;  %1824 = vmatmul.mubr.f32.vlgmr.msra.gmra.mxu1 %v1680_v3  ;;  %v3754_v3 = vld [vmem:[#allocation7 + $0x88] sm:$0xff] }
 0x8aa   :  { %1860 = vmatpush1.msra.mxu0 %v3634_v4  ;;  %1931 = vmatpush1.msra.mxu1 %v3637_v19 }
 0x8ab   :  { %1861 = vmatprep.subr.mxu0 %v3640_v18  ;;  %1932 = vmatprep.subr.mxu1 %v3643_v7 }
 0x8ac   :  { %1862 = vmatpush1.msra.mxu0 %v3646_v9  ;;  %1933 = vmatpush1.msra.mxu1 %v3649_v22 }
 0x8ad   :  { %1863 = vmatprep.subr.mxu0 %v3652_v11  ;;  %1934 = vmatprep.subr.mxu1 %v3655_v14 }
 0x8ae   :  { %1864 = vmatpush1.msra.mxu0 %v3658_v17  ;;  %1935 = vmatpush1.msra.mxu1 %v3661_v34 }
 0x8af   :  { %1865 = vmatprep.subr.mxu0 %v3664_v35  ;;  %1936 = vmatprep.subr.mxu1 %v3667_v36 }
 0x8b0   :  { %1866 = vmatpush1.msra.mxu0 %v3670_v37  ;;  %1937 = vmatpush1.msra.mxu1 %v3673_v38 }
 0x8b1   :  { %1867 = vmatprep.subr.mxu0 %v3676_v39  ;;  %1938 = vmatprep.subr.mxu1 %v3679_v40 }
 0x8b2   :  { %1868 = vmatpush1.msra.mxu0 %v3682_v41  ;;  %1939 = vmatpush1.msra.mxu1 %v3685_v43 }
 0x8b3   :  { %1869 = vmatprep.subr.mxu0 %v3688_v55  ;;  %1940 = vmatprep.subr.mxu1 %v3691_v0 }
 0x8b4   :  { %1870 = vmatpush1.msra.mxu0 %v3694_v1  ;;  %1941 = vmatpush1.msra.mxu1 %v3697_v6 }
 0x8b5   :  { %1871 = vmatprep.subr.mxu0 %v3700_v45  ;;  %1942 = vmatprep.subr.mxu1 %v3703_v49 }
 0x8b6   :  { %1872 = vmatpush1.msra.mxu0 %v3706_v53  ;;  %1943 = vmatpush1.msra.mxu1 %v3709_v50 }
 0x8b7   :  { %1873 = vmatprep.subr.mxu0 %v3712_v48  ;;  %1944 = vmatprep.subr.mxu1 %v3715_v54 }
 0x8b8   :  { %1874 = vmatpush1.msra.mxu0 %v3718_v62  ;;  %1945 = vmatpush1.msra.mxu1 %v3721_v8 }
 0x8b9   :  { %1875 = vmatprep.subr.mxu0 %v3724_v2  ;;  %1946 = vmatprep.subr.mxu1 %v3727_v42 }
 0x8ba   :  { %1876 = vmatpush1.msra.mxu0 %v3730_v44  ;;  %1947 = vmatpush1.msra.mxu1 %v3733_v5 }
 0x8bb   :  { %1877 = vmatprep.subr.mxu0 %v3736_v21  ;;  %1948 = vmatprep.subr.mxu1 %v3739_v46 }
 0x8bc   :  { %1878 = vmatpush1.msra.mxu0 %v3742_v16  ;;  %1949 = vmatpush1.msra.mxu1 %v3347_v60  ;;  %v2474_v60 = vld [vmem:[#allocation7 + $0x1e8] sm:$0xff] }
 0x8bd   :  { %1879 = vmatprep.subr.mxu0 %v3746_v15  ;;  %1950 = vmatprep.subr.mxu1 %v3351_v12  ;;  %v2475_v12 = vld [vmem:[#allocation7 + $0x1f8] sm:$0xff] }
 0x8be   :  { %1880 = vmatpush1.msra.mxu0 %v3750_v20  ;;  %1951 = vmatpush1.msra.mxu1 %v3355_v13  ;;  %v1684_v13 = vld [vmem:[#allocation4 + $0x120] sm:$0xff] }
 0x8bf   :  { %1881 = vmatprep.subr.mxu0 %v3754_v3  ;;  %1952 = vmatprep.subr.mxu1 %v4083_v59 }
 0x8c0   :  { %1882 = vmatpush1.msra.mxu0 %v4084_v58  ;;  %1953 = vmatpush1.msra.mxu1 %v4085_v51  ;;  %v1685_v58 = vld [vmem:[#allocation4 + $0x128] sm:$0xff] }
 0x8c1   :  { %1883 = vmatprep.subr.mxu0 %v4086_v61  ;;  %1954 = vmatprep.subr.mxu1 %v4087_v57 }
 0x8c2   :  { %1884 = vmatpush1.msra.mxu0 %v4088_v56  ;;  %1955 = vmatpush1.msra.mxu1 %v4089_v63  ;;  %v1686_v63 = vld [vmem:[#allocation4 + $0x130] sm:$0xff] }
 0x8c3   :  { %1885 = vmatprep.subr.mxu0 %v4090_v47  ;;  %1956 = vmatprep.subr.mxu1 %v4091_v52 }
 0x8c4   :  { %1886 = vmatpush1.msra.mxu0 %v4092_v23  ;;  %1957 = vmatpush1.msra.mxu1 %v4093_v24  ;;  %v1687_v24 = vld [vmem:[#allocation4 + $0x138] sm:$0xff] }
 0x8c5   :  { %1887 = vmatprep.subr.mxu0 %v4094_v25  ;;  %1958 = vmatprep.subr.mxu1 %v4095_v26 }
 0x8c6   :  { %1888 = vmatpush1.msra.mxu0 %v4096_v27  ;;  %1959 = vmatpush1.msra.mxu1 %v4097_v28 }
 0x8c7   :  { %1889 = vmatprep.subr.mxu0 %v4098_v29  ;;  %1960 = vmatprep.subr.mxu1 %v4099_v30 }
 0x8c8   :  { %1890 = vmatpush1.msra.mxu0 %v4100_v31  ;;  %1923 = vmatprep.mubr.f32.mxu0 %v4101_v32 }
 0x8c9   :  { %1961 = vmatpush1.msra.mxu1 %v4102_v33  ;;  %1994 = vmatprep.mubr.f32.mxu1 %v4101_v32 }
 0x8ca   :  { %2030 = vmatprep.subr.mxu0 %v2474_v60  ;;  %2101 = vmatprep.subr.mxu1 %v2475_v12 }
 0x969   :  { %v1754_v59 = vpop.f32.mrf.mxu0  ;;  %v1825_v47 = vpop.f32.mrf.mxu1 }
 0x96a   :  { %v1830_v51 = vadd.f32 %v1754_v59, %v1684_v13  ;;  %v1832_v23 = vadd.f32 %v1825_v47, %v1686_v63 }
 0x96b   :  { %v1756_v61 = vpop.f32.mrf.mxu0  ;;  %v1827_v25 = vpop.f32.mrf.mxu1 }
 0x96c   :  { %v1834_v57 = vmul.f32 0.5, %v1830_v51  ;;  %v1831_v56 = vadd.f32 %v1756_v61, %v1685_v58  ;;  %v1833_v26 = vadd.f32 %v1827_v25, %v1687_v24 }
 0x96e   :  { %2340 = vtanh.f32 %v1834_v57  ;;  %v1838_v52 = vmul.f32 0.5, %v1831_v56  ;;  %v1843_v27 = vmul.f32 0.5, %v1833_v26 }
 0x970   :  { %2342 = vtanh.f32 %v1838_v52 }
 0x971   :  { %2344 = vtanh.f32 %v1832_v23 }
 0x972   :  { %2346 = vtanh.f32 %v1843_v27 }
 0x97b   :  { %v2341_v28 = vpop.eup %2340 }
 0x97c   :  { %v1836_v29 = vmul.f32 0.5, %v2341_v28 }
 0x97d   :  { %v2343_v30 = vpop.eup %2342 }
 0x97e   :  { %v1837_v31 = vadd.f32 0.5, %v1836_v29  ;;  %v1840_v33 = vmul.f32 0.5, %v2343_v30  ;;  %v2345_v12 = vpop.eup %2344 }
 0x97f   :  { %v2347_v51 = vpop.eup %2346 }
 0x980   :  { %v1841_v60 = vadd.f32 0.5, %v1840_v33  ;;  %v1848_v59 = vmul.f32 %v2345_v12, %v1837_v31  ;;  %v1845_v61 = vmul.f32 0.5, %v2347_v51  ;;  %v2026_v31 = vld [vmem:[#allocation4 + $0x160] sm:$0xff] }
 0x982   :  { %v1847_v13 = vmul.f32 %v1841_v60, %v3631_v10  ;;  %v1846_v57 = vadd.f32 0.5, %v1845_v61  ;;  %v2476_v10 = vld [vmem:[#allocation7 + $0xd0] sm:$0xff]  ;;  %v2027_v60 = vld [vmem:[#allocation4 + $0x168] sm:$0xff] }
 0x983   :  { %v2028_v61 = vld [vmem:[#allocation4 + $0x170] sm:$0xff] }
 0x984   :  { %v3779_v58 = vadd.f32 %v1848_v59, %v1847_v13 }
 0x986   :  { %2348 = vtanh.f32 %v3779_v58 }
 0x993   :  { %v2349_v56 = vpop.eup %2348 }
 0x994   :  { %v1851_v63 = vmul.f32 %v2349_v56, %v1846_v57 }
 0x996   :  { %1853 = vst [vmem:[#allocation12 + $0x48] sm:$0xff] %v1851_v63  ;;  %1924 = vmatmul.mubr.f32.vlgmr.msra.gmra.mxu0 %v1851_v63  ;;  %1995 = vmatmul.mubr.f32.vlgmr.msra.gmra.mxu1 %v1851_v63  ;;  %v2029_v63 = vld [vmem:[#allocation4 + $0x178] sm:$0xff] }
 0x997   :  { %2031 = vmatpush1.msra.mxu0 %v3634_v4  ;;  %2102 = vmatpush1.msra.mxu1 %v3637_v19  ;;  %v2477_v4 = vld [vmem:[#allocation7 + $0xb8] sm:$0xff]  ;;  %v2478_v19 = vld [vmem:[#allocation7 + $0xb0] sm:$0xff] }
 0x998   :  { %2032 = vmatprep.subr.mxu0 %v3640_v18  ;;  %2103 = vmatprep.subr.mxu1 %v3643_v7  ;;  %v2479_v18 = vld [vmem:[#allocation7 + $0x98] sm:$0xff]  ;;  %v2480_v7 = vld [vmem:[#allocation7 + $0x80] sm:$0xff] }
 0x999   :  { %2033 = vmatpush1.msra.mxu0 %v3646_v9  ;;  %2104 = vmatpush1.msra.mxu1 %v3649_v22  ;;  %v2481_v9 = vld [vmem:[#allocation7 + $0x90] sm:$0xff]  ;;  %v2482_v22 = vld [vmem:[#allocation7 + $0x68] sm:$0xff] }
 0x99a   :  { %2034 = vmatprep.subr.mxu0 %v3652_v11  ;;  %2105 = vmatprep.subr.mxu1 %v3655_v14  ;;  %v2483_v11 = vld [vmem:[#allocation7 + $0x78] sm:$0xff]  ;;  %v2484_v14 = vld [vmem:[#allocation7 + $0x60] sm:$0xff] }
 0x99b   :  { %2035 = vmatpush1.msra.mxu0 %v3658_v17  ;;  %2106 = vmatpush1.msra.mxu1 %v3661_v34  ;;  %v2485_v17 = vld [vmem:[#allocation7 + $0x70] sm:$0xff]  ;;  %v2486_v34 = vld [vmem:[#allocation7 + $0x48] sm:$0xff] }
 0x99c   :  { %2036 = vmatprep.subr.mxu0 %v3664_v35  ;;  %2107 = vmatprep.subr.mxu1 %v3667_v36  ;;  %v2487_v35 = vld [vmem:[#allocation7 + $0x58] sm:$0xff]  ;;  %v2488_v36 = vld [vmem:[#allocation7 + $0x40] sm:$0xff] }
 0x99d   :  { %2037 = vmatpush1.msra.mxu0 %v3670_v37  ;;  %2108 = vmatpush1.msra.mxu1 %v3673_v38  ;;  %v2489_v37 = vld [vmem:[#allocation7 + $0x50] sm:$0xff]  ;;  %v2490_v38 = vld [vmem:[#allocation7 + $0x28] sm:$0xff] }
 0x99e   :  { %2038 = vmatprep.subr.mxu0 %v3676_v39  ;;  %2109 = vmatprep.subr.mxu1 %v3679_v40  ;;  %v2491_v39 = vld [vmem:[#allocation7 + $0x38] sm:$0xff]  ;;  %v2492_v40 = vld [vmem:[#allocation7 + $0x20] sm:$0xff] }
 0x99f   :  { %2039 = vmatpush1.msra.mxu0 %v3682_v41  ;;  %2110 = vmatpush1.msra.mxu1 %v3685_v43  ;;  %v2493_v41 = vld [vmem:[#allocation7 + $0x30] sm:$0xff]  ;;  %v2494_v43 = vld [vmem:[#allocation7 + $0x8] sm:$0xff] }
 0x9a0   :  { %2040 = vmatprep.subr.mxu0 %v3688_v55  ;;  %2111 = vmatprep.subr.mxu1 %v3691_v0  ;;  %v2495_v55 = vld [vmem:[#allocation7 + $0x18] sm:$0xff]  ;;  %v2496_v0 = vld [vmem:[#allocation7] sm:$0xff] }
 0x9a1   :  { %2041 = vmatpush1.msra.mxu0 %v3694_v1  ;;  %2112 = vmatpush1.msra.mxu1 %v3697_v6  ;;  %v2497_v1 = vld [vmem:[#allocation7 + $0x10] sm:$0xff]  ;;  %v1855_v6 = vld [vmem:[#allocation4 + $0x140] sm:$0xff] }
 0x9a2   :  { %2042 = vmatprep.subr.mxu0 %v3700_v45  ;;  %2113 = vmatprep.subr.mxu1 %v3703_v49  ;;  %v1856_v49 = vld [vmem:[#allocation4 + $0x148] sm:$0xff] }
 0x9a3   :  { %2043 = vmatpush1.msra.mxu0 %v3706_v53  ;;  %2114 = vmatpush1.msra.mxu1 %v3709_v50 }
 0x9a4   :  { %2044 = vmatprep.subr.mxu0 %v3712_v48  ;;  %2115 = vmatprep.subr.mxu1 %v3715_v54 }
 0x9a5   :  { %2045 = vmatpush1.msra.mxu0 %v3718_v62  ;;  %2116 = vmatpush1.msra.mxu1 %v3721_v8  ;;  %v1857_v62 = vld [vmem:[#allocation4 + $0x150] sm:$0xff] }
 0x9a6   :  { %2046 = vmatprep.subr.mxu0 %v3724_v2  ;;  %2117 = vmatprep.subr.mxu1 %v3727_v42 }
 0x9a7   :  { %2047 = vmatpush1.msra.mxu0 %v3730_v44  ;;  %2118 = vmatpush1.msra.mxu1 %v3733_v5  ;;  %v1858_v44 = vld [vmem:[#allocation4 + $0x158] sm:$0xff] }
 0x9a8   :  { %2048 = vmatprep.subr.mxu0 %v3736_v21  ;;  %2119 = vmatprep.subr.mxu1 %v3739_v46 }
 0x9a9   :  { %2049 = vmatpush1.msra.mxu0 %v3742_v16  ;;  %2120 = vmatpush1.msra.mxu1 %v2476_v10 }
 0x9aa   :  { %2050 = vmatprep.subr.mxu0 %v3746_v15  ;;  %2121 = vmatprep.subr.mxu1 %v2477_v4 }
 0x9ab   :  { %2051 = vmatpush1.msra.mxu0 %v3750_v20  ;;  %2122 = vmatpush1.msra.mxu1 %v2478_v19 }
 0x9ac   :  { %2052 = vmatprep.subr.mxu0 %v3754_v3  ;;  %2123 = vmatprep.subr.mxu1 %v2479_v18 }
 0x9ad   :  { %2053 = vmatpush1.msra.mxu0 %v2480_v7  ;;  %2124 = vmatpush1.msra.mxu1 %v2481_v9 }
 0x9ae   :  { %2054 = vmatprep.subr.mxu0 %v2482_v22  ;;  %2125 = vmatprep.subr.mxu1 %v2483_v11 }
 0x9af   :  { %2055 = vmatpush1.msra.mxu0 %v2484_v14  ;;  %2126 = vmatpush1.msra.mxu1 %v2485_v17 }
 0x9b0   :  { %2056 = vmatprep.subr.mxu0 %v2486_v34  ;;  %2127 = vmatprep.subr.mxu1 %v2487_v35 }
 0x9b1   :  { %2057 = vmatpush1.msra.mxu0 %v2488_v36  ;;  %2128 = vmatpush1.msra.mxu1 %v2489_v37 }
 0x9b2   :  { %2058 = vmatprep.subr.mxu0 %v2490_v38  ;;  %2129 = vmatprep.subr.mxu1 %v2491_v39 }
 0x9b3   :  { %2059 = vmatpush1.msra.mxu0 %v2492_v40  ;;  %2130 = vmatpush1.msra.mxu1 %v2493_v41 }
 0x9b4   :  { %2060 = vmatprep.subr.mxu0 %v2494_v43  ;;  %2131 = vmatprep.subr.mxu1 %v2495_v55 }
 0x9b5   :  { %2061 = vmatpush1.msra.mxu0 %v2496_v0  ;;  %2094 = vmatprep.mubr.f32.mxu0 %v4101_v32 }
 0x9b6   :  { %2132 = vmatpush1.msra.mxu1 %v2497_v1  ;;  %2165 = vmatprep.mubr.f32.mxu1 %v4101_v32 }
 0xa56   :  { %v1925_v45 = vpop.f32.mrf.mxu0  ;;  %v1996_v8 = vpop.f32.mrf.mxu1 }
 0xa57   :  { %v2001_v53 = vadd.f32 %v1925_v45, %v1855_v6  ;;  %v2003_v42 = vadd.f32 %v1996_v8, %v1857_v62 }
 0xa58   :  { %v1927_v50 = vpop.f32.mrf.mxu0  ;;  %v1998_v5 = vpop.f32.mrf.mxu1 }
 0xa59   :  { %v2005_v48 = vmul.f32 0.5, %v2001_v53  ;;  %v2002_v54 = vadd.f32 %v1927_v50, %v1856_v49  ;;  %v2004_v21 = vadd.f32 %v1998_v5, %v1858_v44 }
 0xa5b   :  { %2350 = vtanh.f32 %v2005_v48  ;;  %v2009_v2 = vmul.f32 0.5, %v2002_v54  ;;  %v2014_v46 = vmul.f32 0.5, %v2004_v21 }
 0xa5d   :  { %2352 = vtanh.f32 %v2009_v2 }
 0xa5e   :  { %2354 = vtanh.f32 %v2003_v42 }
 0xa5f   :  { %2356 = vtanh.f32 %v2014_v46 }
 0xa68   :  { %v2351_v16 = vpop.eup %2350 }
 0xa69   :  { %v2007_v32 = vmul.f32 0.5, %v2351_v16 }
 0xa6a   :  { %v2353_v15 = vpop.eup %2352 }
 0xa6b   :  { %v2008_v20 = vadd.f32 0.5, %v2007_v32  ;;  %v2011_v3 = vmul.f32 0.5, %v2353_v15  ;;  %v2355_v52 = vpop.eup %2354 }
 0xa6c   :  { %v2357_v26 = vpop.eup %2356 }
 0xa6d   :  { %v2012_v47 = vadd.f32 0.5, %v2011_v3  ;;  %v2019_v24 = vmul.f32 %v2355_v52, %v2008_v20  ;;  %v2016_v27 = vmul.f32 0.5, %v2357_v26 }
 0xa6f   :  { %v2018_v23 = vmul.f32 %v2012_v47, %v3779_v58  ;;  %v2017_v28 = vadd.f32 0.5, %v2016_v27 }
 0xa71   :  { %v2020_v25 = vadd.f32 %v2019_v24, %v2018_v23 }
 0xa73   :  { %2358 = vtanh.f32 %v2020_v25 }
 0xa80   :  { %v2359_v29 = vpop.eup %2358 }
 0xa81   :  { %v2022_v30 = vmul.f32 %v2359_v29, %v2017_v28 }
 0xa83   :  { %2024 = vst [vmem:[#allocation12 + $0x50] sm:$0xff] %v2022_v30  ;;  %2095 = vmatmul.mubr.f32.vlgmr.msra.gmra.mxu0 %v2022_v30  ;;  %2166 = vmatmul.mubr.f32.vlgmr.msra.gmra.mxu1 %v2022_v30 }
 0xb43   :  { %v2096_v33 = vpop.f32.mrf.mxu0  ;;  %v2167_v58 = vpop.f32.mrf.mxu1 }
 0xb44   :  { %v2172_v12 = vadd.f32 %v2096_v33, %v2026_v31  ;;  %v2174_v56 = vadd.f32 %v2167_v58, %v2028_v61 }
 0xb45   :  { %v2098_v13 = vpop.f32.mrf.mxu0  ;;  %v2169_v10 = vpop.f32.mrf.mxu1 }
 0xb46   :  { %v2176_v59 = vmul.f32 0.5, %v2172_v12  ;;  %v2173_v51 = vadd.f32 %v2098_v13, %v2027_v60  ;;  %v2175_v4 = vadd.f32 %v2169_v10, %v2029_v63 }
 0xb48   :  { %2360 = vtanh.f32 %v2176_v59  ;;  %v2180_v57 = vmul.f32 0.5, %v2173_v51  ;;  %v2185_v19 = vmul.f32 0.5, %v2175_v4 }
 0xb4a   :  { %2362 = vtanh.f32 %v2180_v57 }
 0xb4b   :  { %2364 = vtanh.f32 %v2174_v56 }
 0xb4c   :  { %2366 = vtanh.f32 %v2185_v19 }
 0xb55   :  { %v2361_v18 = vpop.eup %2360 }
 0xb56   :  { %v2178_v7 = vmul.f32 0.5, %v2361_v18 }
 0xb57   :  { %v2363_v9 = vpop.eup %2362 }
 0xb58   :  { %v2179_v22 = vadd.f32 0.5, %v2178_v7  ;;  %v2182_v11 = vmul.f32 0.5, %v2363_v9  ;;  %v2365_v17 = vpop.eup %2364 }
 0xb5a   :  { %v2183_v14 = vadd.f32 0.5, %v2182_v11  ;;  %v2190_v35 = vmul.f32 %v2365_v17, %v2179_v22 }
 0xb5c   :  { %v2189_v34 = vmul.f32 %v2183_v14, %v2020_v25 }
 0xb5e   :  { %v2191_v36 = vadd.f32 %v2190_v35, %v2189_v34 }
 0xb60   :  { %2368 = vtanh.f32 %v2191_v36  ;;  %2205 = vst [vmem:[#allocation13] sm:$0xff] %v2191_v36 }
 0xb61   :  { %2589 = shalt.err (!%p2586_p10)
}
 0xb62   :  { %2227 = dma.vmem_to_hbm [thread:$0]  %s2225_s3, 128, %s3836_s5, [#allocation14]   ;;  %v2367_v37 = vpop.eup %2366 }
 0xb63   :  { %v2187_v38 = vmul.f32 0.5, %v2367_v37  ;;  %s2636_s16 = smov [#allocation12]  }
 0xb64   :  { %s2211_s17 = sshll.u32 %s2636_s16, 4  ;;  %s2212_s17 = int_to_ptr.vmem [resolvable:$true] %s2211_s17 }
 0xb65   :  { %v2188_v39 = vadd.f32 0.5, %v2187_v38  ;;  %s2598_s18 = scalar_lea.vmem %s2212_s17, 1536  ;;  %p2603_p12 = scmp.lt.s32.totalorder %s2212_s17, %s2212_s17 }
 0xb66   :  { %p2599_p11 = scmp.ne.s32.totalorder %s2212_s17, %s2598_s18  ;;  %p2604_p13 = scmp.lt.s32.totalorder %s2598_s18, %s2598_s18 }
 0xb68   :  { %p2605_p0 = por %p2604_p13, %p2603_p12 }
 0xb6a   :  { %p2606_p1 = pnand %p2605_p0, %p2599_p11 }
 0xb6d   :  { %v2369_v40 = vpop.eup %2368 }
 0xb6e   :  { %v2193_v41 = vmul.f32 %v2369_v40, %v2188_v39 }
 0xb70   :  { %2195 = vst [vmem:[#allocation12 + $0x58] sm:$0xff] %v2193_v41 }
 0xb71   :  { %2609 = shalt.err (!%p2606_p1)
}
 0xb72   :  { %s2637_s19 = smov 128   ;;  %s2638_s20 = smov 8  }
 0xb73   :  { %2217 = dma.vmem_to_hbm [thread:$0]  %s2212_s17, 1536, %s3835_s4, [#allocation6], %s2637_s19, %s2637_s19, %s2638_s20  }
 0xb74   :  { %2624 = dma.done.wait [#allocation6], 1536  }
 0xb75   :  { %2625 = vsyncadd [#allocation6], 4294965760 }
 0xb76   :  { %2626 = dma.done.wait [#allocation14], 128  }
 0xb77   :  { %2627 = vsyncadd [#allocation14], 4294967168 }
 0xb78   :  { %2234 = vsyncpa [#allocation5], 1 }
 0xb79   :  { %2235 = vsyncpa [#allocation8], 1 }
 0xb7a   :  { %2236 = vsyncpa [#allocation11], 1 }
 0xb7b   :  { %2237 = vsyncpa [#allocation6], 1 }
 0xb7c   :  { %2238 = vsyncpa [#allocation14], 1 }

</bundles_post_ra>
